<compile_context>
chip_gen: v5e
topology: v5e:2x2
jax: 0.10.0
libtpu: 0.0.40
codegen_flags: <defaults>
</compile_context>

<pallas_src>
import jax
import jax.numpy as jnp
from jax.experimental import pallas as pl
from jax.experimental.pallas import tpu as pltpu

# ----------------------------- config (small, deterministic) -----------------------------
CHANNELS = [64, 128, 320, 512]          # self.channels for the MLPDecoder branch
STRIDES = [4, 2, 2, 2]
EMBED_DIM = 64                          # cfg.decoder_embed_dim
NUM_CLASSES = 8                         # cfg.num_classes
IN_CH = 3

TILE_M = 1024                           # pixel-row tile for the matmul kernels
VMEM_LIMIT = 32 * 1024 * 1024           # explicit scoped-VMEM budget (safe on v5e/v6e/v7x)


def _pick_tm(m, cap=TILE_M):
    """Tile rows: capped for VMEM, but split into >=2 tiles when possible (v7x dual TC)."""
    if m <= 16:
        return m                        # single full-M block (exempt from 8-divisibility)
    half = ((-(-m // 2) + 7) // 8) * 8  # ceil(M/2) rounded up to a sublane multiple
    return min(cap, half, m)


# ------------- Pallas kernel: dual-branch patch-embed + fused-feature projection ----------
def _stage_kernel(x_ref, w_ref, b_ref, wc_ref, o_br_ref, o_proj_ref, acc_ref):
    # x_ref:(tm,K) bf16  w_ref:(K,N) bf16  b_ref:(1,N) f32  wc_ref:(N,E) bf16
    # o_br_ref:(tm,N) bf16 per-branch feature   o_proj_ref:(tm,E) bf16 fused+projected
    # acc_ref:(tm,N) f32 scratch holding branch-0's ReLU output across the branch axis.
    br = pl.program_id(1)
    y = jnp.dot(x_ref[...], w_ref[...], preferred_element_type=jnp.float32)
    y = jnp.maximum(y + b_ref[...], 0.0)                  # f32 epilogue (v5e-safe)
    o_br_ref[...] = y.astype(o_br_ref.dtype)

    @pl.when(br == 0)
    def _():
        acc_ref[...] = y

    @pl.when(br == 1)
    def _():
        fused = acc_ref[...] + y                          # rgb + modal, never hits HBM
        proj = jnp.dot(fused.astype(jnp.bfloat16), wc_ref[...],
                       preferred_element_type=jnp.float32)
        o_proj_ref[...] = proj.astype(o_proj_ref.dtype)   # 64-ch projected fused feature


def dual_stage(x2, w2, b2, wc):
    """One call per backbone stage, both branches.

    x2 (2, M, K) bf16, w2 (2, K, N) bf16, b2 (2, 1, N) f32, wc (N, E) bf16.
    Returns: per-branch features (2, M, N) bf16 (next-stage input / color_fea, other_fea)
             and the fused feature projected to EMBED_DIM, (M, E) bf16 (decoder input).
    Grid = (pixel-tile [parallel], branch [arbitrary, innermost]).
    """
    _, M, K = x2.shape
    N = w2.shape[-1]
    E = wc.shape[-1]
    tm = _pick_tm(M)
    grid = (pl.cdiv(M, tm), 2)
    return pl.pallas_call(
        _stage_kernel,
        out_shape=(jax.ShapeDtypeStruct((2, M, N), jnp.bfloat16),
                   jax.ShapeDtypeStruct((M, E), jnp.bfloat16)),
        grid_spec=pltpu.PrefetchScalarGridSpec(
            num_scalar_prefetch=0,
            grid=grid,
            in_specs=[
                pl.BlockSpec((None, tm, K), lambda i, br: (br, i, 0)),
                pl.BlockSpec((None, K, N), lambda i, br: (br, 0, 0)),
                pl.BlockSpec((None, 1, N), lambda i, br: (br, 0, 0)),
                pl.BlockSpec((N, E), lambda i, br: (0, 0)),
            ],
            out_specs=[
                pl.BlockSpec((None, tm, N), lambda i, br: (br, i, 0)),
                pl.BlockSpec((tm, E), lambda i, br: (i, 0)),   # resident across branch axis
            ],
            scratch_shapes=[pltpu.VMEM((tm, N), jnp.float32)],
        ),
        compiler_params=pltpu.CompilerParams(
            dimension_semantics=("parallel", "arbitrary"),
            vmem_limit_bytes=VMEM_LIMIT),
    )(x2, w2, b2, wc)


# ------------- Pallas kernel: decoder epilogue (bias + ReLU + classifier) -----------------
def _head_kernel(x_ref, b_ref, w_ref, bp_ref, o_ref):
    # x_ref:(tm,E) f32 summed upsampled projections; fuse-conv bias + ReLU + pred matmul.
    y = jnp.maximum(x_ref[...] + b_ref[...], 0.0)         # ConvModule 1x1+BN(id)+ReLU
    logits = jnp.dot(y.astype(jnp.bfloat16), w_ref[...],
                     preferred_element_type=jnp.float32) + bp_ref[...]
    o_ref[...] = logits                                    # dropout -> identity at inference


def head_pallas(x, b_total, w_pred, b_pred):
    M, E = x.shape
    Nc = w_pred.shape[-1]
    tm = _pick_tm(M)
    grid = (pl.cdiv(M, tm),)
    return pl.pallas_call(
        _head_kernel,
        out_shape=jax.ShapeDtypeStruct((M, Nc), jnp.float32),
        grid_spec=pltpu.PrefetchScalarGridSpec(
            num_scalar_prefetch=0,
            grid=grid,
            in_specs=[
                pl.BlockSpec((tm, E), lambda i: (i, 0)),
                pl.BlockSpec((1, E), lambda i: (0, 0)),
                pl.BlockSpec((E, Nc), lambda i: (0, 0)),
                pl.BlockSpec((1, Nc), lambda i: (0, 0)),
            ],
            out_specs=pl.BlockSpec((tm, Nc), lambda i: (i, 0)),
        ),
        compiler_params=pltpu.CompilerParams(
            dimension_semantics=("parallel",),
            vmem_limit_bytes=VMEM_LIMIT),
    )(x, b_total, w_pred, b_pred)


# ----------------------------- glue helpers (plain JAX) -----------------------------------
def _patchify(x_nhwc, p):
    """Non-overlapping patch extraction (conv with kernel_size=stride=p)."""
    B, H, W, C = x_nhwc.shape
    x = x_nhwc.reshape(B, H // p, p, W // p, p, C)
    x = jnp.transpose(x, (0, 1, 3, 2, 4, 5))               # (B, H', W', p, p, C)
    return x.reshape(B, H // p, W // p, p * p * C)


def _resize_bilinear(feat, h, w):
    # matches F.interpolate(mode='bilinear', align_corners=False) (half-pixel centers);
    # antialias=False explicitly per review (all resizes here are upscales).
    B, _, _, C = feat.shape
    return jax.image.resize(feat, (B, h, w, C), method="bilinear", antialias=False)


# ----------------------------- parameter init (deterministic, no checkpoint) --------------
def _dense_init(key, fan_in, fan_out):
    kw, _ = jax.random.split(key)
    w = jax.random.normal(kw, (fan_in, fan_out), jnp.float32) * (2.0 / fan_in) ** 0.5
    b = jnp.zeros((fan_out,), jnp.float32)
    return w, b


def init_params(key):
    params = {"backbone": {"w": [], "b": []}, "decode_head": {}}
    # backbone: per-stage stacked (rgb, modal) patch-embed weights, pre-cast to bf16 once
    c_prev = IN_CH
    for c_out, p in zip(CHANNELS, STRIDES):
        k_in = c_prev * p * p
        ws, bs = [], []
        for _branch in range(2):
            key, sub = jax.random.split(key)
            w, b = _dense_init(sub, k_in, c_out)
            ws.append(w)
            bs.append(b)
        params["backbone"]["w"].append(jnp.stack(ws).astype(jnp.bfloat16))             # (2,K,N)
        params["backbone"]["b"].append(jnp.stack(bs)[:, None, :].astype(jnp.float32))  # (2,1,N)
        c_prev = c_out

    # MLPDecoder: per-scale linear_c composed with the matching slice of the 1x1 fuse conv
    # (concat order in torch is [c4, c3, c2, c1] -> fuse rows [0:64] pair with scale 4, ...).
    lin = []
    for c in CHANNELS:
        key, sub = jax.random.split(key)
        lin.append(_dense_init(sub, c, EMBED_DIM))
    key, k_fuse, k_pred = jax.random.split(key, 3)
    w_fuse, b_fuse = _dense_init(k_fuse, 4 * EMBED_DIM, EMBED_DIM)
    w_pred, b_pred = _dense_init(k_pred, EMBED_DIM, NUM_CLASSES)

    wc = [None] * len(CHANNELS)
    b_total = b_fuse
    for pos, s in enumerate([3, 2, 1, 0]):                  # concat order c4, c3, c2, c1
        wf_s = w_fuse[pos * EMBED_DIM:(pos + 1) * EMBED_DIM, :]
        wp_s, bp_s = lin[s]
        wc[s] = (wp_s @ wf_s).astype(jnp.bfloat16)          # (C_s, EMBED_DIM) composed
        b_total = b_total + bp_s @ wf_s                     # bias folds through the fuse conv
    params["decode_head"] = {
        "wc": wc,
        "b_total": b_total[None, :].astype(jnp.float32),
        "w_pred": w_pred.astype(jnp.bfloat16),
        "b_pred": b_pred[None, :].astype(jnp.float32),
    }
    return params


# ----------------------------- forward -----------------------------------------------------
def backbone_forward(params, decode_params, rgb_nhwc, modal_nhwc):
    B, H, W, C = rgb_nhwc.shape
    # stack both branches: patchify on a 2B batch, kernel sees a length-2 branch axis
    x = jnp.stack([rgb_nhwc, modal_nhwc], axis=0).reshape(2 * B, H, W, C).astype(jnp.bfloat16)
    projs = []                                             # per-scale fused features @ EMBED_DIM
    h, w = H, W
    out_br = None
    for s, p in enumerate(STRIDES):
        patches = _patchify(x, p)                          # (2B, h/p, w/p, p*p*C)  TODO(synk): fold into kernel
        h, w = h // p, w // p
        k = patches.shape[-1]
        n = CHANNELS[s]
        x2 = patches.reshape(2, B * h * w, k)
        out_br, out_proj = dual_stage(x2, params["backbone"]["w"][s],
                                      params["backbone"]["b"][s],
                                      decode_params["wc"][s])
        projs.append(out_proj.reshape(B, h, w, EMBED_DIM))
        x = out_br.reshape(2 * B, h, w, n)                 # bf16 branch features continue
    color_fea = out_br[0].reshape(B, h, w, CHANNELS[-1])   # unused when label is None
    other_fea = out_br[1].reshape(B, h, w, CHANNELS[-1])
    return projs, color_fea, other_fea


def decode_head_forward(decode_params, projs):
    # project-then-upsample: each scale is already projected to EMBED_DIM inside the
    # backbone kernel; upsample the 64-ch maps to 1/4 scale and sum (== fuse conv matmul).
    B, H1, W1, E = projs[0].shape                          # 1/4-scale spatial size
    acc = projs[0].astype(jnp.float32)
    for s in range(1, len(projs)):
        acc = acc + _resize_bilinear(projs[s].astype(jnp.float32), H1, W1)
    M = B * H1 * W1
    out = head_pallas(acc.reshape(M, E),
                      decode_params["b_total"],
                      decode_params["w_pred"],
                      decode_params["b_pred"])
    return out.reshape(B, H1, W1, NUM_CLASSES)


def encoder_decoder_forward(params, rgb_nchw, modal_nchw):
    """EncoderDecoder.forward(rgb, modal_x, label=None) -> logits (B, num_classes, H, W)."""
    B, C, H, W = rgb_nchw.shape
    rgb = jnp.transpose(rgb_nchw, (0, 2, 3, 1))
    modal = jnp.transpose(modal_nchw, (0, 2, 3, 1))
    d = params["decode_head"]
    projs, _color_fea, _other_fea = backbone_forward(params, d, rgb, modal)
    out = decode_head_forward(d, projs)                    # (B, H/4, W/4, num_classes) f32
    out = _resize_bilinear(out, H, W)                      # F.interpolate to orisize, bilinear, AC=False
    return jnp.transpose(out, (0, 3, 1, 2))                # back to NCHW like PyTorch


# ----------------------------- main --------------------------------------------------------
if __name__ == "__main__":
    key = jax.random.PRNGKey(0)
    k_rgb, k_modal = jax.random.split(key)
    B, H, W = 2, 64, 64
    rgb = jax.random.normal(k_rgb, (B, IN_CH, H, W), jnp.float32)
    modal_x = jax.random.normal(k_modal, (B, IN_CH, H, W), jnp.float32)

    params = init_params(jax.random.PRNGKey(42))

    fwd = jax.jit(encoder_decoder_forward)
    out = fwd(params, rgb, modal_x)
    out = jax.block_until_ready(out)

    assert out.shape == (B, NUM_CLASSES, H, W), out.shape
    assert out.dtype == jnp.float32
    assert bool(jnp.all(jnp.isfinite(out)))
    print("KERNEL_OK")
</pallas_src>

<mosaic_0001>
module attributes {stable_mosaic.version = 11 : i64} {
  func.func @_stage_kernel(%arg0: i32, %arg1: i32, %arg2: memref<1x256x48xbf16, #tpu.memory_space<vmem>>, %arg3: memref<1x48x64xbf16, #tpu.memory_space<vmem>>, %arg4: memref<1x1x64xf32, #tpu.memory_space<vmem>>, %arg5: memref<64x64xbf16, #tpu.memory_space<vmem>>, %arg6: memref<1x256x64xbf16, #tpu.memory_space<vmem>>, %arg7: memref<256x64xbf16, #tpu.memory_space<vmem>>, %arg8: memref<256x64xf32, #tpu.memory_space<vmem>>) attributes {dimension_semantics = [#tpu.dimension_semantics<parallel>, #tpu.dimension_semantics<arbitrary>], iteration_bounds = array<i64: 2, 2>, scalar_prefetch = 0 : i64, scratch_operands = 1 : i64, tpu.core_type = #tpu.core_type<tc>, window_params = [{transform_indices = @transform_0, window_bounds = array<i64: 1, 256, 48>}, {transform_indices = @transform_1, window_bounds = array<i64: 1, 48, 64>}, {transform_indices = @transform_2, window_bounds = array<i64: 1, 1, 64>}, {pipeline_mode = #tpu.pipeline_mode<synchronous>, transform_indices = @transform_3, window_bounds = array<i64: 64, 64>}, {transform_indices = @transform_4, window_bounds = array<i64: 1, 256, 64>}, {transform_indices = @transform_5, window_bounds = array<i64: 256, 64>}]} {
    %c0 = arith.constant 0 : index
    %c0_0 = arith.constant 0 : index
    %c0_1 = arith.constant 0 : index
    %0 = vector.load %arg2[%c0, %c0_0, %c0_1] : memref<1x256x48xbf16, #tpu.memory_space<vmem>>, vector<1x256x48xbf16>
    %1 = vector.shape_cast %0 : vector<1x256x48xbf16> to vector<256x48xbf16>
    %c0_2 = arith.constant 0 : index
    %c0_3 = arith.constant 0 : index
    %c0_4 = arith.constant 0 : index
    %2 = vector.load %arg3[%c0_2, %c0_3, %c0_4] : memref<1x48x64xbf16, #tpu.memory_space<vmem>>, vector<1x48x64xbf16>
    %3 = vector.shape_cast %2 : vector<1x48x64xbf16> to vector<48x64xbf16>
    %cst = arith.constant dense<0.000000e+00> : vector<256x64xf32>
    %4 = tpu.matmul %1, %3, %cst {dimension_numbers = #tpu.dot_dimension_numbers<[1], [0], [0], [1], [0, 0, 1, 1], [], []>} : vector<256x48xbf16>, vector<48x64xbf16>, vector<256x64xf32> -> vector<256x64xf32>
    %c0_5 = arith.constant 0 : index
    %c0_6 = arith.constant 0 : index
    %c0_7 = arith.constant 0 : index
    %5 = vector.load %arg4[%c0_5, %c0_6, %c0_7] : memref<1x1x64xf32, #tpu.memory_space<vmem>>, vector<1x1x64xf32>
    %6 = vector.shape_cast %5 : vector<1x1x64xf32> to vector<1x64xf32>
    %7 = vector.broadcast %6 : vector<1x64xf32> to vector<256x64xf32>
    %8 = arith.addf %4, %7 : vector<256x64xf32>
    %cst_8 = arith.constant 0.000000e+00 : f32
    %9 = vector.broadcast %cst_8 : f32 to vector<256x64xf32>
    %10 = arith.maximumf %8, %9 : vector<256x64xf32>
    %11 = arith.truncf %10 : vector<256x64xf32> to vector<256x64xbf16>
    %c0_9 = arith.constant 0 : index
    %c0_10 = arith.constant 0 : index
    %c0_11 = arith.constant 0 : index
    %12 = vector.load %arg6[%c0_9, %c0_10, %c0_11] : memref<1x256x64xbf16, #tpu.memory_space<vmem>>, vector<1x256x64xbf16>
    %13 = vector.shape_cast %12 : vector<1x256x64xbf16> to vector<256x64xbf16>
    %14 = vector.shape_cast %11 : vector<256x64xbf16> to vector<1x256x64xbf16>
    tpu.vector_store %arg6[%c0_9, %c0_10, %c0_11], %14 {strides = array<i32>} : memref<1x256x64xbf16, #tpu.memory_space<vmem>>, vector<1x256x64xbf16>,
    %c0_i32 = arith.constant 0 : i32
    %15 = arith.cmpi eq, %arg1, %c0_i32 : i32
    %16 = arith.extui %15 : i1 to i32
    %c0_i32_12 = arith.constant 0 : i32
    %17 = arith.cmpi ne, %16, %c0_i32_12 : i32
    scf.if %17 {
      %c0_14 = arith.constant 0 : index
      %c0_15 = arith.constant 0 : index
      %21 = vector.load %arg8[%c0_14, %c0_15] : memref<256x64xf32, #tpu.memory_space<vmem>>, vector<256x64xf32>
      tpu.vector_store %arg8[%c0_14, %c0_15], %10 {strides = array<i32>} : memref<256x64xf32, #tpu.memory_space<vmem>>, vector<256x64xf32>,
    } else {
    }
    %c1_i32 = arith.constant 1 : i32
    %18 = arith.cmpi eq, %arg1, %c1_i32 : i32
    %19 = arith.extui %18 : i1 to i32
    %c0_i32_13 = arith.constant 0 : i32
    %20 = arith.cmpi ne, %19, %c0_i32_13 : i32
    scf.if %20 {
      %c0_14 = arith.constant 0 : index
      %c0_15 = arith.constant 0 : index
      %21 = vector.load %arg8[%c0_14, %c0_15] : memref<256x64xf32, #tpu.memory_space<vmem>>, vector<256x64xf32>
      %22 = arith.addf %21, %10 : vector<256x64xf32>
      %23 = arith.truncf %22 : vector<256x64xf32> to vector<256x64xbf16>
      %c0_16 = arith.constant 0 : index
      %c0_17 = arith.constant 0 : index
      %24 = vector.load %arg5[%c0_16, %c0_17] : memref<64x64xbf16, #tpu.memory_space<vmem>>, vector<64x64xbf16>
      %cst_18 = arith.constant dense<0.000000e+00> : vector<256x64xf32>
      %25 = tpu.matmul %23, %24, %cst_18 {dimension_numbers = #tpu.dot_dimension_numbers<[1], [0], [0], [1], [0, 0, 1, 1], [], []>} : vector<256x64xbf16>, vector<64x64xbf16>, vector<256x64xf32> -> vector<256x64xf32>
      %26 = arith.truncf %25 : vector<256x64xf32> to vector<256x64xbf16>
      %c0_19 = arith.constant 0 : index
      %c0_20 = arith.constant 0 : index
      %27 = vector.load %arg7[%c0_19, %c0_20] : memref<256x64xbf16, #tpu.memory_space<vmem>>, vector<256x64xbf16>
      tpu.vector_store %arg7[%c0_19, %c0_20], %26 {strides = array<i32>} : memref<256x64xbf16, #tpu.memory_space<vmem>>, vector<256x64xbf16>,
    } else {
    }
    return
  }
  func.func @transform_0(%arg0: i32, %arg1: i32) -> (i32, i32, i32) {
    %c0_i32 = arith.constant 0 : i32
    %c0_i32_0 = arith.constant 0 : i32
    return %arg1, %arg0, %c0_i32 : i32, i32, i32
  }
  func.func @transform_1(%arg0: i32, %arg1: i32) -> (i32, i32, i32) {
    %c0_i32 = arith.constant 0 : i32
    %c0_i32_0 = arith.constant 0 : i32
    %c0_i32_1 = arith.constant 0 : i32
    return %arg1, %c0_i32, %c0_i32_0 : i32, i32, i32
  }
  func.func @transform_2(%arg0: i32, %arg1: i32) -> (i32, i32, i32) {
    %c0_i32 = arith.constant 0 : i32
    %c0_i32_0 = arith.constant 0 : i32
    %c0_i32_1 = arith.constant 0 : i32
    return %arg1, %c0_i32, %c0_i32_0 : i32, i32, i32
  }
  func.func @transform_3(%arg0: i32, %arg1: i32) -> (i32, i32) {
    %c0_i32 = arith.constant 0 : i32
    %c0_i32_0 = arith.constant 0 : i32
    %c0_i32_1 = arith.constant 0 : i32
    return %c0_i32, %c0_i32_0 : i32, i32
  }
  func.func @transform_4(%arg0: i32, %arg1: i32) -> (i32, i32, i32) {
    %c0_i32 = arith.constant 0 : i32
    %c0_i32_0 = arith.constant 0 : i32
    return %arg1, %arg0, %c0_i32 : i32, i32, i32
  }
  func.func @transform_5(%arg0: i32, %arg1: i32) -> (i32, i32) {
    %c0_i32 = arith.constant 0 : i32
    %c0_i32_0 = arith.constant 0 : i32
    return %arg0, %c0_i32 : i32, i32
  }
}

module attributes {stable_mosaic.version = 11 : i64} {
  func.func @_stage_kernel(%arg0: i32, %arg1: i32, %arg2: memref<1x64x256xbf16, #tpu.memory_space<vmem>>, %arg3: memref<1x256x128xbf16, #tpu.memory_space<vmem>>, %arg4: memref<1x1x128xf32, #tpu.memory_space<vmem>>, %arg5: memref<128x64xbf16, #tpu.memory_space<vmem>>, %arg6: memref<1x64x128xbf16, #tpu.memory_space<vmem>>, %arg7: memref<64x64xbf16, #tpu.memory_space<vmem>>, %arg8: memref<64x128xf32, #tpu.memory_space<vmem>>) attributes {dimension_semantics = [#tpu.dimension_semantics<parallel>, #tpu.dimension_semantics<arbitrary>], iteration_bounds = array<i64: 2, 2>, scalar_prefetch = 0 : i64, scratch_operands = 1 : i64, tpu.core_type = #tpu.core_type<tc>, window_params = [{transform_indices = @transform_0, window_bounds = array<i64: 1, 64, 256>}, {transform_indices = @transform_1, window_bounds = array<i64: 1, 256, 128>}, {transform_indices = @transform_2, window_bounds = array<i64: 1, 1, 128>}, {pipeline_mode = #tpu.pipeline_mode<synchronous>, transform_indices = @transform_3, window_bounds = array<i64: 128, 64>}, {transform_indices = @transform_4, window_bounds = array<i64: 1, 64, 128>}, {transform_indices = @transform_5, window_bounds = array<i64: 64, 64>}]} {
    %c0 = arith.constant 0 : index
    %c0_0 = arith.constant 0 : index
    %c0_1 = arith.constant 0 : index
    %0 = vector.load %arg2[%c0, %c0_0, %c0_1] : memref<1x64x256xbf16, #tpu.memory_space<vmem>>, vector<1x64x256xbf16>
    %1 = vector.shape_cast %0 : vector<1x64x256xbf16> to vector<64x256xbf16>
    %c0_2 = arith.constant 0 : index
    %c0_3 = arith.constant 0 : index
    %c0_4 = arith.constant 0 : index
    %2 = vector.load %arg3[%c0_2, %c0_3, %c0_4] : memref<1x256x128xbf16, #tpu.memory_space<vmem>>, vector<1x256x128xbf16>
    %3 = vector.shape_cast %2 : vector<1x256x128xbf16> to vector<256x128xbf16>
    %cst = arith.constant dense<0.000000e+00> : vector<64x128xf32>
    %4 = tpu.matmul %1, %3, %cst {dimension_numbers = #tpu.dot_dimension_numbers<[1], [0], [0], [1], [0, 0, 1, 1], [], []>} : vector<64x256xbf16>, vector<256x128xbf16>, vector<64x128xf32> -> vector<64x128xf32>
    %c0_5 = arith.constant 0 : index
    %c0_6 = arith.constant 0 : index
    %c0_7 = arith.constant 0 : index
    %5 = vector.load %arg4[%c0_5, %c0_6, %c0_7] : memref<1x1x128xf32, #tpu.memory_space<vmem>>, vector<1x1x128xf32>
    %6 = vector.shape_cast %5 : vector<1x1x128xf32> to vector<1x128xf32>
    %7 = vector.broadcast %6 : vector<1x128xf32> to vector<64x128xf32>
    %8 = arith.addf %4, %7 : vector<64x128xf32>
    %cst_8 = arith.constant 0.000000e+00 : f32
    %9 = vector.broadcast %cst_8 : f32 to vector<64x128xf32>
    %10 = arith.maximumf %8, %9 : vector<64x128xf32>
    %11 = arith.truncf %10 : vector<64x128xf32> to vector<64x128xbf16>
    %c0_9 = arith.constant 0 : index
    %c0_10 = arith.constant 0 : index
    %c0_11 = arith.constant 0 : index
    %12 = vector.load %arg6[%c0_9, %c0_10, %c0_11] : memref<1x64x128xbf16, #tpu.memory_space<vmem>>, vector<1x64x128xbf16>
    %13 = vector.shape_cast %12 : vector<1x64x128xbf16> to vector<64x128xbf16>
    %14 = vector.shape_cast %11 : vector<64x128xbf16> to vector<1x64x128xbf16>
    tpu.vector_store %arg6[%c0_9, %c0_10, %c0_11], %14 {strides = array<i32>} : memref<1x64x128xbf16, #tpu.memory_space<vmem>>, vector<1x64x128xbf16>,
    %c0_i32 = arith.constant 0 : i32
    %15 = arith.cmpi eq, %arg1, %c0_i32 : i32
    %16 = arith.extui %15 : i1 to i32
    %c0_i32_12 = arith.constant 0 : i32
    %17 = arith.cmpi ne, %16, %c0_i32_12 : i32
    scf.if %17 {
      %c0_14 = arith.constant 0 : index
      %c0_15 = arith.constant 0 : index
      %21 = vector.load %arg8[%c0_14, %c0_15] : memref<64x128xf32, #tpu.memory_space<vmem>>, vector<64x128xf32>
      tpu.vector_store %arg8[%c0_14, %c0_15], %10 {strides = array<i32>} : memref<64x128xf32, #tpu.memory_space<vmem>>, vector<64x128xf32>,
    } else {
    }
    %c1_i32 = arith.constant 1 : i32
    %18 = arith.cmpi eq, %arg1, %c1_i32 : i32
    %19 = arith.extui %18 : i1 to i32
    %c0_i32_13 = arith.constant 0 : i32
    %20 = arith.cmpi ne, %19, %c0_i32_13 : i32
    scf.if %20 {
      %c0_14 = arith.constant 0 : index
      %c0_15 = arith.constant 0 : index
      %21 = vector.load %arg8[%c0_14, %c0_15] : memref<64x128xf32, #tpu.memory_space<vmem>>, vector<64x128xf32>
      %22 = arith.addf %21, %10 : vector<64x128xf32>
      %23 = arith.truncf %22 : vector<64x128xf32> to vector<64x128xbf16>
      %c0_16 = arith.constant 0 : index
      %c0_17 = arith.constant 0 : index
      %24 = vector.load %arg5[%c0_16, %c0_17] : memref<128x64xbf16, #tpu.memory_space<vmem>>, vector<128x64xbf16>
      %cst_18 = arith.constant dense<0.000000e+00> : vector<64x64xf32>
      %25 = tpu.matmul %23, %24, %cst_18 {dimension_numbers = #tpu.dot_dimension_numbers<[1], [0], [0], [1], [0, 0, 1, 1], [], []>} : vector<64x128xbf16>, vector<128x64xbf16>, vector<64x64xf32> -> vector<64x64xf32>
      %26 = arith.truncf %25 : vector<64x64xf32> to vector<64x64xbf16>
      %c0_19 = arith.constant 0 : index
      %c0_20 = arith.constant 0 : index
      %27 = vector.load %arg7[%c0_19, %c0_20] : memref<64x64xbf16, #tpu.memory_space<vmem>>, vector<64x64xbf16>
      tpu.vector_store %arg7[%c0_19, %c0_20], %26 {strides = array<i32>} : memref<64x64xbf16, #tpu.memory_space<vmem>>, vector<64x64xbf16>,
    } else {
    }
    return
  }
  func.func @transform_0(%arg0: i32, %arg1: i32) -> (i32, i32, i32) {
    %c0_i32 = arith.constant 0 : i32
    %c0_i32_0 = arith.constant 0 : i32
    return %arg1, %arg0, %c0_i32 : i32, i32, i32
  }
  func.func @transform_1(%arg0: i32, %arg1: i32) -> (i32, i32, i32) {
    %c0_i32 = arith.constant 0 : i32
    %c0_i32_0 = arith.constant 0 : i32
    %c0_i32_1 = arith.constant 0 : i32
    return %arg1, %c0_i32, %c0_i32_0 : i32, i32, i32
  }
  func.func @transform_2(%arg0: i32, %arg1: i32) -> (i32, i32, i32) {
    %c0_i32 = arith.constant 0 : i32
    %c0_i32_0 = arith.constant 0 : i32
    %c0_i32_1 = arith.constant 0 : i32
    return %arg1, %c0_i32, %c0_i32_0 : i32, i32, i32
  }
  func.func @transform_3(%arg0: i32, %arg1: i32) -> (i32, i32) {
    %c0_i32 = arith.constant 0 : i32
    %c0_i32_0 = arith.constant 0 : i32
    %c0_i32_1 = arith.constant 0 : i32
    return %c0_i32, %c0_i32_0 : i32, i32
  }
  func.func @transform_4(%arg0: i32, %arg1: i32) -> (i32, i32, i32) {
    %c0_i32 = arith.constant 0 : i32
    %c0_i32_0 = arith.constant 0 : i32
    return %arg1, %arg0, %c0_i32 : i32, i32, i32
  }
  func.func @transform_5(%arg0: i32, %arg1: i32) -> (i32, i32) {
    %c0_i32 = arith.constant 0 : i32
    %c0_i32_0 = arith.constant 0 : i32
    return %arg0, %c0_i32 : i32, i32
  }
}

module attributes {stable_mosaic.version = 11 : i64} {
  func.func @_stage_kernel(%arg0: i32, %arg1: i32, %arg2: memref<1x16x512xbf16, #tpu.memory_space<vmem>>, %arg3: memref<1x512x320xbf16, #tpu.memory_space<vmem>>, %arg4: memref<1x1x320xf32, #tpu.memory_space<vmem>>, %arg5: memref<320x64xbf16, #tpu.memory_space<vmem>>, %arg6: memref<1x16x320xbf16, #tpu.memory_space<vmem>>, %arg7: memref<16x64xbf16, #tpu.memory_space<vmem>>, %arg8: memref<16x320xf32, #tpu.memory_space<vmem>>) attributes {dimension_semantics = [#tpu.dimension_semantics<parallel>, #tpu.dimension_semantics<arbitrary>], iteration_bounds = array<i64: 2, 2>, scalar_prefetch = 0 : i64, scratch_operands = 1 : i64, tpu.core_type = #tpu.core_type<tc>, window_params = [{transform_indices = @transform_0, window_bounds = array<i64: 1, 16, 512>}, {transform_indices = @transform_1, window_bounds = array<i64: 1, 512, 320>}, {transform_indices = @transform_2, window_bounds = array<i64: 1, 1, 320>}, {pipeline_mode = #tpu.pipeline_mode<synchronous>, transform_indices = @transform_3, window_bounds = array<i64: 320, 64>}, {transform_indices = @transform_4, window_bounds = array<i64: 1, 16, 320>}, {transform_indices = @transform_5, window_bounds = array<i64: 16, 64>}]} {
    %c0 = arith.constant 0 : index
    %c0_0 = arith.constant 0 : index
    %c0_1 = arith.constant 0 : index
    %0 = vector.load %arg2[%c0, %c0_0, %c0_1] : memref<1x16x512xbf16, #tpu.memory_space<vmem>>, vector<1x16x512xbf16>
    %1 = vector.shape_cast %0 : vector<1x16x512xbf16> to vector<16x512xbf16>
    %c0_2 = arith.constant 0 : index
    %c0_3 = arith.constant 0 : index
    %c0_4 = arith.constant 0 : index
    %2 = vector.load %arg3[%c0_2, %c0_3, %c0_4] : memref<1x512x320xbf16, #tpu.memory_space<vmem>>, vector<1x512x320xbf16>
    %3 = vector.shape_cast %2 : vector<1x512x320xbf16> to vector<512x320xbf16>
    %cst = arith.constant dense<0.000000e+00> : vector<16x320xf32>
    %4 = tpu.matmul %1, %3, %cst {dimension_numbers = #tpu.dot_dimension_numbers<[1], [0], [0], [1], [0, 0, 1, 1], [], []>} : vector<16x512xbf16>, vector<512x320xbf16>, vector<16x320xf32> -> vector<16x320xf32>
    %c0_5 = arith.constant 0 : index
    %c0_6 = arith.constant 0 : index
    %c0_7 = arith.constant 0 : index
    %5 = vector.load %arg4[%c0_5, %c0_6, %c0_7] : memref<1x1x320xf32, #tpu.memory_space<vmem>>, vector<1x1x320xf32>
    %6 = vector.shape_cast %5 : vector<1x1x320xf32> to vector<1x320xf32>
    %7 = vector.broadcast %6 : vector<1x320xf32> to vector<16x320xf32>
    %8 = arith.addf %4, %7 : vector<16x320xf32>
    %cst_8 = arith.constant 0.000000e+00 : f32
    %9 = vector.broadcast %cst_8 : f32 to vector<16x320xf32>
    %10 = arith.maximumf %8, %9 : vector<16x320xf32>
    %11 = arith.truncf %10 : vector<16x320xf32> to vector<16x320xbf16>
    %c0_9 = arith.constant 0 : index
    %c0_10 = arith.constant 0 : index
    %c0_11 = arith.constant 0 : index
    %12 = vector.load %arg6[%c0_9, %c0_10, %c0_11] : memref<1x16x320xbf16, #tpu.memory_space<vmem>>, vector<1x16x320xbf16>
    %13 = vector.shape_cast %12 : vector<1x16x320xbf16> to vector<16x320xbf16>
    %14 = vector.shape_cast %11 : vector<16x320xbf16> to vector<1x16x320xbf16>
    tpu.vector_store %arg6[%c0_9, %c0_10, %c0_11], %14 {strides = array<i32>} : memref<1x16x320xbf16, #tpu.memory_space<vmem>>, vector<1x16x320xbf16>,
    %c0_i32 = arith.constant 0 : i32
    %15 = arith.cmpi eq, %arg1, %c0_i32 : i32
    %16 = arith.extui %15 : i1 to i32
    %c0_i32_12 = arith.constant 0 : i32
    %17 = arith.cmpi ne, %16, %c0_i32_12 : i32
    scf.if %17 {
      %c0_14 = arith.constant 0 : index
      %c0_15 = arith.constant 0 : index
      %21 = vector.load %arg8[%c0_14, %c0_15] : memref<16x320xf32, #tpu.memory_space<vmem>>, vector<16x320xf32>
      tpu.vector_store %arg8[%c0_14, %c0_15], %10 {strides = array<i32>} : memref<16x320xf32, #tpu.memory_space<vmem>>, vector<16x320xf32>,
    } else {
    }
    %c1_i32 = arith.constant 1 : i32
    %18 = arith.cmpi eq, %arg1, %c1_i32 : i32
    %19 = arith.extui %18 : i1 to i32
    %c0_i32_13 = arith.constant 0 : i32
    %20 = arith.cmpi ne, %19, %c0_i32_13 : i32
    scf.if %20 {
      %c0_14 = arith.constant 0 : index
      %c0_15 = arith.constant 0 : index
      %21 = vector.load %arg8[%c0_14, %c0_15] : memref<16x320xf32, #tpu.memory_space<vmem>>, vector<16x320xf32>
      %22 = arith.addf %21, %10 : vector<16x320xf32>
      %23 = arith.truncf %22 : vector<16x320xf32> to vector<16x320xbf16>
      %c0_16 = arith.constant 0 : index
      %c0_17 = arith.constant 0 : index
      %24 = vector.load %arg5[%c0_16, %c0_17] : memref<320x64xbf16, #tpu.memory_space<vmem>>, vector<320x64xbf16>
      %cst_18 = arith.constant dense<0.000000e+00> : vector<16x64xf32>
      %25 = tpu.matmul %23, %24, %cst_18 {dimension_numbers = #tpu.dot_dimension_numbers<[1], [0], [0], [1], [0, 0, 1, 1], [], []>} : vector<16x320xbf16>, vector<320x64xbf16>, vector<16x64xf32> -> vector<16x64xf32>
      %26 = arith.truncf %25 : vector<16x64xf32> to vector<16x64xbf16>
      %c0_19 = arith.constant 0 : index
      %c0_20 = arith.constant 0 : index
      %27 = vector.load %arg7[%c0_19, %c0_20] : memref<16x64xbf16, #tpu.memory_space<vmem>>, vector<16x64xbf16>
      tpu.vector_store %arg7[%c0_19, %c0_20], %26 {strides = array<i32>} : memref<16x64xbf16, #tpu.memory_space<vmem>>, vector<16x64xbf16>,
    } else {
    }
    return
  }
  func.func @transform_0(%arg0: i32, %arg1: i32) -> (i32, i32, i32) {
    %c0_i32 = arith.constant 0 : i32
    %c0_i32_0 = arith.constant 0 : i32
    return %arg1, %arg0, %c0_i32 : i32, i32, i32
  }
  func.func @transform_1(%arg0: i32, %arg1: i32) -> (i32, i32, i32) {
    %c0_i32 = arith.constant 0 : i32
    %c0_i32_0 = arith.constant 0 : i32
    %c0_i32_1 = arith.constant 0 : i32
    return %arg1, %c0_i32, %c0_i32_0 : i32, i32, i32
  }
  func.func @transform_2(%arg0: i32, %arg1: i32) -> (i32, i32, i32) {
    %c0_i32 = arith.constant 0 : i32
    %c0_i32_0 = arith.constant 0 : i32
    %c0_i32_1 = arith.constant 0 : i32
    return %arg1, %c0_i32, %c0_i32_0 : i32, i32, i32
  }
  func.func @transform_3(%arg0: i32, %arg1: i32) -> (i32, i32) {
    %c0_i32 = arith.constant 0 : i32
    %c0_i32_0 = arith.constant 0 : i32
    %c0_i32_1 = arith.constant 0 : i32
    return %c0_i32, %c0_i32_0 : i32, i32
  }
  func.func @transform_4(%arg0: i32, %arg1: i32) -> (i32, i32, i32) {
    %c0_i32 = arith.constant 0 : i32
    %c0_i32_0 = arith.constant 0 : i32
    return %arg1, %arg0, %c0_i32 : i32, i32, i32
  }
  func.func @transform_5(%arg0: i32, %arg1: i32) -> (i32, i32) {
    %c0_i32 = arith.constant 0 : i32
    %c0_i32_0 = arith.constant 0 : i32
    return %arg0, %c0_i32 : i32, i32
  }
}

module attributes {stable_mosaic.version = 11 : i64} {
  func.func @_stage_kernel(%arg0: i32, %arg1: i32, %arg2: memref<1x8x1280xbf16, #tpu.memory_space<vmem>>, %arg3: memref<1x1280x512xbf16, #tpu.memory_space<vmem>>, %arg4: memref<1x1x512xf32, #tpu.memory_space<vmem>>, %arg5: memref<512x64xbf16, #tpu.memory_space<vmem>>, %arg6: memref<1x8x512xbf16, #tpu.memory_space<vmem>>, %arg7: memref<8x64xbf16, #tpu.memory_space<vmem>>, %arg8: memref<8x512xf32, #tpu.memory_space<vmem>>) attributes {dimension_semantics = [#tpu.dimension_semantics<parallel>, #tpu.dimension_semantics<arbitrary>], iteration_bounds = array<i64: 1, 2>, scalar_prefetch = 0 : i64, scratch_operands = 1 : i64, tpu.core_type = #tpu.core_type<tc>, window_params = [{transform_indices = @transform_0, window_bounds = array<i64: 1, 8, 1280>}, {transform_indices = @transform_1, window_bounds = array<i64: 1, 1280, 512>}, {transform_indices = @transform_2, window_bounds = array<i64: 1, 1, 512>}, {pipeline_mode = #tpu.pipeline_mode<synchronous>, transform_indices = @transform_3, window_bounds = array<i64: 512, 64>}, {transform_indices = @transform_4, window_bounds = array<i64: 1, 8, 512>}, {transform_indices = @transform_5, window_bounds = array<i64: 8, 64>}]} {
    %c0 = arith.constant 0 : index
    %c0_0 = arith.constant 0 : index
    %c0_1 = arith.constant 0 : index
    %0 = vector.load %arg2[%c0, %c0_0, %c0_1] : memref<1x8x1280xbf16, #tpu.memory_space<vmem>>, vector<1x8x1280xbf16>
    %1 = vector.shape_cast %0 : vector<1x8x1280xbf16> to vector<8x1280xbf16>
    %c0_2 = arith.constant 0 : index
    %c0_3 = arith.constant 0 : index
    %c0_4 = arith.constant 0 : index
    %2 = vector.load %arg3[%c0_2, %c0_3, %c0_4] : memref<1x1280x512xbf16, #tpu.memory_space<vmem>>, vector<1x1280x512xbf16>
    %3 = vector.shape_cast %2 : vector<1x1280x512xbf16> to vector<1280x512xbf16>
    %cst = arith.constant dense<0.000000e+00> : vector<8x512xf32>
    %4 = tpu.matmul %1, %3, %cst {dimension_numbers = #tpu.dot_dimension_numbers<[1], [0], [0], [1], [0, 0, 1, 1], [], []>} : vector<8x1280xbf16>, vector<1280x512xbf16>, vector<8x512xf32> -> vector<8x512xf32>
    %c0_5 = arith.constant 0 : index
    %c0_6 = arith.constant 0 : index
    %c0_7 = arith.constant 0 : index
    %5 = vector.load %arg4[%c0_5, %c0_6, %c0_7] : memref<1x1x512xf32, #tpu.memory_space<vmem>>, vector<1x1x512xf32>
    %6 = vector.shape_cast %5 : vector<1x1x512xf32> to vector<1x512xf32>
    %7 = vector.broadcast %6 : vector<1x512xf32> to vector<8x512xf32>
    %8 = arith.addf %4, %7 : vector<8x512xf32>
    %cst_8 = arith.constant 0.000000e+00 : f32
    %9 = vector.broadcast %cst_8 : f32 to vector<8x512xf32>
    %10 = arith.maximumf %8, %9 : vector<8x512xf32>
    %11 = arith.truncf %10 : vector<8x512xf32> to vector<8x512xbf16>
    %c0_9 = arith.constant 0 : index
    %c0_10 = arith.constant 0 : index
    %c0_11 = arith.constant 0 : index
    %12 = vector.load %arg6[%c0_9, %c0_10, %c0_11] : memref<1x8x512xbf16, #tpu.memory_space<vmem>>, vector<1x8x512xbf16>
    %13 = vector.shape_cast %12 : vector<1x8x512xbf16> to vector<8x512xbf16>
    %14 = vector.shape_cast %11 : vector<8x512xbf16> to vector<1x8x512xbf16>
    tpu.vector_store %arg6[%c0_9, %c0_10, %c0_11], %14 {strides = array<i32>} : memref<1x8x512xbf16, #tpu.memory_space<vmem>>, vector<1x8x512xbf16>,
    %c0_i32 = arith.constant 0 : i32
    %15 = arith.cmpi eq, %arg1, %c0_i32 : i32
    %16 = arith.extui %15 : i1 to i32
    %c0_i32_12 = arith.constant 0 : i32
    %17 = arith.cmpi ne, %16, %c0_i32_12 : i32
    scf.if %17 {
      %c0_14 = arith.constant 0 : index
      %c0_15 = arith.constant 0 : index
      %21 = vector.load %arg8[%c0_14, %c0_15] : memref<8x512xf32, #tpu.memory_space<vmem>>, vector<8x512xf32>
      tpu.vector_store %arg8[%c0_14, %c0_15], %10 {strides = array<i32>} : memref<8x512xf32, #tpu.memory_space<vmem>>, vector<8x512xf32>,
    } else {
    }
    %c1_i32 = arith.constant 1 : i32
    %18 = arith.cmpi eq, %arg1, %c1_i32 : i32
    %19 = arith.extui %18 : i1 to i32
    %c0_i32_13 = arith.constant 0 : i32
    %20 = arith.cmpi ne, %19, %c0_i32_13 : i32
    scf.if %20 {
      %c0_14 = arith.constant 0 : index
      %c0_15 = arith.constant 0 : index
      %21 = vector.load %arg8[%c0_14, %c0_15] : memref<8x512xf32, #tpu.memory_space<vmem>>, vector<8x512xf32>
      %22 = arith.addf %21, %10 : vector<8x512xf32>
      %23 = arith.truncf %22 : vector<8x512xf32> to vector<8x512xbf16>
      %c0_16 = arith.constant 0 : index
      %c0_17 = arith.constant 0 : index
      %24 = vector.load %arg5[%c0_16, %c0_17] : memref<512x64xbf16, #tpu.memory_space<vmem>>, vector<512x64xbf16>
      %cst_18 = arith.constant dense<0.000000e+00> : vector<8x64xf32>
      %25 = tpu.matmul %23, %24, %cst_18 {dimension_numbers = #tpu.dot_dimension_numbers<[1], [0], [0], [1], [0, 0, 1, 1], [], []>} : vector<8x512xbf16>, vector<512x64xbf16>, vector<8x64xf32> -> vector<8x64xf32>
      %26 = arith.truncf %25 : vector<8x64xf32> to vector<8x64xbf16>
      %c0_19 = arith.constant 0 : index
      %c0_20 = arith.constant 0 : index
      %27 = vector.load %arg7[%c0_19, %c0_20] : memref<8x64xbf16, #tpu.memory_space<vmem>>, vector<8x64xbf16>
      tpu.vector_store %arg7[%c0_19, %c0_20], %26 {strides = array<i32>} : memref<8x64xbf16, #tpu.memory_space<vmem>>, vector<8x64xbf16>,
    } else {
    }
    return
  }
  func.func @transform_0(%arg0: i32, %arg1: i32) -> (i32, i32, i32) {
    %c0_i32 = arith.constant 0 : i32
    %c0_i32_0 = arith.constant 0 : i32
    return %arg1, %arg0, %c0_i32 : i32, i32, i32
  }
  func.func @transform_1(%arg0: i32, %arg1: i32) -> (i32, i32, i32) {
    %c0_i32 = arith.constant 0 : i32
    %c0_i32_0 = arith.constant 0 : i32
    %c0_i32_1 = arith.constant 0 : i32
    return %arg1, %c0_i32, %c0_i32_0 : i32, i32, i32
  }
  func.func @transform_2(%arg0: i32, %arg1: i32) -> (i32, i32, i32) {
    %c0_i32 = arith.constant 0 : i32
    %c0_i32_0 = arith.constant 0 : i32
    %c0_i32_1 = arith.constant 0 : i32
    return %arg1, %c0_i32, %c0_i32_0 : i32, i32, i32
  }
  func.func @transform_3(%arg0: i32, %arg1: i32) -> (i32, i32) {
    %c0_i32 = arith.constant 0 : i32
    %c0_i32_0 = arith.constant 0 : i32
    %c0_i32_1 = arith.constant 0 : i32
    return %c0_i32, %c0_i32_0 : i32, i32
  }
  func.func @transform_4(%arg0: i32, %arg1: i32) -> (i32, i32, i32) {
    %c0_i32 = arith.constant 0 : i32
    %c0_i32_0 = arith.constant 0 : i32
    return %arg1, %arg0, %c0_i32 : i32, i32, i32
  }
  func.func @transform_5(%arg0: i32, %arg1: i32) -> (i32, i32) {
    %c0_i32 = arith.constant 0 : i32
    %c0_i32_0 = arith.constant 0 : i32
    return %arg0, %c0_i32 : i32, i32
  }
}

module attributes {stable_mosaic.version = 11 : i64} {
  func.func @_head_kernel(%arg0: i32, %arg1: memref<256x64xf32, #tpu.memory_space<vmem>>, %arg2: memref<1x64xf32, #tpu.memory_space<vmem>>, %arg3: memref<64x8xbf16, #tpu.memory_space<vmem>>, %arg4: memref<1x8xf32, #tpu.memory_space<vmem>>, %arg5: memref<256x8xf32, #tpu.memory_space<vmem>>) attributes {dimension_semantics = [#tpu.dimension_semantics<parallel>], iteration_bounds = array<i64: 2>, scalar_prefetch = 0 : i64, scratch_operands = 0 : i64, tpu.core_type = #tpu.core_type<tc>, window_params = [{transform_indices = @transform_0, window_bounds = array<i64: 256, 64>}, {pipeline_mode = #tpu.pipeline_mode<synchronous>, transform_indices = @transform_1, window_bounds = array<i64: 1, 64>}, {pipeline_mode = #tpu.pipeline_mode<synchronous>, transform_indices = @transform_2, window_bounds = array<i64: 64, 8>}, {pipeline_mode = #tpu.pipeline_mode<synchronous>, transform_indices = @transform_3, window_bounds = array<i64: 1, 8>}, {transform_indices = @transform_4, window_bounds = array<i64: 256, 8>}]} {
    %c0 = arith.constant 0 : index
    %c0_0 = arith.constant 0 : index
    %0 = vector.load %arg1[%c0, %c0_0] : memref<256x64xf32, #tpu.memory_space<vmem>>, vector<256x64xf32>
    %c0_1 = arith.constant 0 : index
    %c0_2 = arith.constant 0 : index
    %1 = vector.load %arg2[%c0_1, %c0_2] : memref<1x64xf32, #tpu.memory_space<vmem>>, vector<1x64xf32>
    %2 = vector.broadcast %1 : vector<1x64xf32> to vector<256x64xf32>
    %3 = arith.addf %0, %2 : vector<256x64xf32>
    %cst = arith.constant 0.000000e+00 : f32
    %4 = vector.broadcast %cst : f32 to vector<256x64xf32>
    %5 = arith.maximumf %3, %4 : vector<256x64xf32>
    %6 = arith.truncf %5 : vector<256x64xf32> to vector<256x64xbf16>
    %c0_3 = arith.constant 0 : index
    %c0_4 = arith.constant 0 : index
    %7 = vector.load %arg3[%c0_3, %c0_4] : memref<64x8xbf16, #tpu.memory_space<vmem>>, vector<64x8xbf16>
    %cst_5 = arith.constant dense<0.000000e+00> : vector<256x8xf32>
    %8 = tpu.matmul %6, %7, %cst_5 {dimension_numbers = #tpu.dot_dimension_numbers<[1], [0], [0], [1], [0, 0, 1, 1], [], []>} : vector<256x64xbf16>, vector<64x8xbf16>, vector<256x8xf32> -> vector<256x8xf32>
    %c0_6 = arith.constant 0 : index
    %c0_7 = arith.constant 0 : index
    %9 = vector.load %arg4[%c0_6, %c0_7] : memref<1x8xf32, #tpu.memory_space<vmem>>, vector<1x8xf32>
    %10 = vector.broadcast %9 : vector<1x8xf32> to vector<256x8xf32>
    %11 = arith.addf %8, %10 : vector<256x8xf32>
    %c0_8 = arith.constant 0 : index
    %c0_9 = arith.constant 0 : index
    %12 = vector.load %arg5[%c0_8, %c0_9] : memref<256x8xf32, #tpu.memory_space<vmem>>, vector<256x8xf32>
    tpu.vector_store %arg5[%c0_8, %c0_9], %11 {strides = array<i32>} : memref<256x8xf32, #tpu.memory_space<vmem>>, vector<256x8xf32>,
    return
  }
  func.func @transform_0(%arg0: i32) -> (i32, i32) {
    %c0_i32 = arith.constant 0 : i32
    %c0_i32_0 = arith.constant 0 : i32
    return %arg0, %c0_i32 : i32, i32
  }
  func.func @transform_1(%arg0: i32) -> (i32, i32) {
    %c0_i32 = arith.constant 0 : i32
    %c0_i32_0 = arith.constant 0 : i32
    %c0_i32_1 = arith.constant 0 : i32
    return %c0_i32, %c0_i32_0 : i32, i32
  }
  func.func @transform_2(%arg0: i32) -> (i32, i32) {
    %c0_i32 = arith.constant 0 : i32
    %c0_i32_0 = arith.constant 0 : i32
    %c0_i32_1 = arith.constant 0 : i32
    return %c0_i32, %c0_i32_0 : i32, i32
  }
  func.func @transform_3(%arg0: i32) -> (i32, i32) {
    %c0_i32 = arith.constant 0 : i32
    %c0_i32_0 = arith.constant 0 : i32
    %c0_i32_1 = arith.constant 0 : i32
    return %c0_i32, %c0_i32_0 : i32, i32
  }
  func.func @transform_4(%arg0: i32) -> (i32, i32) {
    %c0_i32 = arith.constant 0 : i32
    %c0_i32_0 = arith.constant 0 : i32
    return %arg0, %c0_i32 : i32, i32
  }
}

</mosaic_0001>

<bundles_post_ra>
// kernel: encoder_decoder_forward.5
= control target key start
LH: loop header
LB: loop body
LE: loop exit
PB: predicated region body
PF: predicated region fallthrough
CT: control target
= control target key end

     0   :  { %s1486_s18 = smov 0   ;;  %s1488_s19 = smov 0   ;;  %s2021_s0 = inlined_call_operand.vmem [shape: bf16[2,512,48], index: 0, kind: input, shape index: {}]   ;;  %s2022_s1 = inlined_call_operand.vmem [shape: bf16[2,48,64], index: 1, kind: input, shape index: {}]   ;;  %s2023_s2 = inlined_call_operand.vmem [shape: f32[2,1,64], index: 2, kind: input, shape index: {}]   ;;  %s2024_s3 = inlined_call_operand.vmem [shape: bf16[64,64], index: 3, kind: input, shape index: {}]   ;;  %s2025_s4 = inlined_call_operand.vmem [shape: bf16[2,512,64], index: 4, kind: output, shape index: {0}]   ;;  %s2026_s5 = inlined_call_operand.vmem [shape: bf16[512,64], index: 5, kind: output, shape index: {1}]  }
   0x1   :  { %s1490_s20 = smov 0   ;;  %s1492_s21 = smov 0  }
   0x2   :  { %s1494_s22 = smov 0  }
   0x3 LB: > { %s25_s23 = sadd.s32 1, %s1446_s20  ;;  %s28_s24 = sadd.s32 1, %s1450_s21  ;;  %s1454_s22 = sphi %s1494_s22, %s16_s22   ;;  %s1450_s21 = sphi %s1492_s21, %s2030_s21   ;;  %s1446_s20 = sphi %s1490_s20, %s2029_s20   ;;  %s1442_s19 = sphi %s1488_s19, %s2028_s19   ;;  %s1438_s18 = sphi %s1486_s18, %s2027_s18  }
   0x4   : > { %p26_p0 = scmp.ge.s32.totalorder %s25_s23, 2  ;;  %p1192_p1 = scmp.ge.s32.totalorder %s1454_s22, 1 }
   0x5   : > { %p229_p2 = scmp.lt.s32.totalorder %s1454_s22, 5 }
   0x6   : > { %s2032_s23 = smov (%p26_p0, %s25_s23), 0  ;;  %s2034_s24 = smov (!%p26_p0, %s28_s24), %s1450_s21 }
   0x7   : > { %p230_p3 = pnand %p1192_p1, %p229_p2  ;;  %p30_p4 = scmp.ge.s32.totalorder %s2034_s24, 2 }
   0x8   : > { %s1193_s25 = sshll.u32 (!%p230_p3), %s1442_s19, 5  ;;  %p279_p5 = scmp.lt.s32.totalorder (!%p230_p3), %s1438_s18, 1 }
   0x9   : > { %s2036_s24 = smov (%p30_p4, %s2034_s24), 0  ;;  %233 = sbr.rel (%p230_p3) target bundleno = 477 (0x1dd), region = 36 }
   0xa   : > { %p281_p6 = scmp.lt.s32.totalorder (!%p230_p3), %s1193_s25, 63  ;;  %p1294_p7 = scmp.ne.s32.totalorder (!%p230_p3), %s1438_s18, 0 }
   0xe   : > { %s1520_s26 = scalar_select %p279_p5, %s1438_s18, 1  ;;  %vm453_vm0 = vcmask 392192   ;;  %vm655_vm1 = vcmask 519168  }
   0xf   : > { %s2038_s25 = smov (!%p281_p6, %s1193_s25), 63 }
  0x10   : > { %s1194_s27 = sshll.u32 %s1520_s26, 6  ;;  %s1374_s28 = smul.u32 24, %s1520_s26 }
  0x11   : > { %s295_s6 = scalar_lea.vmem %s2023_s2, %s1520_s26  ;;  %s1531_s10 = sadd.s32 %s1194_s27, %s2038_s25 }
  0x12   : > { %s292_s9 = scalar_lea.vmem %s2022_s1, %s1374_s28  ;;  %s1201_s11 = sshll.u32 %s2038_s25, 2  ;;  %v1583_v19 = vld [vmem:[%s295_s6] ss:$0 sm:$0xff] }
  0x13   : > { %v1348_v0 = vld [vmem:[%s292_s9 + $0x10] sm:$0xff]  ;;  %s1536_s14 = scalar_lea.vmem %s2026_s5, %s1201_s11  ;;  %v1347_v1 = vld [vmem:[%s292_s9 + $0x8] sm:$0xff]  ;;  %s1195_s15 = sshll.u32 %s1531_s10, 2  ;;  %v1346_v2 = vld [vmem:[%s292_s9] sm:$0xff] }
  0x14   : > { %507 = vmatpush.bf16.msra.mxu0 %v1348_v0  ;;  %1353 = vmatpush.bf16.msra.mxu1 %v1348_v0  ;;  %s1544_s19 = scalar_lea.vmem %s2021_s0, %s1195_s15  ;;  %s1596_s30 = scalar_lea.vmem %s2025_s4, %s1195_s15 }
  0x15   : > { %1354 = vmatpush.bf16.msra.mxu2 %v1348_v0  ;;  %1355 = vmatpush.bf16.msra.mxu3 %v1348_v0  ;;  %v1330_v3 = vld [vmem:[%s1544_s19] sm:$0xff]  ;;  %v1331_v7 = vld [vmem:[%s1544_s19 + $0x8] sm:$0xff]  ;;  %v1332_v11 = vld [vmem:[%s1544_s19 + $0x10] sm:$0xff] }
  0x16   : > { %v1334_v4 = vld [vmem:[%s1544_s19 + $0x20] sm:$0xff]  ;;  %v1335_v8 = vld [vmem:[%s1544_s19 + $0x28] sm:$0xff]  ;;  %v1336_v12 = vld [vmem:[%s1544_s19 + $0x30] sm:$0xff] }
  0x17   : > { %v1338_v5 = vld [vmem:[%s1544_s19 + $0x40] sm:$0xff]  ;;  %v1339_v9 = vld [vmem:[%s1544_s19 + $0x48] sm:$0xff]  ;;  %v1340_v13 = vld [vmem:[%s1544_s19 + $0x50] sm:$0xff] }
  0x18   : > { %508 = vmatpush.bf16.msra.mxu0 %v1347_v1  ;;  %1356 = vmatpush.bf16.msra.mxu1 %v1347_v1  ;;  %v1342_v6 = vld [vmem:[%s1544_s19 + $0x60] sm:$0xff]  ;;  %v1343_v10 = vld [vmem:[%s1544_s19 + $0x68] sm:$0xff]  ;;  %v1344_v14 = vld [vmem:[%s1544_s19 + $0x70] sm:$0xff] }
  0x19   : > { %1357 = vmatpush.bf16.msra.mxu2 %v1347_v1  ;;  %1358 = vmatpush.bf16.msra.mxu3 %v1347_v1  ;;  %v1333_v15 = vld [vmem:[%s1544_s19 + $0x18] sm:$0xff] }
  0x1a   : > { %v1337_v16 = vld [vmem:[%s1544_s19 + $0x38] sm:$0xff] }
  0x1b   : > { %v1341_v17 = vld [vmem:[%s1544_s19 + $0x58] sm:$0xff] }
  0x1c   : > { %509 = vmatpush.bf16.msra.mxu0 %v1346_v2  ;;  %1359 = vmatpush.bf16.msra.mxu1 %v1346_v2  ;;  %v1345_v18 = vld [vmem:[%s1544_s19 + $0x78] sm:$0xff] }
  0x1d   : > { %1360 = vmatpush.bf16.msra.mxu2 %v1346_v2  ;;  %1361 = vmatpush.bf16.msra.mxu3 %v1346_v2 }
  0x1f   : > { %1278 = vmatmul.msk.bf16.vlgmr.msra.gmra.mxu0 %vm453_vm0, %v1330_v3  ;;  %1282 = vmatmul.msk.bf16.vlgmr.msra.gmra.mxu1 %vm453_vm0, %v1334_v4 }
  0x20   : > { %1286 = vmatmul.msk.bf16.vlgmr.msra.gmra.mxu2 %vm453_vm0, %v1338_v5  ;;  %1290 = vmatmul.msk.bf16.vlgmr.msra.gmra.mxu3 %vm453_vm0, %v1342_v6 }
  0x2f   : > { %1279 = vmatmul.msk.bf16.gmra.mxu0 %vm453_vm0, %v1331_v7  ;;  %1283 = vmatmul.msk.bf16.gmra.mxu1 %vm453_vm0, %v1335_v8 }
  0x30   : > { %1287 = vmatmul.msk.bf16.gmra.mxu2 %vm453_vm0, %v1339_v9  ;;  %1291 = vmatmul.msk.bf16.gmra.mxu3 %vm453_vm0, %v1343_v10 }
  0x3f   : > { %1280 = vmatmul.msk.bf16.gmra.mxu0 %vm453_vm0, %v1332_v11  ;;  %1284 = vmatmul.msk.bf16.gmra.mxu1 %vm453_vm0, %v1336_v12 }
  0x40   : > { %1288 = vmatmul.msk.bf16.gmra.mxu2 %vm453_vm0, %v1340_v13  ;;  %1292 = vmatmul.msk.bf16.gmra.mxu3 %vm453_vm0, %v1344_v14 }
  0x4f   : > { %1281 = vmatmul.msk.bf16.gmra.mxu0 %vm453_vm0, %v1333_v15  ;;  %1285 = vmatmul.msk.bf16.gmra.mxu1 %vm453_vm0, %v1337_v16 }
  0x50   : > { %1289 = vmatmul.msk.bf16.gmra.mxu2 %vm453_vm0, %v1341_v17  ;;  %1293 = vmatmul.msk.bf16.gmra.mxu3 %vm453_vm0, %v1345_v18 }
  0x9c   : > { %v511_v20 = vpop.f32.mrf.mxu0  ;;  %v531_v21 = vpop.f32.mrf.mxu1 }
  0x9d   : > { %v512_v22 = vadd.f32 %v1583_v19, %v511_v20  ;;  %v532_v23 = vadd.f32 %v1583_v19, %v531_v21 }
  0x9f   : > { %v1587_v24 = vmax.f32 %v512_v22, 0.0  ;;  %v1589_v25 = vmax.f32 %v532_v23, 0.0 }
  0xa1   : > { %v623_v26 = vpack.c.bf16 %v1587_v24, %v1587_v24  ;;  %v631_v27 = vpack.c.bf16 %v1589_v25, %v1589_v25 }
  0xa3   : > { %656 = vst.msk [vmem:[%s1596_s30] sm:$0xf] %vm655_vm1, %v623_v26  ;;  %v551_v28 = vpop.f32.mrf.mxu2  ;;  %v571_v29 = vpop.f32.mrf.mxu3 }
  0xa4   : > { %664 = vst.msk [vmem:[%s1596_s30 + $0x20] sm:$0xf] %vm655_vm1, %v631_v27  ;;  %v552_v30 = vadd.f32 %v1583_v19, %v551_v28  ;;  %v572_v31 = vadd.f32 %v1583_v19, %v571_v29  ;;  %v513_v32 = vpop.f32.mrf.mxu0  ;;  %v533_v33 = vpop.f32.mrf.mxu1 }
  0xa5   : > { %v514_v34 = vadd.f32 %v1583_v19, %v513_v32  ;;  %v534_v35 = vadd.f32 %v1583_v19, %v533_v33 }
  0xa6   : > { %v1610_v36 = vmax.f32 %v552_v30, 0.0  ;;  %v1612_v37 = vmax.f32 %v572_v31, 0.0 }
  0xa7   : > { %v1614_v38 = vmax.f32 %v514_v34, 0.0  ;;  %v1616_v39 = vmax.f32 %v534_v35, 0.0 }
  0xa8   : > { %v639_v40 = vpack.c.bf16 %v1610_v36, %v1610_v36  ;;  %v647_v41 = vpack.c.bf16 %v1612_v37, %v1612_v37 }
  0xa9   : > { %v624_v42 = vpack.c.bf16 %v1614_v38, %v1614_v38  ;;  %v632_v43 = vpack.c.bf16 %v1616_v39, %v1616_v39 }
  0xaa   : > { %672 = vst.msk [vmem:[%s1596_s30 + $0x40] sm:$0xf] %vm655_vm1, %v639_v40 }
  0xab   : > { %680 = vst.msk [vmem:[%s1596_s30 + $0x60] sm:$0xf] %vm655_vm1, %v647_v41  ;;  %v553_v44 = vpop.f32.mrf.mxu2  ;;  %v573_v45 = vpop.f32.mrf.mxu3 }
  0xac   : > { %657 = vst.msk [vmem:[%s1596_s30 + $0x4] sm:$0xf] %vm655_vm1, %v624_v42  ;;  %v554_v46 = vadd.f32 %v1583_v19, %v553_v44  ;;  %v574_v47 = vadd.f32 %v1583_v19, %v573_v45  ;;  %v516_v48 = vpop.f32.mrf.mxu0  ;;  %v536_v49 = vpop.f32.mrf.mxu1 }
  0xad   : > { %665 = vst.msk [vmem:[%s1596_s30 + $0x24] sm:$0xf] %vm655_vm1, %v632_v43  ;;  %v517_v50 = vadd.f32 %v1583_v19, %v516_v48  ;;  %v537_v51 = vadd.f32 %v1583_v19, %v536_v49 }
  0xae   : > { %v1638_v52 = vmax.f32 %v554_v46, 0.0  ;;  %v1640_v53 = vmax.f32 %v574_v47, 0.0 }
  0xaf   : > { %v1642_v54 = vmax.f32 %v517_v50, 0.0  ;;  %v1644_v55 = vmax.f32 %v537_v51, 0.0 }
  0xb0   : > { %v640_v56 = vpack.c.bf16 %v1638_v52, %v1638_v52  ;;  %v648_v57 = vpack.c.bf16 %v1640_v53, %v1640_v53 }
  0xb1   : > { %v625_v58 = vpack.c.bf16 %v1642_v54, %v1642_v54  ;;  %v633_v59 = vpack.c.bf16 %v1644_v55, %v1644_v55 }
  0xb2   : > { %673 = vst.msk [vmem:[%s1596_s30 + $0x44] sm:$0xf] %vm655_vm1, %v640_v56 }
  0xb3   : > { %681 = vst.msk [vmem:[%s1596_s30 + $0x64] sm:$0xf] %vm655_vm1, %v648_v57  ;;  %v556_v60 = vpop.f32.mrf.mxu2  ;;  %v576_v61 = vpop.f32.mrf.mxu3 }
  0xb4   : > { %658 = vst.msk [vmem:[%s1596_s30 + $0x8] sm:$0xf] %vm655_vm1, %v625_v58  ;;  %v557_v62 = vadd.f32 %v1583_v19, %v556_v60  ;;  %v577_v63 = vadd.f32 %v1583_v19, %v576_v61  ;;  %v518_v0 = vpop.f32.mrf.mxu0  ;;  %v538_v1 = vpop.f32.mrf.mxu1 }
  0xb5   : > { %666 = vst.msk [vmem:[%s1596_s30 + $0x28] sm:$0xf] %vm655_vm1, %v633_v59  ;;  %v519_v2 = vadd.f32 %v1583_v19, %v518_v0  ;;  %v539_v3 = vadd.f32 %v1583_v19, %v538_v1 }
  0xb6   : > { %v1666_v4 = vmax.f32 %v557_v62, 0.0  ;;  %v1668_v5 = vmax.f32 %v577_v63, 0.0 }
  0xb7   : > { %v1670_v6 = vmax.f32 %v519_v2, 0.0  ;;  %v1672_v7 = vmax.f32 %v539_v3, 0.0 }
  0xb8   : > { %v641_v8 = vpack.c.bf16 %v1666_v4, %v1666_v4  ;;  %v649_v9 = vpack.c.bf16 %v1668_v5, %v1668_v5 }
  0xb9   : > { %v626_v10 = vpack.c.bf16 %v1670_v6, %v1670_v6  ;;  %v634_v11 = vpack.c.bf16 %v1672_v7, %v1672_v7 }
  0xba   : > { %674 = vst.msk [vmem:[%s1596_s30 + $0x48] sm:$0xf] %vm655_vm1, %v641_v8 }
  0xbb   : > { %682 = vst.msk [vmem:[%s1596_s30 + $0x68] sm:$0xf] %vm655_vm1, %v649_v9  ;;  %v558_v12 = vpop.f32.mrf.mxu2  ;;  %v578_v13 = vpop.f32.mrf.mxu3 }
  0xbc   : > { %659 = vst.msk [vmem:[%s1596_s30 + $0xc] sm:$0xf] %vm655_vm1, %v626_v10  ;;  %v559_v14 = vadd.f32 %v1583_v19, %v558_v12  ;;  %v579_v15 = vadd.f32 %v1583_v19, %v578_v13  ;;  %v521_v16 = vpop.f32.mrf.mxu0  ;;  %v541_v17 = vpop.f32.mrf.mxu1 }
  0xbd   : > { %667 = vst.msk [vmem:[%s1596_s30 + $0x2c] sm:$0xf] %vm655_vm1, %v634_v11  ;;  %v522_v18 = vadd.f32 %v1583_v19, %v521_v16  ;;  %v542_v20 = vadd.f32 %v1583_v19, %v541_v17 }
  0xbe   : > { %v1694_v21 = vmax.f32 %v559_v14, 0.0  ;;  %v1696_v22 = vmax.f32 %v579_v15, 0.0 }
  0xbf   : > { %v1698_v23 = vmax.f32 %v522_v18, 0.0  ;;  %v1700_v26 = vmax.f32 %v542_v20, 0.0 }
  0xc0   : > { %v642_v27 = vpack.c.bf16 %v1694_v21, %v1694_v21  ;;  %v650_v28 = vpack.c.bf16 %v1696_v22, %v1696_v22 }
  0xc1   : > { %v627_v29 = vpack.c.bf16 %v1698_v23, %v1698_v23  ;;  %v635_v30 = vpack.c.bf16 %v1700_v26, %v1700_v26 }
  0xc2   : > { %675 = vst.msk [vmem:[%s1596_s30 + $0x4c] sm:$0xf] %vm655_vm1, %v642_v27 }
  0xc3   : > { %683 = vst.msk [vmem:[%s1596_s30 + $0x6c] sm:$0xf] %vm655_vm1, %v650_v28  ;;  %v561_v31 = vpop.f32.mrf.mxu2  ;;  %v581_v32 = vpop.f32.mrf.mxu3 }
  0xc4   : > { %660 = vst.msk [vmem:[%s1596_s30 + $0x10] sm:$0xf] %vm655_vm1, %v627_v29  ;;  %v562_v33 = vadd.f32 %v1583_v19, %v561_v31  ;;  %v582_v34 = vadd.f32 %v1583_v19, %v581_v32  ;;  %v523_v35 = vpop.f32.mrf.mxu0  ;;  %v543_v40 = vpop.f32.mrf.mxu1 }
  0xc5   : > { %668 = vst.msk [vmem:[%s1596_s30 + $0x30] sm:$0xf] %vm655_vm1, %v635_v30  ;;  %v524_v41 = vadd.f32 %v1583_v19, %v523_v35  ;;  %v544_v42 = vadd.f32 %v1583_v19, %v543_v40 }
  0xc6   : > { %v1722_v43 = vmax.f32 %v562_v33, 0.0  ;;  %v1724_v44 = vmax.f32 %v582_v34, 0.0 }
  0xc7   : > { %v1726_v45 = vmax.f32 %v524_v41, 0.0  ;;  %v1728_v46 = vmax.f32 %v544_v42, 0.0 }
  0xc8   : > { %v643_v47 = vpack.c.bf16 %v1722_v43, %v1722_v43  ;;  %v651_v48 = vpack.c.bf16 %v1724_v44, %v1724_v44 }
  0xc9   : > { %v628_v49 = vpack.c.bf16 %v1726_v45, %v1726_v45  ;;  %v636_v50 = vpack.c.bf16 %v1728_v46, %v1728_v46 }
  0xca   : > { %676 = vst.msk [vmem:[%s1596_s30 + $0x50] sm:$0xf] %vm655_vm1, %v643_v47 }
  0xcb   : > { %684 = vst.msk [vmem:[%s1596_s30 + $0x70] sm:$0xf] %vm655_vm1, %v651_v48  ;;  %v563_v51 = vpop.f32.mrf.mxu2  ;;  %v583_v56 = vpop.f32.mrf.mxu3 }
  0xcc   : > { %661 = vst.msk [vmem:[%s1596_s30 + $0x14] sm:$0xf] %vm655_vm1, %v628_v49  ;;  %v564_v57 = vadd.f32 %v1583_v19, %v563_v51  ;;  %v584_v58 = vadd.f32 %v1583_v19, %v583_v56  ;;  %v526_v59 = vpop.f32.mrf.mxu0  ;;  %v546_v60 = vpop.f32.mrf.mxu1 }
  0xcd   : > { %669 = vst.msk [vmem:[%s1596_s30 + $0x34] sm:$0xf] %vm655_vm1, %v636_v50  ;;  %v527_v61 = vadd.f32 %v1583_v19, %v526_v59  ;;  %v547_v62 = vadd.f32 %v1583_v19, %v546_v60 }
  0xce   : > { %v1750_v63 = vmax.f32 %v564_v57, 0.0  ;;  %v1752_v0 = vmax.f32 %v584_v58, 0.0 }
  0xcf   : > { %v1754_v1 = vmax.f32 %v527_v61, 0.0  ;;  %v1756_v2 = vmax.f32 %v547_v62, 0.0 }
  0xd0   : > { %v644_v3 = vpack.c.bf16 %v1750_v63, %v1750_v63  ;;  %v652_v8 = vpack.c.bf16 %v1752_v0, %v1752_v0 }
  0xd1   : > { %v629_v9 = vpack.c.bf16 %v1754_v1, %v1754_v1  ;;  %v637_v10 = vpack.c.bf16 %v1756_v2, %v1756_v2 }
  0xd2   : > { %677 = vst.msk [vmem:[%s1596_s30 + $0x54] sm:$0xf] %vm655_vm1, %v644_v3 }
  0xd3   : > { %685 = vst.msk [vmem:[%s1596_s30 + $0x74] sm:$0xf] %vm655_vm1, %v652_v8  ;;  %v566_v11 = vpop.f32.mrf.mxu2  ;;  %v586_v12 = vpop.f32.mrf.mxu3 }
  0xd4   : > { %662 = vst.msk [vmem:[%s1596_s30 + $0x18] sm:$0xf] %vm655_vm1, %v629_v9  ;;  %v567_v13 = vadd.f32 %v1583_v19, %v566_v11  ;;  %v587_v14 = vadd.f32 %v1583_v19, %v586_v12  ;;  %v528_v15 = vpop.f32.mrf.mxu0  ;;  %v548_v16 = vpop.f32.mrf.mxu1 }
  0xd5   : > { %670 = vst.msk [vmem:[%s1596_s30 + $0x38] sm:$0xf] %vm655_vm1, %v637_v10  ;;  %v529_v17 = vadd.f32 %v1583_v19, %v528_v15  ;;  %v549_v18 = vadd.f32 %v1583_v19, %v548_v16 }
  0xd6   : > { %v1778_v20 = vmax.f32 %v567_v13, 0.0  ;;  %v1780_v27 = vmax.f32 %v587_v14, 0.0 }
  0xd7   : > { %v1782_v28 = vmax.f32 %v529_v17, 0.0  ;;  %v1784_v29 = vmax.f32 %v549_v18, 0.0 }
  0xd8   : > { %v645_v30 = vpack.c.bf16 %v1778_v20, %v1778_v20  ;;  %v653_v31 = vpack.c.bf16 %v1780_v27, %v1780_v27 }
  0xd9   : > { %v630_v32 = vpack.c.bf16 %v1782_v28, %v1782_v28  ;;  %v638_v33 = vpack.c.bf16 %v1784_v29, %v1784_v29 }
  0xda   : > { %678 = vst.msk [vmem:[%s1596_s30 + $0x58] sm:$0xf] %vm655_vm1, %v645_v30 }
  0xdb   : > { %686 = vst.msk [vmem:[%s1596_s30 + $0x78] sm:$0xf] %vm655_vm1, %v653_v31  ;;  %v568_v34 = vpop.f32.mrf.mxu2  ;;  %v588_v35 = vpop.f32.mrf.mxu3 }
  0xdc   : > { %663 = vst.msk [vmem:[%s1596_s30 + $0x1c] sm:$0xf] %vm655_vm1, %v630_v32  ;;  %v569_v40 = vadd.f32 %v1583_v19, %v568_v34  ;;  %v589_v41 = vadd.f32 %v1583_v19, %v588_v35 }
  0xdd   : > { %671 = vst.msk [vmem:[%s1596_s30 + $0x3c] sm:$0xf] %vm655_vm1, %v638_v33 }
  0xde   : > { %v1804_v42 = vmax.f32 %v569_v40, 0.0  ;;  %v1806_v47 = vmax.f32 %v589_v41, 0.0 }
  0xdf   : > { %691 = sbr.rel (%p1294_p7) target bundleno = 261 (0x105), region = 40 }
  0xe0   : > { %v646_v48 = vpack.c.bf16 %v1804_v42, %v1804_v42  ;;  %v654_v49 = vpack.c.bf16 %v1806_v47, %v1806_v47 }
  0xe2   : > { %679 = vst.msk [vmem:[%s1596_s30 + $0x5c] sm:$0xf] %vm655_vm1, %v646_v48 }
  0xe3   : > { %687 = vst.msk [vmem:[%s1596_s30 + $0x7c] sm:$0xf] %vm655_vm1, %v654_v49 }
  0xe4   : > { %vm692_vm2 = vcmask 523264  }
  0xe5   : > { %693 = vst.msk [vmem:[#allocation2] sm:$0xff] %vm692_vm2, %v1587_v24 }
  0xe6   : > { %694 = vst.msk [vmem:[#allocation2 + $0x8] sm:$0xff] %vm692_vm2, %v1614_v38 }
  0xe7   : > { %695 = vst.msk [vmem:[#allocation2 + $0x10] sm:$0xff] %vm692_vm2, %v1642_v54 }
  0xe8   : > { %696 = vst.msk [vmem:[#allocation2 + $0x18] sm:$0xff] %vm692_vm2, %v1670_v6 }
  0xe9   : > { %697 = vst.msk [vmem:[#allocation2 + $0x20] sm:$0xff] %vm692_vm2, %v1698_v23 }
  0xea   : > { %698 = vst.msk [vmem:[#allocation2 + $0x28] sm:$0xff] %vm692_vm2, %v1726_v45 }
  0xeb   : > { %699 = vst.msk [vmem:[#allocation2 + $0x30] sm:$0xff] %vm692_vm2, %v1754_v1 }
  0xec   : > { %700 = vst.msk [vmem:[#allocation2 + $0x38] sm:$0xff] %vm692_vm2, %v1782_v28 }
  0xed   : > { %701 = vst.msk [vmem:[#allocation2 + $0x40] sm:$0xff] %vm692_vm2, %v1589_v25 }
  0xee   : > { %702 = vst.msk [vmem:[#allocation2 + $0x48] sm:$0xff] %vm692_vm2, %v1616_v39 }
  0xef   : > { %703 = vst.msk [vmem:[#allocation2 + $0x50] sm:$0xff] %vm692_vm2, %v1644_v55 }
  0xf0   : > { %704 = vst.msk [vmem:[#allocation2 + $0x58] sm:$0xff] %vm692_vm2, %v1672_v7 }
  0xf1   : > { %705 = vst.msk [vmem:[#allocation2 + $0x60] sm:$0xff] %vm692_vm2, %v1700_v26 }
  0xf2   : > { %706 = vst.msk [vmem:[#allocation2 + $0x68] sm:$0xff] %vm692_vm2, %v1728_v46 }
  0xf3   : > { %707 = vst.msk [vmem:[#allocation2 + $0x70] sm:$0xff] %vm692_vm2, %v1756_v2 }
  0xf4   : > { %708 = vst.msk [vmem:[#allocation2 + $0x78] sm:$0xff] %vm692_vm2, %v1784_v29 }
  0xf5   : > { %709 = vst.msk [vmem:[#allocation2 + $0x80] sm:$0xff] %vm692_vm2, %v1610_v36 }
  0xf6   : > { %710 = vst.msk [vmem:[#allocation2 + $0x88] sm:$0xff] %vm692_vm2, %v1638_v52 }
  0xf7   : > { %711 = vst.msk [vmem:[#allocation2 + $0x90] sm:$0xff] %vm692_vm2, %v1666_v4 }
  0xf8   : > { %712 = vst.msk [vmem:[#allocation2 + $0x98] sm:$0xff] %vm692_vm2, %v1694_v21 }
  0xf9   : > { %713 = vst.msk [vmem:[#allocation2 + $0xa0] sm:$0xff] %vm692_vm2, %v1722_v43 }
  0xfa   : > { %714 = vst.msk [vmem:[#allocation2 + $0xa8] sm:$0xff] %vm692_vm2, %v1750_v63 }
  0xfb   : > { %715 = vst.msk [vmem:[#allocation2 + $0xb0] sm:$0xff] %vm692_vm2, %v1778_v20 }
  0xfc   : > { %716 = vst.msk [vmem:[#allocation2 + $0xb8] sm:$0xff] %vm692_vm2, %v1804_v42 }
  0xfd   : > { %717 = vst.msk [vmem:[#allocation2 + $0xc0] sm:$0xff] %vm692_vm2, %v1612_v37 }
  0xfe   : > { %718 = vst.msk [vmem:[#allocation2 + $0xc8] sm:$0xff] %vm692_vm2, %v1640_v53 }
  0xff   : > { %719 = vst.msk [vmem:[#allocation2 + $0xd0] sm:$0xff] %vm692_vm2, %v1668_v5 }
 0x100   : > { %720 = vst.msk [vmem:[#allocation2 + $0xd8] sm:$0xff] %vm692_vm2, %v1696_v22 }
 0x101   : > { %721 = vst.msk [vmem:[#allocation2 + $0xe0] sm:$0xff] %vm692_vm2, %v1724_v44 }
 0x102   : > { %722 = vst.msk [vmem:[#allocation2 + $0xe8] sm:$0xff] %vm692_vm2, %v1752_v0 }
 0x103   : > { %723 = vst.msk [vmem:[#allocation2 + $0xf0] sm:$0xff] %vm692_vm2, %v1780_v27 }
 0x104   : > { %724 = vst.msk [vmem:[#allocation2 + $0xf8] sm:$0xff] %vm692_vm2, %v1806_v47 }
 0x105 PF: > { %p1295_p8 = scmp.ne.s32.totalorder %s1438_s18, 1 }
 0x107   : > { %728 = sbr.rel (%p1295_p8) target bundleno = 477 (0x1dd), region = 44 }
 0x10c   : > { %v1352_v19 = vld [vmem:[%s2024_s3 + $0x18] sm:$0xff]  ;;  %v1351_v50 = vld [vmem:[%s2024_s3 + $0x10] sm:$0xff]  ;;  %v1350_v51 = vld [vmem:[%s2024_s3 + $0x8] sm:$0xff]  ;;  %vm841_vm3 = vcmask 523264  }
 0x10d   : > { %894 = vmatpush.bf16.msra.mxu0 %v1352_v19  ;;  %1362 = vmatpush.bf16.msra.mxu1 %v1352_v19  ;;  %v729_v56 = vld [vmem:[#allocation2] sm:$0xff]  ;;  %v730_v57 = vld [vmem:[#allocation2 + $0x8] sm:$0xff]  ;;  %v740_v16 = vld [vmem:[#allocation2 + $0x58] sm:$0xff] }
 0x10e   : > { %1363 = vmatpush.bf16.msra.mxu2 %v1352_v19  ;;  %1364 = vmatpush.bf16.msra.mxu3 %v1352_v19  ;;  %v737_v58 = vld [vmem:[#allocation2 + $0x40] sm:$0xff]  ;;  %v738_v59 = vld [vmem:[#allocation2 + $0x48] sm:$0xff]  ;;  %v761_v8 = vadd.f32 %v729_v56, %v1587_v24  ;;  %v762_v9 = vadd.f32 %v730_v57, %v1614_v38  ;;  %v747_v17 = vld [vmem:[#allocation2 + $0x90] sm:$0xff]  ;;  %v772_v35 = vadd.f32 %v740_v16, %v1672_v7 }
 0x10f   : > { %v745_v60 = vld [vmem:[#allocation2 + $0x80] sm:$0xff]  ;;  %v746_v61 = vld [vmem:[#allocation2 + $0x88] sm:$0xff]  ;;  %v769_v10 = vadd.f32 %v737_v58, %v1589_v25  ;;  %v770_v11 = vadd.f32 %v738_v59, %v1616_v39  ;;  %v748_v18 = vld [vmem:[#allocation2 + $0x98] sm:$0xff]  ;;  %v779_v40 = vadd.f32 %v747_v17, %v1666_v4 }
 0x110   : > { %v753_v62 = vld [vmem:[#allocation2 + $0xc0] sm:$0xff]  ;;  %v754_v3 = vld [vmem:[#allocation2 + $0xc8] sm:$0xff]  ;;  %v777_v12 = vadd.f32 %v745_v60, %v1610_v36  ;;  %v778_v14 = vadd.f32 %v746_v61, %v1638_v52  ;;  %v793_v38 = vpack.c.bf16 %v762_v9, %v761_v8  ;;  %v732_v52 = vld [vmem:[#allocation2 + $0x18] sm:$0xff]  ;;  %v780_v41 = vadd.f32 %v748_v18, %v1694_v21 }
 0x111   : > { %895 = vmatpush.bf16.msra.mxu0 %v1351_v50  ;;  %1365 = vmatpush.bf16.msra.mxu1 %v1351_v50  ;;  %v1349_v13 = vld [vmem:[%s2024_s3] sm:$0xff]  ;;  %v785_v15 = vadd.f32 %v753_v62, %v1612_v37  ;;  %v786_v24 = vadd.f32 %v754_v3, %v1640_v53  ;;  %v797_v25 = vpack.c.bf16 %v770_v11, %v769_v10  ;;  %v731_v37 = vld [vmem:[#allocation2 + $0x10] sm:$0xff]  ;;  %v756_v31 = vld [vmem:[#allocation2 + $0xd8] sm:$0xff] }
 0x112   : > { %1366 = vmatpush.bf16.msra.mxu2 %v1351_v50  ;;  %1367 = vmatpush.bf16.msra.mxu3 %v1351_v50  ;;  %v801_v36 = vpack.c.bf16 %v778_v14, %v777_v12  ;;  %v739_v53 = vld [vmem:[#allocation2 + $0x50] sm:$0xff]  ;;  %v763_v32 = vadd.f32 %v731_v37, %v1642_v54  ;;  %v764_v33 = vadd.f32 %v732_v52, %v1670_v6  ;;  %v733_v54 = vld [vmem:[#allocation2 + $0x20] sm:$0xff]  ;;  %v742_v6 = vld [vmem:[#allocation2 + $0x68] sm:$0xff] }
 0x113   : > { %v805_v39 = vpack.c.bf16 %v786_v24, %v785_v15  ;;  %v755_v30 = vld [vmem:[#allocation2 + $0xd0] sm:$0xff]  ;;  %v771_v34 = vadd.f32 %v739_v53, %v1644_v55  ;;  %v788_v49 = vadd.f32 %v756_v31, %v1696_v22  ;;  %v734_v55 = vld [vmem:[#allocation2 + $0x28] sm:$0xff]  ;;  %v741_v4 = vld [vmem:[#allocation2 + $0x60] sm:$0xff]  ;;  %v765_v57 = vadd.f32 %v733_v54, %v1698_v23 }
 0x114   : > { %v787_v48 = vadd.f32 %v755_v30, %v1668_v5  ;;  %v794_v19 = vpack.c.bf16 %v764_v33, %v763_v32  ;;  %v749_v7 = vld [vmem:[#allocation2 + $0xa0] sm:$0xff]  ;;  %v750_v5 = vld [vmem:[#allocation2 + $0xa8] sm:$0xff]  ;;  %v766_v58 = vadd.f32 %v734_v55, %v1726_v45  ;;  %v773_v59 = vadd.f32 %v741_v4, %v1700_v26  ;;  %v735_v23 = vld [vmem:[#allocation2 + $0x30] sm:$0xff] }
 0x115   : > { %896 = vmatpush.bf16.msra.mxu0 %v1350_v51  ;;  %1368 = vmatpush.bf16.msra.mxu1 %v1350_v51  ;;  %v798_v50 = vpack.c.bf16 %v772_v35, %v771_v34  ;;  %v757_v21 = vld [vmem:[#allocation2 + $0xe0] sm:$0xff]  ;;  %v758_v22 = vld [vmem:[#allocation2 + $0xe8] sm:$0xff]  ;;  %v774_v60 = vadd.f32 %v742_v6, %v1728_v46  ;;  %v781_v61 = vadd.f32 %v749_v7, %v1722_v43  ;;  %v736_v26 = vld [vmem:[#allocation2 + $0x38] sm:$0xff] }
 0x116   : > { %1369 = vmatpush.bf16.msra.mxu2 %v1350_v51  ;;  %1370 = vmatpush.bf16.msra.mxu3 %v1350_v51  ;;  %v802_v51 = vpack.c.bf16 %v780_v41, %v779_v40  ;;  %v806_v56 = vpack.c.bf16 %v788_v49, %v787_v48  ;;  %v782_v62 = vadd.f32 %v750_v5, %v1750_v63  ;;  %v743_v43 = vld [vmem:[#allocation2 + $0x70] sm:$0xff]  ;;  %v744_v45 = vld [vmem:[#allocation2 + $0x78] sm:$0xff] }
 0x117   : > { %v789_v3 = vadd.f32 %v757_v21, %v1724_v44  ;;  %v790_v8 = vadd.f32 %v758_v22, %v1752_v0  ;;  %v795_v9 = vpack.c.bf16 %v766_v58, %v765_v57  ;;  %v799_v10 = vpack.c.bf16 %v774_v60, %v773_v59  ;;  %v751_v46 = vld [vmem:[#allocation2 + $0xb0] sm:$0xff]  ;;  %v752_v44 = vld [vmem:[#allocation2 + $0xb8] sm:$0xff] }
 0x118   : > { %v803_v11 = vpack.c.bf16 %v782_v62, %v781_v61  ;;  %v759_v63 = vld [vmem:[#allocation2 + $0xf0] sm:$0xff]  ;;  %v760_v0 = vld [vmem:[#allocation2 + $0xf8] sm:$0xff]  ;;  %v768_v14 = vadd.f32 %v736_v26, %v1782_v28  ;;  %v775_v15 = vadd.f32 %v743_v43, %v1756_v2  ;;  %v776_v24 = vadd.f32 %v744_v45, %v1784_v29 }
 0x119   : > { %897 = vmatpush.bf16.msra.mxu0 %v1349_v13  ;;  %1371 = vmatpush.bf16.msra.mxu1 %v1349_v13  ;;  %v807_v12 = vpack.c.bf16 %v790_v8, %v789_v3 }
 0x11a   : > { %1372 = vmatpush.bf16.msra.mxu2 %v1349_v13  ;;  %1373 = vmatpush.bf16.msra.mxu3 %v1349_v13  ;;  %v767_v13 = vadd.f32 %v735_v23, %v1754_v1  ;;  %v800_v52 = vpack.c.bf16 %v776_v24, %v775_v15 }
 0x11c   : > { %1312 = vmatmul.msk.bf16.vlgmr.msra.gmra.mxu0 %vm841_vm3, %v793_v38  ;;  %1316 = vmatmul.msk.bf16.vlgmr.msra.gmra.mxu1 %vm841_vm3, %v797_v25  ;;  %v783_v38 = vadd.f32 %v751_v46, %v1778_v20  ;;  %v784_v25 = vadd.f32 %v752_v44, %v1804_v42  ;;  %v796_v37 = vpack.c.bf16 %v768_v14, %v767_v13 }
 0x11d   : > { %1320 = vmatmul.msk.bf16.vlgmr.msra.gmra.mxu2 %vm841_vm3, %v801_v36  ;;  %1324 = vmatmul.msk.bf16.vlgmr.msra.gmra.mxu3 %vm841_vm3, %v805_v39  ;;  %v791_v36 = vadd.f32 %v759_v63, %v1780_v27  ;;  %v792_v39 = vadd.f32 %v760_v0, %v1806_v47 }
 0x11e   : > { %v804_v53 = vpack.c.bf16 %v784_v25, %v783_v38 }
 0x11f   : > { %v808_v1 = vpack.c.bf16 %v792_v39, %v791_v36 }
 0x12c   : > { %1313 = vmatmul.msk.bf16.gmra.mxu0 %vm841_vm3, %v794_v19  ;;  %1317 = vmatmul.msk.bf16.gmra.mxu1 %vm841_vm3, %v798_v50 }
 0x12d   : > { %1321 = vmatmul.msk.bf16.gmra.mxu2 %vm841_vm3, %v802_v51  ;;  %1325 = vmatmul.msk.bf16.gmra.mxu3 %vm841_vm3, %v806_v56 }
 0x13c   : > { %1314 = vmatmul.msk.bf16.gmra.mxu0 %vm841_vm3, %v795_v9  ;;  %1318 = vmatmul.msk.bf16.gmra.mxu1 %vm841_vm3, %v799_v10 }
 0x13d   : > { %1322 = vmatmul.msk.bf16.gmra.mxu2 %vm841_vm3, %v803_v11  ;;  %1326 = vmatmul.msk.bf16.gmra.mxu3 %vm841_vm3, %v807_v12 }
 0x14c   : > { %1315 = vmatmul.msk.bf16.gmra.mxu0 %vm841_vm3, %v796_v37  ;;  %1319 = vmatmul.msk.bf16.gmra.mxu1 %vm841_vm3, %v800_v52 }
 0x14d   : > { %1323 = vmatmul.msk.bf16.gmra.mxu2 %vm841_vm3, %v804_v53  ;;  %1327 = vmatmul.msk.bf16.gmra.mxu3 %vm841_vm3, %v808_v1 }
 0x199   : > { %v899_v2 = vpop.f32.mrf.mxu0  ;;  %v919_v20 = vpop.f32.mrf.mxu1 }
 0x19a   : > { %v979_v27 = vpack.c.bf16 %v899_v2, %v899_v2  ;;  %v987_v28 = vpack.c.bf16 %v919_v20, %v919_v20 }
 0x19c   : > { %1011 = vst.msk [vmem:[%s1536_s14] sm:$0xf] %vm655_vm1, %v979_v27 }
 0x19d   : > { %1019 = vst.msk [vmem:[%s1536_s14 + $0x20] sm:$0xf] %vm655_vm1, %v987_v28 }
 0x1a0   : > { %v939_v29 = vpop.f32.mrf.mxu2  ;;  %v959_v42 = vpop.f32.mrf.mxu3 }
 0x1a1   : > { %v995_v47 = vpack.c.bf16 %v939_v29, %v939_v29  ;;  %v1003_v16 = vpack.c.bf16 %v959_v42, %v959_v42  ;;  %v901_v17 = vpop.f32.mrf.mxu0  ;;  %v921_v18 = vpop.f32.mrf.mxu1 }
 0x1a2   : > { %v980_v30 = vpack.c.bf16 %v901_v17, %v901_v17  ;;  %v988_v31 = vpack.c.bf16 %v921_v18, %v921_v18 }
 0x1a3   : > { %1027 = vst.msk [vmem:[%s1536_s14 + $0x40] sm:$0xf] %vm655_vm1, %v995_v47 }
 0x1a4   : > { %1035 = vst.msk [vmem:[%s1536_s14 + $0x60] sm:$0xf] %vm655_vm1, %v1003_v16 }
 0x1a5   : > { %1012 = vst.msk [vmem:[%s1536_s14 + $0x4] sm:$0xf] %vm655_vm1, %v980_v30 }
 0x1a6   : > { %1020 = vst.msk [vmem:[%s1536_s14 + $0x24] sm:$0xf] %vm655_vm1, %v988_v31 }
 0x1a8   : > { %v941_v32 = vpop.f32.mrf.mxu2  ;;  %v961_v33 = vpop.f32.mrf.mxu3 }
 0x1a9   : > { %v996_v34 = vpack.c.bf16 %v941_v32, %v941_v32  ;;  %v1004_v35 = vpack.c.bf16 %v961_v33, %v961_v33  ;;  %v904_v40 = vpop.f32.mrf.mxu0  ;;  %v924_v41 = vpop.f32.mrf.mxu1 }
 0x1aa   : > { %v981_v48 = vpack.c.bf16 %v904_v40, %v904_v40  ;;  %v989_v49 = vpack.c.bf16 %v924_v41, %v924_v41 }
 0x1ab   : > { %1028 = vst.msk [vmem:[%s1536_s14 + $0x44] sm:$0xf] %vm655_vm1, %v996_v34 }
 0x1ac   : > { %1036 = vst.msk [vmem:[%s1536_s14 + $0x64] sm:$0xf] %vm655_vm1, %v1004_v35 }
 0x1ad   : > { %1013 = vst.msk [vmem:[%s1536_s14 + $0x8] sm:$0xf] %vm655_vm1, %v981_v48 }
 0x1ae   : > { %1021 = vst.msk [vmem:[%s1536_s14 + $0x28] sm:$0xf] %vm655_vm1, %v989_v49 }
 0x1b0   : > { %v944_v19 = vpop.f32.mrf.mxu2  ;;  %v964_v50 = vpop.f32.mrf.mxu3 }
 0x1b1   : > { %v997_v51 = vpack.c.bf16 %v944_v19, %v944_v19  ;;  %v1005_v56 = vpack.c.bf16 %v964_v50, %v964_v50  ;;  %v906_v54 = vpop.f32.mrf.mxu0  ;;  %v926_v55 = vpop.f32.mrf.mxu1 }
 0x1b2   : > { %v982_v4 = vpack.c.bf16 %v906_v54, %v906_v54  ;;  %v990_v6 = vpack.c.bf16 %v926_v55, %v926_v55 }
 0x1b3   : > { %1029 = vst.msk [vmem:[%s1536_s14 + $0x48] sm:$0xf] %vm655_vm1, %v997_v51 }
 0x1b4   : > { %1037 = vst.msk [vmem:[%s1536_s14 + $0x68] sm:$0xf] %vm655_vm1, %v1005_v56 }
 0x1b5   : > { %1014 = vst.msk [vmem:[%s1536_s14 + $0xc] sm:$0xf] %vm655_vm1, %v982_v4 }
 0x1b6   : > { %1022 = vst.msk [vmem:[%s1536_s14 + $0x2c] sm:$0xf] %vm655_vm1, %v990_v6 }
 0x1b8   : > { %v946_v7 = vpop.f32.mrf.mxu2  ;;  %v966_v5 = vpop.f32.mrf.mxu3 }
 0x1b9   : > { %v998_v21 = vpack.c.bf16 %v946_v7, %v946_v7  ;;  %v1006_v22 = vpack.c.bf16 %v966_v5, %v966_v5  ;;  %v909_v57 = vpop.f32.mrf.mxu0  ;;  %v929_v58 = vpop.f32.mrf.mxu1 }
 0x1ba   : > { %v983_v59 = vpack.c.bf16 %v909_v57, %v909_v57  ;;  %v991_v60 = vpack.c.bf16 %v929_v58, %v929_v58 }
 0x1bb   : > { %1030 = vst.msk [vmem:[%s1536_s14 + $0x4c] sm:$0xf] %vm655_vm1, %v998_v21 }
 0x1bc   : > { %1038 = vst.msk [vmem:[%s1536_s14 + $0x6c] sm:$0xf] %vm655_vm1, %v1006_v22 }
 0x1bd   : > { %1015 = vst.msk [vmem:[%s1536_s14 + $0x10] sm:$0xf] %vm655_vm1, %v983_v59 }
 0x1be   : > { %1023 = vst.msk [vmem:[%s1536_s14 + $0x30] sm:$0xf] %vm655_vm1, %v991_v60 }
 0x1c0   : > { %v949_v61 = vpop.f32.mrf.mxu2  ;;  %v969_v62 = vpop.f32.mrf.mxu3 }
 0x1c1   : > { %v999_v3 = vpack.c.bf16 %v949_v61, %v949_v61  ;;  %v1007_v8 = vpack.c.bf16 %v969_v62, %v969_v62  ;;  %v911_v9 = vpop.f32.mrf.mxu0  ;;  %v931_v10 = vpop.f32.mrf.mxu1 }
 0x1c2   : > { %v984_v11 = vpack.c.bf16 %v911_v9, %v911_v9  ;;  %v992_v12 = vpack.c.bf16 %v931_v10, %v931_v10 }
 0x1c3   : > { %1031 = vst.msk [vmem:[%s1536_s14 + $0x50] sm:$0xf] %vm655_vm1, %v999_v3 }
 0x1c4   : > { %1039 = vst.msk [vmem:[%s1536_s14 + $0x70] sm:$0xf] %vm655_vm1, %v1007_v8 }
 0x1c5   : > { %1016 = vst.msk [vmem:[%s1536_s14 + $0x14] sm:$0xf] %vm655_vm1, %v984_v11 }
 0x1c6   : > { %1024 = vst.msk [vmem:[%s1536_s14 + $0x34] sm:$0xf] %vm655_vm1, %v992_v12 }
 0x1c8   : > { %v951_v23 = vpop.f32.mrf.mxu2  ;;  %v971_v26 = vpop.f32.mrf.mxu3 }
 0x1c9   : > { %v1000_v43 = vpack.c.bf16 %v951_v23, %v951_v23  ;;  %v1008_v45 = vpack.c.bf16 %v971_v26, %v971_v26  ;;  %v914_v46 = vpop.f32.mrf.mxu0  ;;  %v934_v44 = vpop.f32.mrf.mxu1 }
 0x1ca   : > { %v985_v63 = vpack.c.bf16 %v914_v46, %v914_v46  ;;  %v993_v0 = vpack.c.bf16 %v934_v44, %v934_v44 }
 0x1cb   : > { %1032 = vst.msk [vmem:[%s1536_s14 + $0x54] sm:$0xf] %vm655_vm1, %v1000_v43 }
 0x1cc   : > { %1040 = vst.msk [vmem:[%s1536_s14 + $0x74] sm:$0xf] %vm655_vm1, %v1008_v45 }
 0x1cd   : > { %1017 = vst.msk [vmem:[%s1536_s14 + $0x18] sm:$0xf] %vm655_vm1, %v985_v63 }
 0x1ce   : > { %1025 = vst.msk [vmem:[%s1536_s14 + $0x38] sm:$0xf] %vm655_vm1, %v993_v0 }
 0x1d0   : > { %v954_v13 = vpop.f32.mrf.mxu2  ;;  %v974_v14 = vpop.f32.mrf.mxu3 }
 0x1d1   : > { %v1001_v15 = vpack.c.bf16 %v954_v13, %v954_v13  ;;  %v1009_v24 = vpack.c.bf16 %v974_v14, %v974_v14  ;;  %v916_v38 = vpop.f32.mrf.mxu0  ;;  %v936_v25 = vpop.f32.mrf.mxu1 }
 0x1d2   : > { %v986_v36 = vpack.c.bf16 %v916_v38, %v916_v38  ;;  %v994_v39 = vpack.c.bf16 %v936_v25, %v936_v25 }
 0x1d3   : > { %1033 = vst.msk [vmem:[%s1536_s14 + $0x58] sm:$0xf] %vm655_vm1, %v1001_v15 }
 0x1d4   : > { %1041 = vst.msk [vmem:[%s1536_s14 + $0x78] sm:$0xf] %vm655_vm1, %v1009_v24 }
 0x1d5   : > { %1018 = vst.msk [vmem:[%s1536_s14 + $0x1c] sm:$0xf] %vm655_vm1, %v986_v36 }
 0x1d6   : > { %1026 = vst.msk [vmem:[%s1536_s14 + $0x3c] sm:$0xf] %vm655_vm1, %v994_v39 }
 0x1d8   : > { %v956_v37 = vpop.f32.mrf.mxu2  ;;  %v976_v52 = vpop.f32.mrf.mxu3 }
 0x1d9   : > { %v1002_v53 = vpack.c.bf16 %v956_v37, %v956_v37  ;;  %v1010_v1 = vpack.c.bf16 %v976_v52, %v976_v52 }
 0x1db   : > { %1034 = vst.msk [vmem:[%s1536_s14 + $0x5c] sm:$0xf] %vm655_vm1, %v1002_v53 }
 0x1dc   : > { %1042 = vst.msk [vmem:[%s1536_s14 + $0x7c] sm:$0xf] %vm655_vm1, %v1010_v1 }
 0x1dd PF: > { %s16_s22 = sadd.s32 1, %s1454_s22   ;;  %s2027_s18 = smov %s1446_s20 }
 0x1de   : > { %p13_p9 = scmp.ge.s32.totalorder %s16_s22, 6   ;;  %s2028_s19 = smov %s1450_s21 }
 0x1df   : > { %s2029_s20 = smov %s2032_s23  ;;  %s2030_s21 = smov %s2036_s24 }
 0x1e0   :  { %15 = sbr.rel (!%p13_p9) target bundleno = 3 (0x3), region = 92 }

// kernel: encoder_decoder_forward.6
= control target key start
LH: loop header
LB: loop body
LE: loop exit
PB: predicated region body
PF: predicated region fallthrough
CT: control target
= control target key end

     0   :  { %s1226_s18 = smov 0   ;;  %s1228_s19 = smov 0   ;;  %s1432_s0 = inlined_call_operand.vmem [shape: bf16[2,128,256], index: 0, kind: input, shape index: {}]   ;;  %s1433_s1 = inlined_call_operand.vmem [shape: bf16[2,256,128], index: 1, kind: input, shape index: {}]   ;;  %s1434_s2 = inlined_call_operand.vmem [shape: f32[2,1,128], index: 2, kind: input, shape index: {}]   ;;  %s1435_s3 = inlined_call_operand.vmem [shape: bf16[128,64], index: 3, kind: input, shape index: {}]   ;;  %s1436_s4 = inlined_call_operand.vmem [shape: bf16[2,128,128], index: 4, kind: output, shape index: {0}]   ;;  %s1437_s5 = inlined_call_operand.vmem [shape: bf16[128,64], index: 5, kind: output, shape index: {1}]  }
   0x1   :  { %s1230_s20 = smov 0   ;;  %s1232_s21 = smov 0  }
   0x2   :  { %s1234_s22 = smov 0  }
   0x3 LB: > { %s25_s23 = sadd.s32 1, %s1186_s20  ;;  %s28_s24 = sadd.s32 1, %s1190_s21  ;;  %s1194_s22 = sphi %s1234_s22, %s16_s22   ;;  %s1190_s21 = sphi %s1232_s21, %s1441_s21   ;;  %s1186_s20 = sphi %s1230_s20, %s1440_s20   ;;  %s1182_s19 = sphi %s1228_s19, %s1439_s19   ;;  %s1178_s18 = sphi %s1226_s18, %s1438_s18  }
   0x4   : > { %p26_p0 = scmp.ge.s32.totalorder %s25_s23, 2  ;;  %p875_p1 = scmp.ge.s32.totalorder %s1194_s22, 1 }
   0x5   : > { %p230_p2 = scmp.lt.s32.totalorder %s1194_s22, 5 }
   0x6   : > { %s1443_s23 = smov (%p26_p0, %s25_s23), 0  ;;  %s1445_s24 = smov (!%p26_p0, %s28_s24), %s1190_s21 }
   0x7   : > { %p231_p3 = pnand %p875_p1, %p230_p2  ;;  %p30_p4 = scmp.ge.s32.totalorder %s1445_s24, 2 }
   0x8   : > { %p281_p5 = scmp.lt.s32.totalorder (!%p231_p3), %s1178_s18, 1  ;;  %s876_s25 = sshll.u32 (!%p231_p3), %s1182_s19, 3 }
   0x9   : > { %s1447_s24 = smov (%p30_p4, %s1445_s24), 0  ;;  %234 = sbr.rel (%p231_p3) target bundleno = 407 (0x197), region = 36 }
   0xa   : > { %p283_p6 = scmp.lt.s32.totalorder (!%p231_p3), %s876_s25, 15  ;;  %p983_p7 = scmp.ne.s32.totalorder (!%p231_p3), %s1178_s18, 0 }
   0xe   : > { %s1260_s26 = scalar_select %p281_p5, %s1178_s18, 1 }
   0xf   : > { %s1449_s25 = smov (!%p283_p6, %s876_s25), 15 }
  0x10   : > { %s1019_s27 = sshll.u32 %s1260_s26, 7  ;;  %s886_s6 = sshll.u32 %s1449_s25, 2 }
  0x11   : > { %s1268_s30 = scalar_lea.vmem %s1433_s1, %s1019_s27  ;;  %s1276_s9 = scalar_lea.vmem %s1437_s5, %s886_s6 }
  0x12   : > { %v1035_v0 = vld [vmem:[%s1268_s30 + $0x38] sm:$0xff]  ;;  %v1034_v2 = vld [vmem:[%s1268_s30 + $0x30] sm:$0xff]  ;;  %v1033_v4 = vld [vmem:[%s1268_s30 + $0x28] sm:$0xff]  ;;  %s298_s12 = scalar_lea.vmem %s1434_s2, %s1260_s26  ;;  %s877_s13 = sshll.u32 %s1449_s25, 1 }
  0x13   : > { %v1043_v1 = vld [vmem:[%s1268_s30 + $0x78] sm:$0xff]  ;;  %495 = vmatpush.bf16.msra.mxu0 %v1035_v0  ;;  %1075 = vmatpush.bf16.msra.mxu2 %v1035_v0  ;;  %v1042_v3 = vld [vmem:[%s1268_s30 + $0x70] sm:$0xff]  ;;  %v1041_v5 = vld [vmem:[%s1268_s30 + $0x68] sm:$0xff]  ;;  %s878_s14 = sshll.u32 %s1260_s26, 5  ;;  %s883_s28 = sshll.u32 %s1260_s26, 4 }
  0x14   : > { %524 = vmatpush.bf16.msra.mxu1 %v1043_v1  ;;  %1083 = vmatpush.bf16.msra.mxu3 %v1043_v1  ;;  %v1032_v6 = vld [vmem:[%s1268_s30 + $0x20] sm:$0xff]  ;;  %v1031_v8 = vld [vmem:[%s1268_s30 + $0x18] sm:$0xff]  ;;  %s287_s15 = sadd.s32 %s878_s14, %s877_s13  ;;  %v1030_v10 = vld [vmem:[%s1268_s30 + $0x10] sm:$0xff]  ;;  %s305_s29 = sadd.s32 %s883_s28, %s1449_s25 }
  0x15   : > { %v1040_v7 = vld [vmem:[%s1268_s30 + $0x60] sm:$0xff]  ;;  %v1039_v9 = vld [vmem:[%s1268_s30 + $0x58] sm:$0xff]  ;;  %v1038_v11 = vld [vmem:[%s1268_s30 + $0x50] sm:$0xff]  ;;  %s879_s16 = sshll.u32 %s287_s15, 2  ;;  %s884_s25 = sshll.u32 %s305_s29, 2 }
  0x16   : > { %v1029_v12 = vld [vmem:[%s1268_s30 + $0x8] sm:$0xff]  ;;  %s1298_s27 = scalar_lea.vmem %s1432_s0, %s879_s16  ;;  %v1028_v14 = vld [vmem:[%s1268_s30] sm:$0xff]  ;;  %s1333_s26 = scalar_lea.vmem %s1436_s4, %s884_s25 }
  0x17   : > { %496 = vmatpush.bf16.msra.mxu0 %v1034_v2  ;;  %1076 = vmatpush.bf16.msra.mxu2 %v1034_v2  ;;  %v1037_v13 = vld [vmem:[%s1268_s30 + $0x48] sm:$0xff]  ;;  %v1036_v15 = vld [vmem:[%s1268_s30 + $0x40] sm:$0xff]  ;;  %v897_v28 = vld [vmem:[%s1298_s27 + $0x10] sm:$0xf] }
  0x18   : > { %525 = vmatpush.bf16.msra.mxu1 %v1042_v3  ;;  %1084 = vmatpush.bf16.msra.mxu3 %v1042_v3  ;;  %v889_v16 = vld [vmem:[%s1298_s27] sm:$0xf]  ;;  %v1021_v17 = vld [vmem:[%s1298_s27 + $0x4] sm:$0xf0]  ;;  %v1020_v20 = vld [vmem:[%s1298_s27 + $0x4] sm:$0xf] }
  0x19   : > { %v905_v18 = vld [vmem:[%s1298_s27 + $0x20] sm:$0xf]  ;;  %v1025_v19 = vld [vmem:[%s1298_s27 + $0x24] sm:$0xf0]  ;;  %v891_v21 = vld [vmem:[%s1298_s27 + $0x8] sm:$0xf0]  ;;  %v890_v24 = vor.u32 %v1021_v17, %v889_v16 }
  0x1a   : > { %v1024_v22 = vld [vmem:[%s1298_s27 + $0x24] sm:$0xf]  ;;  %v907_v23 = vld [vmem:[%s1298_s27 + $0x28] sm:$0xf0]  ;;  %v906_v25 = vor.u32 %v1025_v19, %v905_v18  ;;  %v894_v26 = vor.u32 %v1020_v20, %v891_v21  ;;  %v1023_v29 = vld [vmem:[%s1298_s27 + $0x14] sm:$0xf0] }
  0x1b   : > { %497 = vmatpush.bf16.msra.mxu0 %v1033_v4  ;;  %1077 = vmatpush.bf16.msra.mxu2 %v1033_v4  ;;  %v910_v27 = vor.u32 %v1024_v22, %v907_v23  ;;  %v913_v30 = vld [vmem:[%s1298_s27 + $0x30] sm:$0xf]  ;;  %v1027_v31 = vld [vmem:[%s1298_s27 + $0x34] sm:$0xf0]  ;;  %v1022_v32 = vld [vmem:[%s1298_s27 + $0x14] sm:$0xf]  ;;  %v898_v36 = vor.u32 %v1023_v29, %v897_v28 }
  0x1c   : > { %526 = vmatpush.bf16.msra.mxu1 %v1041_v5  ;;  %1085 = vmatpush.bf16.msra.mxu3 %v1041_v5  ;;  %v899_v33 = vld [vmem:[%s1298_s27 + $0x18] sm:$0xf0]  ;;  %v1026_v34 = vld [vmem:[%s1298_s27 + $0x34] sm:$0xf]  ;;  %v914_v37 = vor.u32 %v1027_v31, %v913_v30  ;;  %v1155_v41 = vld [vmem:[%s298_s12] ss:$0 sm:$0xff] }
  0x1d   : > { %v915_v35 = vld [vmem:[%s1298_s27 + $0x38] sm:$0xf0]  ;;  %v902_v38 = vor.u32 %v1022_v32, %v899_v33 }
  0x1e   : > { %v918_v39 = vor.u32 %v1026_v34, %v915_v35 }
  0x1f   : > { %498 = vmatpush.bf16.msra.mxu0 %v1032_v6  ;;  %1078 = vmatpush.bf16.msra.mxu2 %v1032_v6 }
  0x20   : > { %527 = vmatpush.bf16.msra.mxu1 %v1040_v7  ;;  %1086 = vmatpush.bf16.msra.mxu3 %v1040_v7 }
  0x23   : > { %499 = vmatpush.bf16.msra.mxu0 %v1031_v8  ;;  %1079 = vmatpush.bf16.msra.mxu2 %v1031_v8 }
  0x24   : > { %528 = vmatpush.bf16.msra.mxu1 %v1039_v9  ;;  %1087 = vmatpush.bf16.msra.mxu3 %v1039_v9 }
  0x27   : > { %500 = vmatpush.bf16.msra.mxu0 %v1030_v10  ;;  %1080 = vmatpush.bf16.msra.mxu2 %v1030_v10 }
  0x28   : > { %529 = vmatpush.bf16.msra.mxu1 %v1038_v11  ;;  %1088 = vmatpush.bf16.msra.mxu3 %v1038_v11 }
  0x2b   : > { %501 = vmatpush.bf16.msra.mxu0 %v1029_v12  ;;  %1081 = vmatpush.bf16.msra.mxu2 %v1029_v12 }
  0x2c   : > { %530 = vmatpush.bf16.msra.mxu1 %v1037_v13  ;;  %1089 = vmatpush.bf16.msra.mxu3 %v1037_v13 }
  0x2f   : > { %502 = vmatpush.bf16.msra.mxu0 %v1028_v14  ;;  %1082 = vmatpush.bf16.msra.mxu2 %v1028_v14 }
  0x30   : > { %531 = vmatpush.bf16.msra.mxu1 %v1036_v15  ;;  %1090 = vmatpush.bf16.msra.mxu3 %v1036_v15 }
  0x32   : > { %503 = vmatmul.bf16.vlgmr.msra.gmra.mxu0 %v890_v24  ;;  %513 = vmatmul.bf16.vlgmr.msra.gmra.mxu2 %v906_v25 }
  0x33   : > { %532 = vmatmul.bf16.vlgmr.msra.gmra.mxu1 %v894_v26  ;;  %542 = vmatmul.bf16.vlgmr.msra.gmra.mxu3 %v910_v27 }
  0x42   : > { %508 = vmatmul.bf16.gmra.mxu0 %v898_v36  ;;  %518 = vmatmul.bf16.gmra.mxu2 %v914_v37 }
  0x43   : > { %537 = vmatmul.bf16.gmra.mxu1 %v902_v38  ;;  %547 = vmatmul.bf16.gmra.mxu3 %v918_v39 }
  0xaf   : > { %v504_v40 = vpop.f32.mrf.mxu0 }
  0xb0   : > { %v533_v42 = vpop.f32.mrf.mxu1  ;;  %v505_v43 = vadd.f32 %v1155_v41, %v504_v40 }
  0xb2   : > { %v534_v47 = vadd.f32 %v533_v42, %v505_v43 }
  0xb4   : > { %v1326_v52 = vmax.f32 %v534_v47, 0.0 }
  0xb5   : > { %v514_v44 = vpop.f32.mrf.mxu2 }
  0xb6   : > { %v543_v45 = vpop.f32.mrf.mxu3  ;;  %v515_v50 = vadd.f32 %v1155_v41, %v514_v44 }
  0xb7   : > { %v506_v46 = vpop.f32.mrf.mxu0 }
  0xb8   : > { %v507_v48 = vadd.f32 %v1155_v41, %v506_v46  ;;  %v535_v49 = vpop.f32.mrf.mxu1  ;;  %v544_v55 = vadd.f32 %v543_v45, %v515_v50 }
  0xba   : > { %v536_v51 = vadd.f32 %v535_v49, %v507_v48  ;;  %v1338_v62 = vmax.f32 %v544_v55, 0.0 }
  0xbc   : > { %v1328_v53 = vmax.f32 %v536_v51, 0.0 }
  0xbd   : > { %v516_v54 = vpop.f32.mrf.mxu2 }
  0xbe   : > { %v1055_v56 = vpack.c.bf16 %v1328_v53, %v1326_v52  ;;  %v517_v57 = vadd.f32 %v1155_v41, %v516_v54  ;;  %v545_v58 = vpop.f32.mrf.mxu3 }
  0xbf   : > { %v509_v59 = vpop.f32.mrf.mxu0 }
  0xc0   : > { %1056 = vst [vmem:[%s1333_s26] sm:$0xff] %v1055_v56   ;;  %v546_v60 = vadd.f32 %v545_v58, %v517_v57  ;;  %v538_v61 = vpop.f32.mrf.mxu1  ;;  %v510_v1 = vadd.f32 %v1155_v41, %v509_v59 }
  0xc2   : > { %v1340_v63 = vmax.f32 %v546_v60, 0.0  ;;  %v539_v5 = vadd.f32 %v538_v61, %v510_v1 }
  0xc4   : > { %v1065_v0 = vpack.c.bf16 %v1340_v63, %v1338_v62  ;;  %v1345_v10 = vmax.f32 %v539_v5, 0.0 }
  0xc5   : > { %v519_v2 = vpop.f32.mrf.mxu2 }
  0xc6   : > { %1073 = vst [vmem:[%s1333_s26 + $0x10] sm:$0xff] %v1065_v0   ;;  %v548_v3 = vpop.f32.mrf.mxu3  ;;  %v520_v8 = vadd.f32 %v1155_v41, %v519_v2 }
  0xc7   : > { %v511_v4 = vpop.f32.mrf.mxu0 }
  0xc8   : > { %v512_v6 = vadd.f32 %v1155_v41, %v511_v4  ;;  %v540_v7 = vpop.f32.mrf.mxu1  ;;  %v549_v13 = vadd.f32 %v548_v3, %v520_v8 }
  0xca   : > { %v541_v9 = vadd.f32 %v540_v7, %v512_v6  ;;  %v1352_v18 = vmax.f32 %v549_v13, 0.0 }
  0xcc   : > { %v1347_v11 = vmax.f32 %v541_v9, 0.0 }
  0xcd   : > { %v521_v12 = vpop.f32.mrf.mxu2 }
  0xce   : > { %v1060_v14 = vpack.c.bf16 %v1347_v11, %v1345_v10  ;;  %v522_v15 = vadd.f32 %v1155_v41, %v521_v12  ;;  %v550_v16 = vpop.f32.mrf.mxu3 }
  0xd0   : > { %1072 = vst [vmem:[%s1333_s26 + $0x8] sm:$0xff] %v1060_v14   ;;  %v551_v17 = vadd.f32 %v550_v16, %v522_v15 }
  0xd2   : > { %v1354_v19 = vmax.f32 %v551_v17, 0.0  ;;  %580 = sbr.rel (%p983_p7) target bundleno = 223 (0xdf), region = 40 }
  0xd4   : > { %v1070_v20 = vpack.c.bf16 %v1354_v19, %v1352_v18 }
  0xd6   : > { %1074 = vst [vmem:[%s1333_s26 + $0x18] sm:$0xff] %v1070_v20  }
  0xd7   : > { %581 = vst [vmem:[#allocation2 + $0x30] sm:$0xff] %v1326_v52 }
  0xd8   : > { %582 = vst [vmem:[#allocation2] sm:$0xff] %v1328_v53 }
  0xd9   : > { %583 = vst [vmem:[#allocation2 + $0x18] sm:$0xff] %v1345_v10 }
  0xda   : > { %584 = vst [vmem:[#allocation2 + $0x10] sm:$0xff] %v1347_v11 }
  0xdb   : > { %585 = vst [vmem:[#allocation2 + $0x8] sm:$0xff] %v1338_v62 }
  0xdc   : > { %586 = vst [vmem:[#allocation2 + $0x20] sm:$0xff] %v1340_v63 }
  0xdd   : > { %587 = vst [vmem:[#allocation2 + $0x28] sm:$0xff] %v1352_v18 }
  0xde   : > { %588 = vst [vmem:[#allocation2 + $0x38] sm:$0xff] %v1354_v19 }
  0xdf PF: > { %p984_p8 = scmp.ne.s32.totalorder %s1178_s18, 1 }
  0xe1   : > { %592 = sbr.rel (%p984_p8) target bundleno = 407 (0x197), region = 44 }
  0xe6   : > { %v1051_v21 = vld [vmem:[%s1435_s3 + $0x38] sm:$0xff]  ;;  %v1050_v22 = vld [vmem:[%s1435_s3 + $0x30] sm:$0xff]  ;;  %v1049_v23 = vld [vmem:[%s1435_s3 + $0x28] sm:$0xff]  ;;  %vm714_vm0 = vcmask 519168  }
  0xe7   : > { %677 = vmatpush.bf16.msra.mxu0 %v1051_v21  ;;  %1091 = vmatpush.bf16.msra.mxu1 %v1051_v21  ;;  %v1048_v24 = vld [vmem:[%s1435_s3 + $0x20] sm:$0xff]  ;;  %v1047_v25 = vld [vmem:[%s1435_s3 + $0x18] sm:$0xff]  ;;  %v1046_v26 = vld [vmem:[%s1435_s3 + $0x10] sm:$0xff] }
  0xe8   : > { %1092 = vmatpush.bf16.msra.mxu2 %v1051_v21  ;;  %1093 = vmatpush.bf16.msra.mxu3 %v1051_v21  ;;  %v1045_v27 = vld [vmem:[%s1435_s3 + $0x8] sm:$0xff]  ;;  %v593_v28 = vld [vmem:[#allocation2 + $0x30] sm:$0xff]  ;;  %v594_v29 = vld [vmem:[#allocation2] sm:$0xff] }
  0xe9   : > { %v595_v30 = vld [vmem:[#allocation2 + $0x18] sm:$0xff]  ;;  %v596_v31 = vld [vmem:[#allocation2 + $0x10] sm:$0xff]  ;;  %v597_v32 = vld [vmem:[#allocation2 + $0x8] sm:$0xff]  ;;  %v601_v36 = vadd.f32 %v593_v28, %v1326_v52  ;;  %v602_v37 = vadd.f32 %v594_v29, %v1328_v53 }
  0xea   : > { %v598_v33 = vld [vmem:[#allocation2 + $0x20] sm:$0xff]  ;;  %v599_v34 = vld [vmem:[#allocation2 + $0x28] sm:$0xff]  ;;  %v600_v35 = vld [vmem:[#allocation2 + $0x38] sm:$0xff]  ;;  %v603_v38 = vadd.f32 %v595_v30, %v1345_v10  ;;  %v604_v39 = vadd.f32 %v596_v31, %v1347_v11  ;;  %v605_v40 = vadd.f32 %v597_v32, %v1338_v62 }
  0xeb   : > { %678 = vmatpush.bf16.msra.mxu0 %v1050_v22  ;;  %1094 = vmatpush.bf16.msra.mxu1 %v1050_v22  ;;  %v1044_v41 = vld [vmem:[%s1435_s3] sm:$0xff]  ;;  %v606_v42 = vadd.f32 %v598_v33, %v1340_v63  ;;  %v607_v43 = vadd.f32 %v599_v34, %v1352_v18  ;;  %v608_v44 = vadd.f32 %v600_v35, %v1354_v19 }
  0xec   : > { %1095 = vmatpush.bf16.msra.mxu2 %v1050_v22  ;;  %1096 = vmatpush.bf16.msra.mxu3 %v1050_v22  ;;  %v609_v45 = vpack.c.bf16 %v602_v37, %v601_v36  ;;  %v610_v46 = vpack.c.bf16 %v604_v39, %v603_v38 }
  0xed   : > { %v611_v47 = vpack.c.bf16 %v606_v42, %v605_v40  ;;  %v612_v48 = vpack.c.bf16 %v608_v44, %v607_v43 }
  0xef   : > { %679 = vmatpush.bf16.msra.mxu0 %v1049_v23  ;;  %1097 = vmatpush.bf16.msra.mxu1 %v1049_v23 }
  0xf0   : > { %1098 = vmatpush.bf16.msra.mxu2 %v1049_v23  ;;  %1099 = vmatpush.bf16.msra.mxu3 %v1049_v23 }
  0xf3   : > { %680 = vmatpush.bf16.msra.mxu0 %v1048_v24  ;;  %1100 = vmatpush.bf16.msra.mxu1 %v1048_v24 }
  0xf4   : > { %1101 = vmatpush.bf16.msra.mxu2 %v1048_v24  ;;  %1102 = vmatpush.bf16.msra.mxu3 %v1048_v24 }
  0xf7   : > { %681 = vmatpush.bf16.msra.mxu0 %v1047_v25  ;;  %1103 = vmatpush.bf16.msra.mxu1 %v1047_v25 }
  0xf8   : > { %1104 = vmatpush.bf16.msra.mxu2 %v1047_v25  ;;  %1105 = vmatpush.bf16.msra.mxu3 %v1047_v25 }
  0xfb   : > { %682 = vmatpush.bf16.msra.mxu0 %v1046_v26  ;;  %1106 = vmatpush.bf16.msra.mxu1 %v1046_v26 }
  0xfc   : > { %1107 = vmatpush.bf16.msra.mxu2 %v1046_v26  ;;  %1108 = vmatpush.bf16.msra.mxu3 %v1046_v26 }
  0xff   : > { %683 = vmatpush.bf16.msra.mxu0 %v1045_v27  ;;  %1109 = vmatpush.bf16.msra.mxu1 %v1045_v27 }
 0x100   : > { %1110 = vmatpush.bf16.msra.mxu2 %v1045_v27  ;;  %1111 = vmatpush.bf16.msra.mxu3 %v1045_v27 }
 0x103   : > { %684 = vmatpush.bf16.msra.mxu0 %v1044_v41  ;;  %1112 = vmatpush.bf16.msra.mxu1 %v1044_v41 }
 0x104   : > { %1113 = vmatpush.bf16.msra.mxu2 %v1044_v41  ;;  %1114 = vmatpush.bf16.msra.mxu3 %v1044_v41 }
 0x106   : > { %685 = vmatmul.bf16.vlgmr.msra.gmra.mxu0 %v609_v45  ;;  %690 = vmatmul.bf16.vlgmr.msra.gmra.mxu1 %v610_v46 }
 0x107   : > { %695 = vmatmul.bf16.vlgmr.msra.gmra.mxu2 %v611_v47  ;;  %700 = vmatmul.bf16.vlgmr.msra.gmra.mxu3 %v612_v48 }
 0x183   : > { %v686_v49 = vpop.f32.mrf.mxu0  ;;  %v691_v50 = vpop.f32.mrf.mxu1 }
 0x184   : > { %v706_v51 = vpack.c.bf16 %v686_v49, %v686_v49  ;;  %v708_v52 = vpack.c.bf16 %v691_v50, %v691_v50 }
 0x186   : > { %715 = vst.msk [vmem:[%s1276_s9] sm:$0xf] %vm714_vm0, %v706_v51 }
 0x187   : > { %717 = vst.msk [vmem:[%s1276_s9 + $0x8] sm:$0xf] %vm714_vm0, %v708_v52 }
 0x18a   : > { %v696_v53 = vpop.f32.mrf.mxu2  ;;  %v701_v54 = vpop.f32.mrf.mxu3 }
 0x18b   : > { %v710_v55 = vpack.c.bf16 %v696_v53, %v696_v53  ;;  %v712_v56 = vpack.c.bf16 %v701_v54, %v701_v54  ;;  %v688_v57 = vpop.f32.mrf.mxu0  ;;  %v693_v58 = vpop.f32.mrf.mxu1 }
 0x18c   : > { %v707_v59 = vpack.c.bf16 %v688_v57, %v688_v57  ;;  %v709_v60 = vpack.c.bf16 %v693_v58, %v693_v58 }
 0x18d   : > { %719 = vst.msk [vmem:[%s1276_s9 + $0x10] sm:$0xf] %vm714_vm0, %v710_v55 }
 0x18e   : > { %721 = vst.msk [vmem:[%s1276_s9 + $0x18] sm:$0xf] %vm714_vm0, %v712_v56 }
 0x18f   : > { %716 = vst.msk [vmem:[%s1276_s9 + $0x4] sm:$0xf] %vm714_vm0, %v707_v59 }
 0x190   : > { %718 = vst.msk [vmem:[%s1276_s9 + $0xc] sm:$0xf] %vm714_vm0, %v709_v60 }
 0x192   : > { %v698_v61 = vpop.f32.mrf.mxu2  ;;  %v703_v62 = vpop.f32.mrf.mxu3 }
 0x193   : > { %v711_v63 = vpack.c.bf16 %v698_v61, %v698_v61  ;;  %v713_v0 = vpack.c.bf16 %v703_v62, %v703_v62 }
 0x195   : > { %720 = vst.msk [vmem:[%s1276_s9 + $0x14] sm:$0xf] %vm714_vm0, %v711_v63 }
 0x196   : > { %722 = vst.msk [vmem:[%s1276_s9 + $0x1c] sm:$0xf] %vm714_vm0, %v713_v0 }
 0x197 PF: > { %s16_s22 = sadd.s32 1, %s1194_s22   ;;  %s1438_s18 = smov %s1186_s20 }
 0x198   : > { %p13_p9 = scmp.ge.s32.totalorder %s16_s22, 6   ;;  %s1439_s19 = smov %s1190_s21 }
 0x199   : > { %s1440_s20 = smov %s1443_s23  ;;  %s1441_s21 = smov %s1447_s24 }
 0x19a   :  { %15 = sbr.rel (!%p13_p9) target bundleno = 3 (0x3), region = 92 }

// kernel: encoder_decoder_forward.7
= control target key start
LH: loop header
LB: loop body
LE: loop exit
PB: predicated region body
PF: predicated region fallthrough
CT: control target
= control target key end

     0   :  { %s2306_s18 = smov 0   ;;  %s2308_s19 = smov 0   ;;  %s2696_s0 = inlined_call_operand.vmem [shape: bf16[2,32,512], index: 0, kind: input, shape index: {}]   ;;  %s2697_s1 = inlined_call_operand.vmem [shape: bf16[2,512,320], index: 1, kind: input, shape index: {}]   ;;  %s2698_s2 = inlined_call_operand.vmem [shape: f32[2,1,320], index: 2, kind: input, shape index: {}]   ;;  %s2699_s3 = inlined_call_operand.vmem [shape: bf16[320,64], index: 3, kind: input, shape index: {}]   ;;  %s2700_s4 = inlined_call_operand.vmem [shape: bf16[2,32,320], index: 4, kind: output, shape index: {0}]   ;;  %s2701_s5 = inlined_call_operand.vmem [shape: bf16[32,64], index: 5, kind: output, shape index: {1}]  }
   0x1   :  { %s2310_s20 = smov 0   ;;  %s2312_s21 = smov 0  }
   0x2   :  { %s2314_s22 = smov 0  }
   0x3 LB: > { %s25_s23 = sadd.s32 1, %s2266_s20  ;;  %s28_s24 = sadd.s32 1, %s2270_s21  ;;  %s2274_s22 = sphi %s2314_s22, %s16_s22   ;;  %s2270_s21 = sphi %s2312_s21, %s2705_s21   ;;  %s2266_s20 = sphi %s2310_s20, %s2704_s20   ;;  %s2262_s19 = sphi %s2308_s19, %s2703_s19   ;;  %s2258_s18 = sphi %s2306_s18, %s2702_s18  }
   0x4   : > { %p26_p0 = scmp.ge.s32.totalorder %s25_s23, 2  ;;  %p1577_p1 = scmp.ge.s32.totalorder %s2274_s22, 1 }
   0x5   : > { %p231_p2 = scmp.lt.s32.totalorder %s2274_s22, 5 }
   0x6   : > { %s2707_s23 = smov (%p26_p0, %s25_s23), 0  ;;  %s2709_s24 = smov (!%p26_p0, %s28_s24), %s2270_s21 }
   0x7   : > { %p232_p3 = pnand %p1577_p1, %p231_p2  ;;  %p30_p4 = scmp.ge.s32.totalorder %s2709_s24, 2 }
   0x8   : > { %p284_p5 = scmp.lt.s32.totalorder (!%p232_p3), %s2258_s18, 1  ;;  %s1578_s25 = sshll.u32 (!%p232_p3), %s2262_s19, 1 }
   0x9   : > { %s2711_s24 = smov (%p30_p4, %s2709_s24), 0  ;;  %235 = sbr.rel (%p232_p3) target bundleno = 455 (0x1c7), region = 36 }
   0xa   : > { %p286_p6 = scmp.lt.s32.totalorder (!%p232_p3), %s1578_s25, 3  ;;  %p1987_p7 = scmp.ne.s32.totalorder (!%p232_p3), %s2258_s18, 0 }
   0xe   : > { %s2340_s26 = scalar_select %p284_p5, %s2258_s18, 1  ;;  %vm1172_vm0 = vcmask 519168  }
   0xf   : > { %s2713_s25 = smov (!%p286_p6, %s1578_s25), 3 }
  0x10   : > { %s2192_s27 = smul.u32 768, %s2340_s26  ;;  %s1579_s6 = sshll.u32 %s2713_s25, 2 }
  0x11   : > { %s2359_s9 = scalar_lea.vmem %s2701_s5, %s1579_s6  ;;  %s1580_s10 = sshll.u32 %s2340_s26, 4 }
  0x12   : > { %s2348_s30 = scalar_lea.vmem %s2697_s1, %s2192_s27  ;;  %s290_s11 = sadd.s32 %s1580_s10, %s1579_s6 }
  0x13   : > { %v1689_v0 = vld [vmem:[%s2348_s30 + $0xa8] sm:$0xf]  ;;  %v2098_v1 = vld [vmem:[%s2348_s30 + $0xb0] sm:$0xf0]  ;;  %v1677_v11 = vld [vmem:[%s2348_s30 + $0x90] sm:$0xf] }
  0x14   : > { %v1785_v2 = vld [vmem:[%s2348_s30 + $0x168] sm:$0xf]  ;;  %v1690_v3 = vor.u32 %v2098_v1, %v1689_v0  ;;  %v2122_v4 = vld [vmem:[%s2348_s30 + $0x170] sm:$0xf0]  ;;  %v2095_v13 = vld [vmem:[%s2348_s30 + $0x98] sm:$0xf0] }
  0x15   : > { %v1881_v5 = vld [vmem:[%s2348_s30 + $0x228] sm:$0xf]  ;;  %v2146_v6 = vld [vmem:[%s2348_s30 + $0x230] sm:$0xf0]  ;;  %v1786_v7 = vor.u32 %v2122_v4, %v1785_v2  ;;  %v1773_v14 = vld [vmem:[%s2348_s30 + $0x150] sm:$0xf]  ;;  %v1678_v16 = vor.u32 %v2095_v13, %v1677_v11 }
  0x16   : > { %v1882_v8 = vor.u32 %v2146_v6, %v1881_v5  ;;  %v1977_v9 = vld [vmem:[%s2348_s30 + $0x2e8] sm:$0xf]  ;;  %v2170_v10 = vld [vmem:[%s2348_s30 + $0x2f0] sm:$0xf0]  ;;  %993 = vmatpush.bf16.msra.mxu0 %v1690_v3  ;;  %v2119_v15 = vld [vmem:[%s2348_s30 + $0x158] sm:$0xf0] }
  0x17   : > { %v1978_v12 = vor.u32 %v2170_v10, %v1977_v9  ;;  %1007 = vmatpush.bf16.msra.mxu1 %v1786_v7  ;;  %v1774_v17 = vor.u32 %v2119_v15, %v1773_v14  ;;  %v1869_v18 = vld [vmem:[%s2348_s30 + $0x210] sm:$0xf]  ;;  %v2143_v19 = vld [vmem:[%s2348_s30 + $0x218] sm:$0xf0]  ;;  %v1665_v23 = vld [vmem:[%s2348_s30 + $0x78] sm:$0xf] }
  0x18   : > { %1021 = vmatpush.bf16.msra.mxu2 %v1882_v8  ;;  %v1965_v20 = vld [vmem:[%s2348_s30 + $0x2d0] sm:$0xf]  ;;  %v1870_v21 = vor.u32 %v2143_v19, %v1869_v18  ;;  %v2167_v22 = vld [vmem:[%s2348_s30 + $0x2d8] sm:$0xf0]  ;;  %v2092_v24 = vld [vmem:[%s2348_s30 + $0x80] sm:$0xf0] }
  0x19   : > { %1035 = vmatpush.bf16.msra.mxu3 %v1978_v12  ;;  %v1966_v25 = vor.u32 %v2167_v22, %v1965_v20  ;;  %v1761_v26 = vld [vmem:[%s2348_s30 + $0x138] sm:$0xf]  ;;  %v2116_v27 = vld [vmem:[%s2348_s30 + $0x140] sm:$0xf0]  ;;  %v1666_v29 = vor.u32 %v2092_v24, %v1665_v23  ;;  %v1653_v35 = vld [vmem:[%s2348_s30 + $0x60] sm:$0xf] }
  0x1a   : > { %v1857_v28 = vld [vmem:[%s2348_s30 + $0x1f8] sm:$0xf]  ;;  %994 = vmatpush.bf16.msra.mxu0 %v1678_v16  ;;  %v2140_v30 = vld [vmem:[%s2348_s30 + $0x200] sm:$0xf0]  ;;  %v1762_v33 = vor.u32 %v2116_v27, %v1761_v26  ;;  %v2089_v36 = vld [vmem:[%s2348_s30 + $0x68] sm:$0xf0] }
  0x1b   : > { %v1953_v31 = vld [vmem:[%s2348_s30 + $0x2b8] sm:$0xf]  ;;  %v2164_v32 = vld [vmem:[%s2348_s30 + $0x2c0] sm:$0xf0]  ;;  %1008 = vmatpush.bf16.msra.mxu1 %v1774_v17  ;;  %v1858_v34 = vor.u32 %v2140_v30, %v1857_v28  ;;  %v1749_v37 = vld [vmem:[%s2348_s30 + $0x120] sm:$0xf]  ;;  %v1654_v44 = vor.u32 %v2089_v36, %v1653_v35 }
  0x1c   : > { %1022 = vmatpush.bf16.msra.mxu2 %v1870_v21  ;;  %v1954_v38 = vor.u32 %v2164_v32, %v1953_v31  ;;  %v2113_v39 = vld [vmem:[%s2348_s30 + $0x128] sm:$0xf0]  ;;  %v1845_v40 = vld [vmem:[%s2348_s30 + $0x1e0] sm:$0xf]  ;;  %v1641_v47 = vld [vmem:[%s2348_s30 + $0x48] sm:$0xf] }
  0x1d   : > { %1036 = vmatpush.bf16.msra.mxu3 %v1966_v25  ;;  %v2137_v41 = vld [vmem:[%s2348_s30 + $0x1e8] sm:$0xf0]  ;;  %v1941_v42 = vld [vmem:[%s2348_s30 + $0x2a0] sm:$0xf]  ;;  %v1750_v45 = vor.u32 %v2113_v39, %v1749_v37  ;;  %v2086_v48 = vld [vmem:[%s2348_s30 + $0x50] sm:$0xf0] }
  0x1e   : > { %v2161_v43 = vld [vmem:[%s2348_s30 + $0x2a8] sm:$0xf0]  ;;  %995 = vmatpush.bf16.msra.mxu0 %v1666_v29  ;;  %v1846_v46 = vor.u32 %v2137_v41, %v1845_v40  ;;  %v1737_v49 = vld [vmem:[%s2348_s30 + $0x108] sm:$0xf]  ;;  %v2110_v51 = vld [vmem:[%s2348_s30 + $0x110] sm:$0xf0]  ;;  %v1642_v56 = vor.u32 %v2086_v48, %v1641_v47 }
  0x1f   : > { %1009 = vmatpush.bf16.msra.mxu1 %v1762_v33  ;;  %v1942_v50 = vor.u32 %v2161_v43, %v1941_v42  ;;  %v1833_v52 = vld [vmem:[%s2348_s30 + $0x1c8] sm:$0xf]  ;;  %v2134_v53 = vld [vmem:[%s2348_s30 + $0x1d0] sm:$0xf0]  ;;  %v1738_v57 = vor.u32 %v2110_v51, %v1737_v49  ;;  %v1629_v59 = vld [vmem:[%s2348_s30 + $0x30] sm:$0xf] }
  0x20   : > { %1023 = vmatpush.bf16.msra.mxu2 %v1858_v34  ;;  %v1929_v54 = vld [vmem:[%s2348_s30 + $0x288] sm:$0xf]  ;;  %v2158_v55 = vld [vmem:[%s2348_s30 + $0x290] sm:$0xf0]  ;;  %v1834_v58 = vor.u32 %v2134_v53, %v1833_v52  ;;  %v2083_v60 = vld [vmem:[%s2348_s30 + $0x38] sm:$0xf0] }
  0x21   : > { %1037 = vmatpush.bf16.msra.mxu3 %v1954_v38  ;;  %v1725_v61 = vld [vmem:[%s2348_s30 + $0xf0] sm:$0xf]  ;;  %v1930_v62 = vor.u32 %v2158_v55, %v1929_v54  ;;  %v2107_v63 = vld [vmem:[%s2348_s30 + $0xf8] sm:$0xf0]  ;;  %v1630_v4 = vor.u32 %v2083_v60, %v1629_v59  ;;  %v1617_v7 = vld [vmem:[%s2348_s30 + $0x18] sm:$0xf] }
  0x22   : > { %996 = vmatpush.bf16.msra.mxu0 %v1654_v44  ;;  %v1821_v0 = vld [vmem:[%s2348_s30 + $0x1b0] sm:$0xf]  ;;  %v2131_v1 = vld [vmem:[%s2348_s30 + $0x1b8] sm:$0xf0]  ;;  %v1726_v5 = vor.u32 %v2107_v63, %v1725_v61  ;;  %v2080_v8 = vld [vmem:[%s2348_s30 + $0x20] sm:$0xf0] }
  0x23   : > { %1010 = vmatpush.bf16.msra.mxu1 %v1750_v45  ;;  %v1917_v2 = vld [vmem:[%s2348_s30 + $0x270] sm:$0xf]  ;;  %v2155_v3 = vld [vmem:[%s2348_s30 + $0x278] sm:$0xf0]  ;;  %v1822_v6 = vor.u32 %v2131_v1, %v1821_v0  ;;  %v1713_v9 = vld [vmem:[%s2348_s30 + $0xd8] sm:$0xf]  ;;  %v1618_v16 = vor.u32 %v2080_v8, %v1617_v7 }
  0x24   : > { %1024 = vmatpush.bf16.msra.mxu2 %v1846_v46  ;;  %v1918_v10 = vor.u32 %v2155_v3, %v1917_v2  ;;  %v2104_v11 = vld [vmem:[%s2348_s30 + $0xe0] sm:$0xf0]  ;;  %v1809_v12 = vld [vmem:[%s2348_s30 + $0x198] sm:$0xf]  ;;  %v1605_v17 = vld [vmem:[%s2348_s30] sm:$0xf] }
  0x25   : > { %1038 = vmatpush.bf16.msra.mxu3 %v1942_v50  ;;  %v2128_v13 = vld [vmem:[%s2348_s30 + $0x1a0] sm:$0xf0]  ;;  %v1905_v14 = vld [vmem:[%s2348_s30 + $0x258] sm:$0xf]  ;;  %v2077_v18 = vld [vmem:[%s2348_s30 + $0x8] sm:$0xf0]  ;;  %v1714_v19 = vor.u32 %v2104_v11, %v1713_v9 }
  0x26   : > { %997 = vmatpush.bf16.msra.mxu0 %v1642_v56  ;;  %v2152_v15 = vld [vmem:[%s2348_s30 + $0x260] sm:$0xf0]  ;;  %v1810_v20 = vor.u32 %v2128_v13, %v1809_v12  ;;  %v1701_v21 = vld [vmem:[%s2348_s30 + $0xc0] sm:$0xf]  ;;  %v2101_v22 = vld [vmem:[%s2348_s30 + $0xc8] sm:$0xf0]  ;;  %v1606_v31 = vor.u32 %v2077_v18, %v1605_v17 }
  0x27   : > { %1011 = vmatpush.bf16.msra.mxu1 %v1738_v57  ;;  %v1797_v23 = vld [vmem:[%s2348_s30 + $0x180] sm:$0xf]  ;;  %v1906_v24 = vor.u32 %v2152_v15, %v1905_v14  ;;  %v2125_v25 = vld [vmem:[%s2348_s30 + $0x188] sm:$0xf0]  ;;  %v1691_v29 = vld [vmem:[%s2348_s30 + $0xb4] sm:$0xf0]  ;;  %v1702_v35 = vor.u32 %v2101_v22, %v1701_v21 }
  0x28   : > { %1025 = vmatpush.bf16.msra.mxu2 %v1834_v58  ;;  %v1893_v26 = vld [vmem:[%s2348_s30 + $0x240] sm:$0xf]  ;;  %v2149_v27 = vld [vmem:[%s2348_s30 + $0x248] sm:$0xf0]  ;;  %v1787_v32 = vld [vmem:[%s2348_s30 + $0x174] sm:$0xf0]  ;;  %v1798_v36 = vor.u32 %v2125_v25, %v1797_v23 }
  0x29   : > { %1039 = vmatpush.bf16.msra.mxu3 %v1930_v62  ;;  %v2097_v28 = vld [vmem:[%s2348_s30 + $0xac] sm:$0xf]  ;;  %v1883_v34 = vld [vmem:[%s2348_s30 + $0x234] sm:$0xf0]  ;;  %v1894_v39 = vor.u32 %v2149_v27, %v1893_v26  ;;  %v2094_v41 = vld [vmem:[%s2348_s30 + $0x94] sm:$0xf] }
  0x2a   : > { %998 = vmatpush.bf16.msra.mxu0 %v1630_v4  ;;  %v2121_v30 = vld [vmem:[%s2348_s30 + $0x16c] sm:$0xf]  ;;  %v1979_v38 = vld [vmem:[%s2348_s30 + $0x2f4] sm:$0xf0]  ;;  %v1694_v40 = vor.u32 %v2097_v28, %v1691_v29  ;;  %v1679_v42 = vld [vmem:[%s2348_s30 + $0x9c] sm:$0xf0] }
  0x2b   : > { %1012 = vmatpush.bf16.msra.mxu1 %v1726_v5  ;;  %v2145_v33 = vld [vmem:[%s2348_s30 + $0x22c] sm:$0xf]  ;;  %v1790_v43 = vor.u32 %v2121_v30, %v1787_v32  ;;  %v2118_v45 = vld [vmem:[%s2348_s30 + $0x154] sm:$0xf]  ;;  %v1775_v46 = vld [vmem:[%s2348_s30 + $0x15c] sm:$0xf0]  ;;  %v1682_v54 = vor.u32 %v2094_v41, %v1679_v42 }
  0x2c   : > { %1026 = vmatpush.bf16.msra.mxu2 %v1822_v6  ;;  %v2169_v37 = vld [vmem:[%s2348_s30 + $0x2ec] sm:$0xf]  ;;  %v1886_v44 = vor.u32 %v2145_v33, %v1883_v34  ;;  %v2142_v47 = vld [vmem:[%s2348_s30 + $0x214] sm:$0xf]  ;;  %v1871_v49 = vld [vmem:[%s2348_s30 + $0x21c] sm:$0xf0]  ;;  %v1778_v58 = vor.u32 %v2118_v45, %v1775_v46 }
  0x2d   : > { %1040 = vmatpush.bf16.msra.mxu3 %v1918_v10  ;;  %v1982_v48 = vor.u32 %v2169_v37, %v1979_v38  ;;  %v2166_v50 = vld [vmem:[%s2348_s30 + $0x2d4] sm:$0xf]  ;;  %v1967_v51 = vld [vmem:[%s2348_s30 + $0x2dc] sm:$0xf0]  ;;  %v2091_v52 = vld [vmem:[%s2348_s30 + $0x7c] sm:$0xf]  ;;  %v1874_v59 = vor.u32 %v2142_v47, %v1871_v49 }
  0x2e   : > { %999 = vmatpush.bf16.msra.mxu0 %v1618_v16  ;;  %v1667_v53 = vld [vmem:[%s2348_s30 + $0x84] sm:$0xf0]  ;;  %s1581_s12 = sshll.u32 %s290_s11, 2  ;;  %v2115_v55 = vld [vmem:[%s2348_s30 + $0x13c] sm:$0xf]  ;;  %v1970_v63 = vor.u32 %v2166_v50, %v1967_v51  ;;  %s2193_s16 = smul.u32 3, %s2340_s26 }
  0x2f   : > { %1013 = vmatpush.bf16.msra.mxu1 %v1714_v19  ;;  %v1763_v56 = vld [vmem:[%s2348_s30 + $0x144] sm:$0xf0]  ;;  %v2139_v57 = vld [vmem:[%s2348_s30 + $0x1fc] sm:$0xf]  ;;  %s292_s15 = scalar_lea.vmem %s2696_s0, %s1581_s12  ;;  %v1670_v7 = vor.u32 %v2091_v52, %v1667_v53  ;;  %v2088_v14 = vld [vmem:[%s2348_s30 + $0x64] sm:$0xf] }
  0x30   : > { %1027 = vmatpush.bf16.msra.mxu2 %v1810_v20  ;;  %v1859_v60 = vld [vmem:[%s2348_s30 + $0x204] sm:$0xf0]  ;;  %v2075_v62 = vld [vmem:[%s292_s15 + $0x14] sm:$0xf0]  ;;  %v2163_v0 = vld [vmem:[%s2348_s30 + $0x2bc] sm:$0xf]  ;;  %v1766_v12 = vor.u32 %v2115_v55, %v1763_v56  ;;  %s302_s27 = scalar_lea.vmem %s2698_s2, %s2193_s16 }
  0x31   : > { %1041 = vmatpush.bf16.msra.mxu3 %v1906_v24  ;;  %v1597_v61 = vld [vmem:[%s292_s15 + $0x8] sm:$0xf]  ;;  %v1589_v3 = vld [vmem:[%s292_s15] sm:$0xf]  ;;  %v2074_v4 = vld [vmem:[%s292_s15 + $0xc] sm:$0xf0]  ;;  %v1862_v13 = vor.u32 %v2139_v57, %v1859_v60 }
  0x32   : > { %1000 = vmatpush.bf16.msra.mxu0 %v1606_v31  ;;  %v1955_v1 = vld [vmem:[%s2348_s30 + $0x2c4] sm:$0xf0]  ;;  %v2454_v2 = vor.u32 %v2075_v62, %v1597_v61  ;;  %v2073_v5 = vld [vmem:[%s292_s15 + $0xc] sm:$0xf]  ;;  %v1599_v6 = vld [vmem:[%s292_s15 + $0x18] sm:$0xf0]  ;;  %v2457_v8 = vor.u32 %v2074_v4, %v1589_v3 }
  0x33   : > { %1014 = vmatpush.bf16.msra.mxu1 %v1702_v35  ;;  %v2459_v9 = vor.u32 %v2073_v5, %v1599_v6  ;;  %v2072_v10 = vld [vmem:[%s292_s15 + $0x4] sm:$0xf]  ;;  %v1591_v11 = vld [vmem:[%s292_s15 + $0x10] sm:$0xf0]  ;;  %v1655_v15 = vld [vmem:[%s2348_s30 + $0x6c] sm:$0xf0]  ;;  %v1958_v18 = vor.u32 %v2163_v0, %v1955_v1 }
  0x34   : > { %1028 = vmatpush.bf16.msra.mxu2 %v1798_v36  ;;  %v2112_v16 = vld [vmem:[%s2348_s30 + $0x124] sm:$0xf]  ;;  %v2464_v17 = vor.u32 %v2072_v10, %v1591_v11  ;;  %v1751_v19 = vld [vmem:[%s2348_s30 + $0x12c] sm:$0xf0]  ;;  %v1658_v24 = vor.u32 %v2088_v14, %v1655_v15  ;;  %v2085_v27 = vld [vmem:[%s2348_s30 + $0x4c] sm:$0xf] }
  0x35   : > { %1042 = vmatpush.bf16.msra.mxu3 %v1894_v39  ;;  %v2136_v20 = vld [vmem:[%s2348_s30 + $0x1e4] sm:$0xf]  ;;  %v1847_v21 = vld [vmem:[%s2348_s30 + $0x1ec] sm:$0xf0]  ;;  %1001 = vmatmul.bf16.vlgmr.msra.gmra.mxu0 %v2457_v8  ;;  %v1754_v25 = vor.u32 %v2112_v16, %v1751_v19  ;;  %v1643_v28 = vld [vmem:[%s2348_s30 + $0x54] sm:$0xf0] }
  0x36   : > { %1049 = vmatpush.bf16.msrb.mxu0 %v1694_v40  ;;  %v2160_v22 = vld [vmem:[%s2348_s30 + $0x2a4] sm:$0xf]  ;;  %v1943_v23 = vld [vmem:[%s2348_s30 + $0x2ac] sm:$0xf0]  ;;  %1015 = vmatmul.bf16.vlgmr.msra.gmra.mxu1 %v2464_v17  ;;  %v1850_v26 = vor.u32 %v2136_v20, %v1847_v21  ;;  %v2109_v29 = vld [vmem:[%s2348_s30 + $0x10c] sm:$0xf]  ;;  %v1646_v36 = vor.u32 %v2085_v27, %v1643_v28 }
  0x37   : > { %1063 = vmatpush.bf16.msrb.mxu1 %v1790_v43  ;;  %1029 = vmatmul.bf16.vlgmr.msra.gmra.mxu2 %v2454_v2  ;;  %v1946_v30 = vor.u32 %v2160_v22, %v1943_v23  ;;  %v1739_v31 = vld [vmem:[%s2348_s30 + $0x114] sm:$0xf0]  ;;  %v2133_v32 = vld [vmem:[%s2348_s30 + $0x1cc] sm:$0xf]  ;;  %v2082_v39 = vld [vmem:[%s2348_s30 + $0x34] sm:$0xf] }
  0x38   : > { %1077 = vmatpush.bf16.msrb.mxu2 %v1886_v44  ;;  %1043 = vmatmul.bf16.vlgmr.msra.gmra.mxu3 %v2459_v9  ;;  %v1835_v33 = vld [vmem:[%s2348_s30 + $0x1d4] sm:$0xf0]  ;;  %v2157_v34 = vld [vmem:[%s2348_s30 + $0x28c] sm:$0xf]  ;;  %v1742_v37 = vor.u32 %v2109_v29, %v1739_v31  ;;  %v1631_v40 = vld [vmem:[%s2348_s30 + $0x3c] sm:$0xf0] }
  0x39   : > { %1091 = vmatpush.bf16.msrb.mxu3 %v1982_v48  ;;  %v1931_v35 = vld [vmem:[%s2348_s30 + $0x294] sm:$0xf0]  ;;  %v1838_v38 = vor.u32 %v2133_v32, %v1835_v33  ;;  %v2106_v41 = vld [vmem:[%s2348_s30 + $0xf4] sm:$0xf]  ;;  %v1727_v43 = vld [vmem:[%s2348_s30 + $0xfc] sm:$0xf0]  ;;  %v1634_v48 = vor.u32 %v2082_v39, %v1631_v40 }
  0x3a   : > { %1050 = vmatpush.bf16.msrb.mxu0 %v1682_v54  ;;  %v1934_v42 = vor.u32 %v2157_v34, %v1931_v35  ;;  %v2130_v44 = vld [vmem:[%s2348_s30 + $0x1b4] sm:$0xf]  ;;  %v1823_v45 = vld [vmem:[%s2348_s30 + $0x1bc] sm:$0xf0]  ;;  %v1730_v49 = vor.u32 %v2106_v41, %v1727_v43  ;;  %v2079_v51 = vld [vmem:[%s2348_s30 + $0x1c] sm:$0xf] }
  0x3b   : > { %1064 = vmatpush.bf16.msrb.mxu1 %v1778_v58  ;;  %v2154_v46 = vld [vmem:[%s2348_s30 + $0x274] sm:$0xf]  ;;  %v1919_v47 = vld [vmem:[%s2348_s30 + $0x27c] sm:$0xf0]  ;;  %v1826_v50 = vor.u32 %v2130_v44, %v1823_v45  ;;  %v1619_v52 = vld [vmem:[%s2348_s30 + $0x24] sm:$0xf0] }
  0x3c   : > { %1078 = vmatpush.bf16.msrb.mxu2 %v1874_v59  ;;  %v2103_v53 = vld [vmem:[%s2348_s30 + $0xdc] sm:$0xf]  ;;  %v1922_v54 = vor.u32 %v2154_v46, %v1919_v47  ;;  %v1715_v55 = vld [vmem:[%s2348_s30 + $0xe4] sm:$0xf0]  ;;  %v1622_v60 = vor.u32 %v2079_v51, %v1619_v52  ;;  %v2076_v61 = vld [vmem:[%s2348_s30 + $0x4] sm:$0xf] }
  0x3d   : > { %1092 = vmatpush.bf16.msrb.mxu3 %v1970_v63  ;;  %v2127_v56 = vld [vmem:[%s2348_s30 + $0x19c] sm:$0xf]  ;;  %v1811_v57 = vld [vmem:[%s2348_s30 + $0x1a4] sm:$0xf0]  ;;  %v1607_v62 = vld [vmem:[%s2348_s30 + $0xc] sm:$0xf0]  ;;  %v1718_v63 = vor.u32 %v2103_v53, %v1715_v55 }
  0x3e   : > { %1051 = vmatpush.bf16.msrb.mxu0 %v1670_v7  ;;  %v2151_v58 = vld [vmem:[%s2348_s30 + $0x25c] sm:$0xf]  ;;  %v1907_v59 = vld [vmem:[%s2348_s30 + $0x264] sm:$0xf0]  ;;  %v1814_v0 = vor.u32 %v2127_v56, %v1811_v57  ;;  %v2100_v1 = vld [vmem:[%s2348_s30 + $0xc4] sm:$0xf]  ;;  %v1610_v14 = vor.u32 %v2076_v61, %v1607_v62 }
  0x3f   : > { %1065 = vmatpush.bf16.msrb.mxu1 %v1766_v12  ;;  %v1703_v3 = vld [vmem:[%s2348_s30 + $0xcc] sm:$0xf0]  ;;  %v2124_v4 = vld [vmem:[%s2348_s30 + $0x184] sm:$0xf]  ;;  %v1910_v5 = vor.u32 %v2151_v58, %v1907_v59  ;;  %v2099_v12 = vld [vmem:[%s2348_s30 + $0xb8] sm:$0xf0] }
  0x40   : > { %1079 = vmatpush.bf16.msrb.mxu2 %v1862_v13  ;;  %v1799_v6 = vld [vmem:[%s2348_s30 + $0x18c] sm:$0xf0]  ;;  %v2148_v7 = vld [vmem:[%s2348_s30 + $0x244] sm:$0xf]  ;;  %v2123_v15 = vld [vmem:[%s2348_s30 + $0x178] sm:$0xf0]  ;;  %v1706_v19 = vor.u32 %v2100_v1, %v1703_v3 }
  0x41   : > { %1093 = vmatpush.bf16.msrb.mxu3 %v1958_v18  ;;  %v1895_v10 = vld [vmem:[%s2348_s30 + $0x24c] sm:$0xf0]  ;;  %v2147_v18 = vld [vmem:[%s2348_s30 + $0x238] sm:$0xf0]  ;;  %v1802_v20 = vor.u32 %v2124_v4, %v1799_v6  ;;  %v1685_v27 = vld [vmem:[%s2348_s30 + $0x98] sm:$0xf] }
  0x42   : > { %1052 = vmatpush.bf16.msrb.mxu0 %v1658_v24  ;;  %v1697_v11 = vld [vmem:[%s2348_s30 + $0xb0] sm:$0xf]  ;;  %v2171_v22 = vld [vmem:[%s2348_s30 + $0x2f8] sm:$0xf0]  ;;  %v1898_v23 = vor.u32 %v2148_v7, %v1895_v10  ;;  %v2096_v28 = vld [vmem:[%s2348_s30 + $0xa0] sm:$0xf0] }
  0x43   : > { %1066 = vmatpush.bf16.msrb.mxu1 %v1754_v25  ;;  %v1793_v13 = vld [vmem:[%s2348_s30 + $0x170] sm:$0xf]  ;;  %v1698_v24 = vor.u32 %v2099_v12, %v1697_v11  ;;  %v1781_v29 = vld [vmem:[%s2348_s30 + $0x158] sm:$0xf]  ;;  %v2120_v31 = vld [vmem:[%s2348_s30 + $0x160] sm:$0xf0] }
  0x44   : > { %1080 = vmatpush.bf16.msrb.mxu2 %v1850_v26  ;;  %v1889_v16 = vld [vmem:[%s2348_s30 + $0x230] sm:$0xf]  ;;  %v1794_v25 = vor.u32 %v2123_v15, %v1793_v13  ;;  %v1877_v32 = vld [vmem:[%s2348_s30 + $0x218] sm:$0xf]  ;;  %v2144_v33 = vld [vmem:[%s2348_s30 + $0x220] sm:$0xf0] }
  0x45   : > { %1094 = vmatpush.bf16.msrb.mxu3 %v1946_v30  ;;  %v1985_v21 = vld [vmem:[%s2348_s30 + $0x2f0] sm:$0xf]  ;;  %v1890_v26 = vor.u32 %v2147_v18, %v1889_v16  ;;  %v1973_v34 = vld [vmem:[%s2348_s30 + $0x2d8] sm:$0xf]  ;;  %v2168_v35 = vld [vmem:[%s2348_s30 + $0x2e0] sm:$0xf0] }
  0x46   : > { %1053 = vmatpush.bf16.msrb.mxu0 %v1646_v36  ;;  %v1986_v30 = vor.u32 %v2171_v22, %v1985_v21  ;;  %v1686_v36 = vor.u32 %v2096_v28, %v1685_v27  ;;  %v1673_v39 = vld [vmem:[%s2348_s30 + $0x80] sm:$0xf]  ;;  %v2093_v40 = vld [vmem:[%s2348_s30 + $0x88] sm:$0xf0]  ;;  %v1661_v51 = vld [vmem:[%s2348_s30 + $0x68] sm:$0xf] }
  0x47   : > { %1067 = vmatpush.bf16.msrb.mxu1 %v1742_v37  ;;  %v1782_v37 = vor.u32 %v2120_v31, %v1781_v29  ;;  %v1769_v41 = vld [vmem:[%s2348_s30 + $0x140] sm:$0xf]  ;;  %v2117_v43 = vld [vmem:[%s2348_s30 + $0x148] sm:$0xf0]  ;;  %v2090_v52 = vld [vmem:[%s2348_s30 + $0x70] sm:$0xf0] }
  0x48   : > { %1081 = vmatpush.bf16.msrb.mxu2 %v1838_v38  ;;  %v1878_v38 = vor.u32 %v2144_v33, %v1877_v32  ;;  %v1865_v44 = vld [vmem:[%s2348_s30 + $0x200] sm:$0xf]  ;;  %v2141_v45 = vld [vmem:[%s2348_s30 + $0x208] sm:$0xf0]  ;;  %v1757_v53 = vld [vmem:[%s2348_s30 + $0x128] sm:$0xf] }
  0x49   : > { %1095 = vmatpush.bf16.msrb.mxu3 %v1934_v42  ;;  %v1974_v42 = vor.u32 %v2168_v35, %v1973_v34  ;;  %v1961_v46 = vld [vmem:[%s2348_s30 + $0x2c0] sm:$0xf]  ;;  %v2165_v47 = vld [vmem:[%s2348_s30 + $0x2c8] sm:$0xf0]  ;;  %v2114_v55 = vld [vmem:[%s2348_s30 + $0x130] sm:$0xf0] }
  0x4a   : > { %1054 = vmatpush.bf16.msrb.mxu0 %v1634_v48  ;;  %v1674_v48 = vor.u32 %v2093_v40, %v1673_v39  ;;  %v1853_v56 = vld [vmem:[%s2348_s30 + $0x1e8] sm:$0xf]  ;;  %v2138_v57 = vld [vmem:[%s2348_s30 + $0x1f0] sm:$0xf0]  ;;  %v1758_v61 = vor.u32 %v2114_v55, %v1757_v53  ;;  %v1745_v1 = vld [vmem:[%s2348_s30 + $0x110] sm:$0xf] }
  0x4b   : > { %1068 = vmatpush.bf16.msrb.mxu1 %v1730_v49  ;;  %v1770_v49 = vor.u32 %v2117_v43, %v1769_v41  ;;  %v1949_v58 = vld [vmem:[%s2348_s30 + $0x2a8] sm:$0xf]  ;;  %v2162_v59 = vld [vmem:[%s2348_s30 + $0x2b0] sm:$0xf0]  ;;  %v1854_v62 = vor.u32 %v2138_v57, %v1853_v56  ;;  %v2111_v4 = vld [vmem:[%s2348_s30 + $0x118] sm:$0xf0] }
  0x4c   : > { %1082 = vmatpush.bf16.msrb.mxu2 %v1826_v50  ;;  %v1866_v50 = vor.u32 %v2141_v45, %v1865_v44  ;;  %v1950_v3 = vor.u32 %v2162_v59, %v1949_v58  ;;  %v2135_v6 = vld [vmem:[%s2348_s30 + $0x1d8] sm:$0xf0]  ;;  %v1937_v7 = vld [vmem:[%s2348_s30 + $0x290] sm:$0xf]  ;;  %v1746_v12 = vor.u32 %v2111_v4, %v1745_v1  ;;  %v2084_v15 = vld [vmem:[%s2348_s30 + $0x40] sm:$0xf0] }
  0x4d   : > { %1096 = vmatpush.bf16.msrb.mxu3 %v1922_v54  ;;  %v1962_v54 = vor.u32 %v2165_v47, %v1961_v46  ;;  %v2159_v10 = vld [vmem:[%s2348_s30 + $0x298] sm:$0xf0]  ;;  %v1733_v16 = vld [vmem:[%s2348_s30 + $0xf8] sm:$0xf]  ;;  %v2132_v21 = vld [vmem:[%s2348_s30 + $0x1c0] sm:$0xf0] }
  0x4e   : > { %1055 = vmatpush.bf16.msrb.mxu0 %v1622_v60  ;;  %v1662_v60 = vor.u32 %v2090_v52, %v1661_v51  ;;  %v1938_v18 = vor.u32 %v2159_v10, %v1937_v7  ;;  %v1925_v22 = vld [vmem:[%s2348_s30 + $0x278] sm:$0xf]  ;;  %v1625_v27 = vld [vmem:[%s2348_s30 + $0x20] sm:$0xf]  ;;  %v2081_v28 = vld [vmem:[%s2348_s30 + $0x28] sm:$0xf0] }
  0x4f   : > { %1069 = vmatpush.bf16.msrb.mxu1 %v1718_v63  ;;  %v1649_v63 = vld [vmem:[%s2348_s30 + $0x50] sm:$0xf]  ;;  %v1721_v29 = vld [vmem:[%s2348_s30 + $0xe0] sm:$0xf]  ;;  %v2105_v31 = vld [vmem:[%s2348_s30 + $0xe8] sm:$0xf0] }
  0x50   : > { %1083 = vmatpush.bf16.msrb.mxu2 %v1814_v0  ;;  %v2087_v0 = vld [vmem:[%s2348_s30 + $0x58] sm:$0xf0]  ;;  %v1817_v32 = vld [vmem:[%s2348_s30 + $0x1a0] sm:$0xf]  ;;  %v2129_v33 = vld [vmem:[%s2348_s30 + $0x1a8] sm:$0xf0] }
  0x51   : > { %1097 = vmatpush.bf16.msrb.mxu3 %v1910_v5  ;;  %v1841_v5 = vld [vmem:[%s2348_s30 + $0x1d0] sm:$0xf]  ;;  %v1650_v11 = vor.u32 %v2087_v0, %v1649_v63  ;;  %v1913_v34 = vld [vmem:[%s2348_s30 + $0x260] sm:$0xf]  ;;  %v2153_v35 = vld [vmem:[%s2348_s30 + $0x268] sm:$0xf0] }
  0x52   : > { %1056 = vmatpush.bf16.msrb.mxu0 %v1610_v14  ;;  %v1842_v13 = vor.u32 %v2135_v6, %v1841_v5  ;;  %v1637_v14 = vld [vmem:[%s2348_s30 + $0x38] sm:$0xf]  ;;  %v1613_v39 = vld [vmem:[%s2348_s30 + $0x8] sm:$0xf]  ;;  %v2078_v40 = vld [vmem:[%s2348_s30 + $0x10] sm:$0xf0] }
  0x53   : > { %1070 = vmatpush.bf16.msrb.mxu1 %v1706_v19  ;;  %v2108_v19 = vld [vmem:[%s2348_s30 + $0x100] sm:$0xf0]  ;;  %v1709_v41 = vld [vmem:[%s2348_s30 + $0xc8] sm:$0xf]  ;;  %v2102_v43 = vld [vmem:[%s2348_s30 + $0xd0] sm:$0xf0] }
  0x54   : > { %1084 = vmatpush.bf16.msrb.mxu2 %v1802_v20  ;;  %v1829_v20 = vld [vmem:[%s2348_s30 + $0x1b8] sm:$0xf]  ;;  %v1805_v44 = vld [vmem:[%s2348_s30 + $0x188] sm:$0xf]  ;;  %v2126_v45 = vld [vmem:[%s2348_s30 + $0x190] sm:$0xf0] }
  0x55   : > { %1098 = vmatpush.bf16.msrb.mxu3 %v1898_v23  ;;  %1057 = vmatmul.bf16.vlgmr.msrb.gmra.mxu0 %v2457_v8  ;;  %v2156_v23 = vld [vmem:[%s2348_s30 + $0x280] sm:$0xf0]  ;;  %v1901_v46 = vld [vmem:[%s2348_s30 + $0x248] sm:$0xf]  ;;  %v2150_v47 = vld [vmem:[%s2348_s30 + $0x250] sm:$0xf0] }
  0x56   : > { %1105 = vmatpush.bf16.msra.mxu0 %v1698_v24  ;;  %1071 = vmatmul.bf16.vlgmr.msrb.gmra.mxu1 %v2464_v17  ;;  %v1638_v24 = vor.u32 %v2084_v15, %v1637_v14  ;;  %v1902_v51 = vor.u32 %v2150_v47, %v1901_v46  ;;  %v453_v56 = vld [vmem:[%s302_s27] sm:$0x7]  ;;  %s2194_s28 = smul.u32 3, %s2713_s25 }
  0x57   : > { %1119 = vmatpush.bf16.msra.mxu1 %v1794_v25  ;;  %1085 = vmatmul.bf16.vlgmr.msrb.gmra.mxu2 %v2454_v2  ;;  %v1734_v25 = vor.u32 %v2108_v19, %v1733_v16  ;;  %v455_v57 = vperm.slane %v453_v56, 0  ;;  %s2195_s29 = smul.u32 12, %s2340_s26 }
  0x58   : > { %1133 = vmatpush.bf16.msra.mxu2 %v1890_v26  ;;  %1099 = vmatmul.bf16.vlgmr.msrb.gmra.mxu3 %v2459_v9  ;;  %v1830_v26 = vor.u32 %v2132_v21, %v1829_v20 }
  0x59   : > { %1147 = vmatpush.bf16.msra.mxu3 %v1986_v30  ;;  %v1926_v30 = vor.u32 %v2156_v23, %v1925_v22  ;;  %s310_s30 = sadd.s32 %s2195_s29, %s2194_s28 }
  0x5a   : > { %1106 = vmatpush.bf16.msra.mxu0 %v1686_v36  ;;  %v1626_v36 = vor.u32 %v2081_v28, %v1625_v27  ;;  %s1584_s6 = sshll.u32 %s310_s30, 2 }
  0x5b   : > { %1120 = vmatpush.bf16.msra.mxu1 %v1782_v37  ;;  %v1722_v37 = vor.u32 %v2105_v31, %v1721_v29  ;;  %s2591_s7 = scalar_lea.vmem %s2700_s4, %s1584_s6  ;;  %v457_v29 = vperm.slane %v453_v56, 2 }
  0x5c   : > { %1134 = vmatpush.bf16.msra.mxu2 %v1878_v38  ;;  %v1818_v38 = vor.u32 %v2129_v33, %v1817_v32 }
  0x5d   : > { %1148 = vmatpush.bf16.msra.mxu3 %v1974_v42  ;;  %v1914_v42 = vor.u32 %v2153_v35, %v1913_v34 }
  0x5e   : > { %1107 = vmatpush.bf16.msra.mxu0 %v1674_v48  ;;  %v1614_v48 = vor.u32 %v2078_v40, %v1613_v39 }
  0x5f   : > { %1121 = vmatpush.bf16.msra.mxu1 %v1770_v49  ;;  %v1710_v49 = vor.u32 %v2102_v43, %v1709_v41 }
  0x60   : > { %1135 = vmatpush.bf16.msra.mxu2 %v1866_v50  ;;  %v1806_v50 = vor.u32 %v2126_v45, %v1805_v44 }
  0x61   : > { %1149 = vmatpush.bf16.msra.mxu3 %v1962_v54 }
  0x62   : > { %1108 = vmatpush.bf16.msra.mxu0 %v1662_v60  ;;  %v456_v60 = vperm.slane %v453_v56, 1 }
  0x63   : > { %1122 = vmatpush.bf16.msra.mxu1 %v1758_v61 }
  0x64   : > { %1136 = vmatpush.bf16.msra.mxu2 %v1854_v62 }
  0x65   : > { %1150 = vmatpush.bf16.msra.mxu3 %v1950_v3 }
  0x66   : > { %1109 = vmatpush.bf16.msra.mxu0 %v1650_v11 }
  0x67   : > { %1123 = vmatpush.bf16.msra.mxu1 %v1746_v12 }
  0x68   : > { %1137 = vmatpush.bf16.msra.mxu2 %v1842_v13 }
  0x69   : > { %1151 = vmatpush.bf16.msra.mxu3 %v1938_v18 }
  0x6a   : > { %1110 = vmatpush.bf16.msra.mxu0 %v1638_v24 }
  0x6b   : > { %1124 = vmatpush.bf16.msra.mxu1 %v1734_v25 }
  0x6c   : > { %1138 = vmatpush.bf16.msra.mxu2 %v1830_v26 }
  0x6d   : > { %1152 = vmatpush.bf16.msra.mxu3 %v1926_v30 }
  0x6e   : > { %1111 = vmatpush.bf16.msra.mxu0 %v1626_v36 }
  0x6f   : > { %1125 = vmatpush.bf16.msra.mxu1 %v1722_v37 }
  0x70   : > { %1139 = vmatpush.bf16.msra.mxu2 %v1818_v38 }
  0x71   : > { %1153 = vmatpush.bf16.msra.mxu3 %v1914_v42 }
  0x72   : > { %1112 = vmatpush.bf16.msra.mxu0 %v1614_v48 }
  0x73   : > { %1126 = vmatpush.bf16.msra.mxu1 %v1710_v49 }
  0x74   : > { %1140 = vmatpush.bf16.msra.mxu2 %v1806_v50 }
  0x75   : > { %1154 = vmatpush.bf16.msra.mxu3 %v1902_v51  ;;  %1113 = vmatmul.bf16.vlgmr.msra.gmra.mxu0 %v2457_v8 }
  0x76   : > { %1127 = vmatmul.bf16.vlgmr.msra.gmra.mxu1 %v2464_v17 }
  0x77   : > { %1141 = vmatmul.bf16.vlgmr.msra.gmra.mxu2 %v2454_v2 }
  0x78   : > { %1155 = vmatmul.bf16.vlgmr.msra.gmra.mxu3 %v2459_v9 }
  0xb2   : > { %v1002_v52 = vpop.f32.mrf.mxu0 }
  0xb3   : > { %v1016_v53 = vpop.f32.mrf.mxu1  ;;  %v1003_v17 = vadd.f32 %v1002_v52, %v455_v57 }
  0xb5   : > { %v1017_v9 = vadd.f32 %v1016_v53, %v1003_v17 }
  0xba   : > { %v1030_v54 = vpop.f32.mrf.mxu2  ;;  %v1004_v8 = vpop.f32.mrf.mxu0 }
  0xbb   : > { %v1044_v55 = vpop.f32.mrf.mxu3  ;;  %v1018_v58 = vpop.f32.mrf.mxu1  ;;  %v1031_v0 = vadd.f32 %v1030_v54, %v1017_v9  ;;  %v1005_v1 = vadd.f32 %v1004_v8, %v455_v57 }
  0xbd   : > { %v1045_v5 = vadd.f32 %v1044_v55, %v1031_v0  ;;  %v1019_v6 = vadd.f32 %v1018_v58, %v1005_v1 }
  0xbf   : > { %v2584_v15 = vmax.f32 %v1045_v5, 0.0 }
  0xc2   : > { %v1032_v59 = vpop.f32.mrf.mxu2 }
  0xc3   : > { %v1046_v2 = vpop.f32.mrf.mxu3  ;;  %v1033_v16 = vadd.f32 %v1032_v59, %v1019_v6 }
  0xc5   : > { %v1047_v22 = vadd.f32 %v1046_v2, %v1033_v16 }
  0xc7   : > { %v2596_v26 = vmax.f32 %v1047_v22, 0.0 }
  0xd2   : > { %v1058_v61 = vpop.f32.mrf.mxu0 }
  0xd3   : > { %v1059_v62 = vadd.f32 %v1058_v61, %v456_v60  ;;  %v1072_v63 = vpop.f32.mrf.mxu1 }
  0xd5   : > { %v1073_v3 = vadd.f32 %v1072_v63, %v1059_v62 }
  0xda   : > { %v1086_v4 = vpop.f32.mrf.mxu2  ;;  %v1060_v12 = vpop.f32.mrf.mxu0 }
  0xdb   : > { %v1087_v7 = vadd.f32 %v1086_v4, %v1073_v3  ;;  %v1100_v10 = vpop.f32.mrf.mxu3  ;;  %v1061_v13 = vadd.f32 %v1060_v12, %v456_v60  ;;  %v1074_v14 = vpop.f32.mrf.mxu1 }
  0xdd   : > { %v1101_v11 = vadd.f32 %v1100_v10, %v1087_v7  ;;  %v1075_v19 = vadd.f32 %v1074_v14, %v1061_v13 }
  0xdf   : > { %v2586_v18 = vmax.f32 %v1101_v11, 0.0 }
  0xe1   : > { %v1167_v20 = vpack.c.bf16 %v2586_v18, %v2584_v15 }
  0xe2   : > { %v1088_v21 = vpop.f32.mrf.mxu2 }
  0xe3   : > { %1171 = vst [vmem:[%s2591_s7] sm:$0xff] %v1167_v20  ;;  %v1089_v23 = vadd.f32 %v1088_v21, %v1075_v19  ;;  %v1102_v24 = vpop.f32.mrf.mxu3 }
  0xe5   : > { %v1103_v25 = vadd.f32 %v1102_v24, %v1089_v23 }
  0xe7   : > { %v2598_v27 = vmax.f32 %v1103_v25, 0.0 }
  0xe9   : > { %v1169_v28 = vpack.c.bf16 %v2598_v27, %v2596_v26 }
  0xeb   : > { %1174 = vst [vmem:[%s2591_s7 + $0xc] sm:$0xff] %v1169_v28 }
  0xf2   : > { %v1114_v30 = vpop.f32.mrf.mxu0 }
  0xf3   : > { %v1115_v31 = vadd.f32 %v1114_v30, %v457_v29  ;;  %v1128_v32 = vpop.f32.mrf.mxu1 }
  0xf5   : > { %v1129_v33 = vadd.f32 %v1128_v32, %v1115_v31 }
  0xfa   : > { %v1142_v34 = vpop.f32.mrf.mxu2  ;;  %v1116_v37 = vpop.f32.mrf.mxu0 }
  0xfb   : > { %v1143_v35 = vadd.f32 %v1142_v34, %v1129_v33  ;;  %v1156_v36 = vpop.f32.mrf.mxu3  ;;  %v1117_v39 = vadd.f32 %v1116_v37, %v457_v29  ;;  %v1130_v41 = vpop.f32.mrf.mxu1 }
  0xfd   : > { %v1157_v38 = vadd.f32 %v1156_v36, %v1143_v35  ;;  %v1131_v43 = vadd.f32 %v1130_v41, %v1117_v39 }
  0xff   : > { %v1163_v40 = vmax.f32 %v1157_v38, 0.0 }
 0x101   : > { %v1168_v42 = vpack.c.bf16 %v1163_v40, %v1163_v40 }
 0x102   : > { %v1144_v44 = vpop.f32.mrf.mxu2 }
 0x103   : > { %1173 = vst.msk [vmem:[%s2591_s7 + $0x8] sm:$0xf] %vm1172_vm0, %v1168_v42  ;;  %v1145_v45 = vadd.f32 %v1144_v44, %v1131_v43  ;;  %v1158_v46 = vpop.f32.mrf.mxu3 }
 0x105   : > { %v1159_v47 = vadd.f32 %v1158_v46, %v1145_v45 }
 0x107   : > { %v1166_v48 = vmax.f32 %v1159_v47, 0.0  ;;  %1179 = sbr.rel (%p1987_p7) target bundleno = 274 (0x112), region = 40 }
 0x109   : > { %v1170_v49 = vpack.c.bf16 %v1166_v48, %v1166_v48 }
 0x10b   : > { %1175 = vst.msk [vmem:[%s2591_s7 + $0x14] sm:$0xf] %vm1172_vm0, %v1170_v49 }
 0x10c   : > { %1180 = vst [vmem:[#allocation2] sm:$0xff] %v2584_v15  ;;  %vm1182_vm1 = vcmask 523264  }
 0x10d   : > { %1181 = vst [vmem:[#allocation2 + $0x8] sm:$0xff] %v2586_v18 }
 0x10e   : > { %1183 = vst.msk [vmem:[#allocation2 + $0x10] sm:$0xff] %vm1182_vm1, %v1163_v40 }
 0x10f   : > { %1186 = vst.msk [vmem:[#allocation2 + $0x28] sm:$0xff] %vm1182_vm1, %v1166_v48 }
 0x110   : > { %1184 = vst [vmem:[#allocation2 + $0x18] sm:$0xff] %v2596_v26 }
 0x111   : > { %1185 = vst [vmem:[#allocation2 + $0x20] sm:$0xff] %v2598_v27 }
 0x112 PF: > { %p1988_p8 = scmp.ne.s32.totalorder %s2258_s18, 1 }
 0x114   : > { %1190 = sbr.rel (%p1988_p8) target bundleno = 455 (0x1c7), region = 44 }
 0x119   : > { %v2179_v50 = vld [vmem:[%s2699_s3 + $0x38] sm:$0xff]  ;;  %v2178_v53 = vld [vmem:[%s2699_s3 + $0x30] sm:$0xff]  ;;  %v2177_v56 = vld [vmem:[%s2699_s3 + $0x28] sm:$0xff]  ;;  %vm1366_vm2 = vcmask 523264  }
 0x11a   : > { %v2187_v51 = vld [vmem:[%s2699_s3 + $0x78] sm:$0xff]  ;;  %1370 = vmatpush.bf16.msra.mxu0 %v2179_v50  ;;  %v2186_v54 = vld [vmem:[%s2699_s3 + $0x70] sm:$0xff]  ;;  %v2185_v57 = vld [vmem:[%s2699_s3 + $0x68] sm:$0xff] }
 0x11b   : > { %v2191_v52 = vld [vmem:[%s2699_s3 + $0x98] sm:$0xff]  ;;  %1384 = vmatpush.bf16.msra.mxu1 %v2187_v51  ;;  %v2190_v55 = vld [vmem:[%s2699_s3 + $0x90] sm:$0xff]  ;;  %v2189_v8 = vld [vmem:[%s2699_s3 + $0x88] sm:$0xff] }
 0x11c   : > { %1402 = vmatpush.bf16.msra.mxu2 %v2191_v52  ;;  %v1193_v58 = vld [vmem:[#allocation2 + $0x10] sm:$0xff]  ;;  %v1196_v17 = vld [vmem:[#allocation2 + $0x28] sm:$0xff]  ;;  %v2176_v59 = vld [vmem:[%s2699_s3 + $0x20] sm:$0xff] }
 0x11d   : > { %v2184_v2 = vld [vmem:[%s2699_s3 + $0x60] sm:$0xff]  ;;  %v1199_v9 = vadd.f32 %v1193_v58, %v1163_v40  ;;  %v1202_v61 = vadd.f32 %v1196_v17, %v1166_v48  ;;  %v2175_v62 = vld [vmem:[%s2699_s3 + $0x18] sm:$0xff]  ;;  %v2174_v1 = vld [vmem:[%s2699_s3 + $0x10] sm:$0xff] }
 0x11e   : > { %1371 = vmatpush.bf16.msra.mxu0 %v2178_v53  ;;  %v2188_v60 = vld [vmem:[%s2699_s3 + $0x80] sm:$0xff]  ;;  %v2183_v63 = vld [vmem:[%s2699_s3 + $0x58] sm:$0xff]  ;;  %v2182_v3 = vld [vmem:[%s2699_s3 + $0x50] sm:$0xff] }
 0x11f   : > { %1385 = vmatpush.bf16.msra.mxu1 %v2186_v54  ;;  %v1205_v0 = vpack.c.bf16 %v1202_v61, %v1199_v9  ;;  %v2173_v4 = vld [vmem:[%s2699_s3 + $0x8] sm:$0xff]  ;;  %v1191_v6 = vld [vmem:[#allocation2] sm:$0xff]  ;;  %v1194_v7 = vld [vmem:[#allocation2 + $0x18] sm:$0xff] }
 0x120   : > { %1403 = vmatpush.bf16.msra.mxu2 %v2190_v55  ;;  %v2181_v5 = vld [vmem:[%s2699_s3 + $0x48] sm:$0xff]  ;;  %v1195_v11 = vld [vmem:[#allocation2 + $0x20] sm:$0xff]  ;;  %v1197_v12 = vadd.f32 %v1191_v6, %v2584_v15  ;;  %v1200_v13 = vadd.f32 %v1194_v7, %v2596_v26 }
 0x121   : > { %v1192_v10 = vld [vmem:[#allocation2 + $0x8] sm:$0xff]  ;;  %v1201_v16 = vadd.f32 %v1195_v11, %v2598_v27  ;;  %v2172_v19 = vld [vmem:[%s2699_s3] sm:$0xff] }
 0x122   : > { %1372 = vmatpush.bf16.msra.mxu0 %v2177_v56  ;;  %v1198_v14 = vadd.f32 %v1192_v10, %v2586_v18  ;;  %v2180_v20 = vld [vmem:[%s2699_s3 + $0x40] sm:$0xff]  ;;  %v1203_v21 = vpack.c.bf16 %v1200_v13, %v1197_v12 }
 0x123   : > { %1386 = vmatpush.bf16.msra.mxu1 %v2185_v57 }
 0x124   : > { %1404 = vmatpush.bf16.msra.mxu2 %v2189_v8  ;;  %v1204_v22 = vpack.c.bf16 %v1201_v16, %v1198_v14 }
 0x126   : > { %1373 = vmatpush.bf16.msra.mxu0 %v2176_v59 }
 0x127   : > { %1387 = vmatpush.bf16.msra.mxu1 %v2184_v2 }
 0x128   : > { %1405 = vmatpush.bf16.msra.mxu2 %v2188_v60 }
 0x12a   : > { %1374 = vmatpush.bf16.msra.mxu0 %v2175_v62 }
 0x12b   : > { %1388 = vmatpush.bf16.msra.mxu1 %v2183_v63  ;;  %2069 = vmatmul.msk.bf16.vlgmr.msra.gmra.mxu2 %vm1366_vm2, %v1205_v0 }
 0x12e   : > { %1375 = vmatpush.bf16.msra.mxu0 %v2174_v1 }
 0x12f   : > { %1389 = vmatpush.bf16.msra.mxu1 %v2182_v3 }
 0x132   : > { %1376 = vmatpush.bf16.msra.mxu0 %v2173_v4 }
 0x133   : > { %1390 = vmatpush.bf16.msra.mxu1 %v2181_v5 }
 0x136   : > { %1377 = vmatpush.bf16.msra.mxu0 %v2172_v19 }
 0x137   : > { %1391 = vmatpush.bf16.msra.mxu1 %v2180_v20 }
 0x139   : > { %1378 = vmatmul.bf16.vlgmr.msra.gmra.mxu0 %v1203_v21 }
 0x13a   : > { %1392 = vmatmul.bf16.vlgmr.msra.gmra.mxu1 %v1204_v22 }
 0x1ae   : > { %v1407_v15 = vpop.f32.mrf.mxu2 }
 0x1b6   : > { %v1379_v18 = vpop.f32.mrf.mxu0  ;;  %v1409_v30 = vpop.f32.mrf.mxu2 }
 0x1b7   : > { %v1393_v23 = vpop.f32.mrf.mxu1 }
 0x1b8   : > { %v1394_v24 = vadd.f32 %v1393_v23, %v1379_v18 }
 0x1ba   : > { %v1408_v25 = vadd.f32 %v1407_v15, %v1394_v24 }
 0x1bc   : > { %v1412_v26 = vpack.c.bf16 %v1408_v25, %v1408_v25 }
 0x1be   : > { %1414 = vst.msk [vmem:[%s2359_s9] sm:$0xf] %vm1172_vm0, %v1412_v26  ;;  %v1381_v27 = vpop.f32.mrf.mxu0 }
 0x1bf   : > { %v1395_v28 = vpop.f32.mrf.mxu1 }
 0x1c0   : > { %v1396_v29 = vadd.f32 %v1395_v28, %v1381_v27 }
 0x1c2   : > { %v1410_v31 = vadd.f32 %v1409_v30, %v1396_v29 }
 0x1c4   : > { %v1413_v32 = vpack.c.bf16 %v1410_v31, %v1410_v31 }
 0x1c6   : > { %1415 = vst.msk [vmem:[%s2359_s9 + $0x4] sm:$0xf] %vm1172_vm0, %v1413_v32 }
 0x1c7 PF: > { %s16_s22 = sadd.s32 1, %s2274_s22   ;;  %s2702_s18 = smov %s2266_s20 }
 0x1c8   : > { %p13_p9 = scmp.ge.s32.totalorder %s16_s22, 6   ;;  %s2703_s19 = smov %s2270_s21 }
 0x1c9   : > { %s2704_s20 = smov %s2707_s23  ;;  %s2705_s21 = smov %s2711_s24 }
 0x1ca   :  { %15 = sbr.rel (!%p13_p9) target bundleno = 3 (0x3), region = 92 }

// kernel: encoder_decoder_forward.9
= control target key start
LH: loop header
LB: loop body
LE: loop exit
PB: predicated region body
PF: predicated region fallthrough
CT: control target
= control target key end

     0   :  { %s683_s15 = smov 0   ;;  %s909_s0 = inlined_call_operand.vmem [shape: f32[512,64], index: 0, kind: input, shape index: {}]   ;;  %s910_s1 = inlined_call_operand.vmem [shape: f32[1,64], index: 1, kind: input, shape index: {}]   ;;  %s911_s2 = inlined_call_operand.vmem [shape: bf16[64,8], index: 2, kind: input, shape index: {}]   ;;  %s912_s3 = inlined_call_operand.vmem [shape: f32[1,8], index: 3, kind: input, shape index: {}]   ;;  %s913_s4 = inlined_call_operand.vmem [shape: f32[512,8], index: 4, kind: output, shape index: {}]  }
   0x1 LB: > { %s581_s16 = sadd.s32 4294967295, %s656_s15   ;;  %p585_p0 = scmp.ge.s32.totalorder %s656_s15, 1  ;;  %s656_s15 = sphi %s683_s15, %s14_s15  }
   0x2   : > { %p163_p1 = scmp.lt.s32.totalorder %s656_s15, 3 }
   0x4   : > { %p164_p2 = pnand %p585_p0, %p163_p1 }
   0x5   : > { %s586_s19 = sshll.u32 (!%p164_p2), %s581_s16, 5 }
   0x6   : > { %167 = sbr.rel (%p164_p2) target bundleno = 220 (0xdc), region = 36  ;;  %p190_p3 = scmp.lt.s32.totalorder (!%p164_p2), %s586_s19, 63 }
   0xb   : > { %v627_v0 = vld [vmem:[%s911_s2 + $0x18] sm:$0xff]  ;;  %v626_v1 = vld [vmem:[%s911_s2 + $0x10] sm:$0xff]  ;;  %s915_s19 = smov (!%p190_p3, %s586_s19), 63  ;;  %v702_v2 = vld [vmem:[%s910_s1] ss:$0 sm:$0xff]  ;;  %vm354_vm0 = vcmask 523264  }
   0xc   : > { %407 = vmatpush.bf16.msra.mxu0 %v627_v0  ;;  %628 = vmatpush.bf16.msra.mxu1 %v627_v0  ;;  %s587_s24 = sshll.u32 %s915_s19, 3  ;;  %v625_v3 = vld [vmem:[%s911_s2 + $0x8] sm:$0xff]  ;;  %v624_v18 = vld [vmem:[%s911_s2] sm:$0xff]  ;;  %vm492_vm1 = vcmask 64512  }
   0xd   : > { %629 = vmatpush.bf16.msra.mxu2 %v627_v0  ;;  %630 = vmatpush.bf16.msra.mxu3 %v627_v0  ;;  %s713_s29 = scalar_lea.vmem %s909_s0, %s587_s24  ;;  %s808_s10 = scalar_lea.vmem %s913_s4, %s587_s24 }
   0xe   : > { %v202_v4 = vld [vmem:[%s713_s29] sm:$0xff]  ;;  %v203_v5 = vld [vmem:[%s713_s29 + $0x8] sm:$0xff]  ;;  %v204_v33 = vld [vmem:[%s713_s29 + $0x10] sm:$0xff] }
   0xf   : > { %v210_v6 = vld [vmem:[%s713_s29 + $0x40] sm:$0xff]  ;;  %v238_v7 = vadd.f32 %v702_v2, %v202_v4  ;;  %v239_v8 = vadd.f32 %v702_v2, %v203_v5  ;;  %v211_v9 = vld [vmem:[%s713_s29 + $0x48] sm:$0xff]  ;;  %v205_v34 = vld [vmem:[%s713_s29 + $0x18] sm:$0xff]  ;;  %v240_v41 = vadd.f32 %v702_v2, %v204_v33 }
  0x10   : > { %408 = vmatpush.bf16.msra.mxu0 %v626_v1  ;;  %631 = vmatpush.bf16.msra.mxu1 %v626_v1  ;;  %v246_v10 = vadd.f32 %v702_v2, %v210_v6  ;;  %v218_v11 = vld [vmem:[%s713_s29 + $0x80] sm:$0xff]  ;;  %v219_v12 = vld [vmem:[%s713_s29 + $0x88] sm:$0xff]  ;;  %v247_v13 = vadd.f32 %v702_v2, %v211_v9  ;;  %v212_v35 = vld [vmem:[%s713_s29 + $0x50] sm:$0xff]  ;;  %v241_v42 = vadd.f32 %v702_v2, %v205_v34 }
  0x11   : > { %632 = vmatpush.bf16.msra.mxu2 %v626_v1  ;;  %633 = vmatpush.bf16.msra.mxu3 %v626_v1  ;;  %v254_v14 = vadd.f32 %v702_v2, %v218_v11  ;;  %v255_v15 = vadd.f32 %v702_v2, %v219_v12  ;;  %v226_v16 = vld [vmem:[%s713_s29 + $0xc0] sm:$0xff]  ;;  %v227_v17 = vld [vmem:[%s713_s29 + $0xc8] sm:$0xff]  ;;  %v270_v19 = vmax.f32 %v238_v7, 0.0  ;;  %v271_v20 = vmax.f32 %v239_v8, 0.0  ;;  %v213_v36 = vld [vmem:[%s713_s29 + $0x58] sm:$0xff] }
  0x12   : > { %v278_v21 = vmax.f32 %v246_v10, 0.0  ;;  %v262_v22 = vadd.f32 %v702_v2, %v226_v16  ;;  %v279_v23 = vmax.f32 %v247_v13, 0.0  ;;  %v263_v26 = vadd.f32 %v702_v2, %v227_v17  ;;  %v220_v37 = vld [vmem:[%s713_s29 + $0x90] sm:$0xff]  ;;  %v221_v38 = vld [vmem:[%s713_s29 + $0x98] sm:$0xff]  ;;  %v206_v61 = vld [vmem:[%s713_s29 + $0x20] sm:$0xff] }
  0x13   : > { %v286_v24 = vmax.f32 %v254_v14, 0.0  ;;  %v287_v25 = vmax.f32 %v255_v15, 0.0  ;;  %v302_v28 = vpack.c.bf16 %v271_v20, %v270_v19  ;;  %v228_v39 = vld [vmem:[%s713_s29 + $0xd0] sm:$0xff]  ;;  %v229_v40 = vld [vmem:[%s713_s29 + $0xd8] sm:$0xff]  ;;  %v248_v43 = vadd.f32 %v702_v2, %v212_v35  ;;  %v207_v62 = vld [vmem:[%s713_s29 + $0x28] sm:$0xff] }
  0x14   : > { %409 = vmatpush.bf16.msra.mxu0 %v625_v3  ;;  %634 = vmatpush.bf16.msra.mxu1 %v625_v3  ;;  %v294_v27 = vmax.f32 %v262_v22, 0.0  ;;  %v306_v29 = vpack.c.bf16 %v279_v23, %v278_v21  ;;  %v295_v30 = vmax.f32 %v263_v26, 0.0  ;;  %v249_v44 = vadd.f32 %v702_v2, %v213_v36  ;;  %v214_v63 = vld [vmem:[%s713_s29 + $0x60] sm:$0xff]  ;;  %v215_v0 = vld [vmem:[%s713_s29 + $0x68] sm:$0xff]  ;;  %v208_v26 = vld [vmem:[%s713_s29 + $0x30] sm:$0xff] }
  0x15   : > { %635 = vmatpush.bf16.msra.mxu2 %v625_v3  ;;  %636 = vmatpush.bf16.msra.mxu3 %v625_v3  ;;  %v310_v31 = vpack.c.bf16 %v287_v25, %v286_v24  ;;  %v256_v45 = vadd.f32 %v702_v2, %v220_v37  ;;  %v257_v46 = vadd.f32 %v702_v2, %v221_v38  ;;  %v272_v49 = vmax.f32 %v240_v41, 0.0  ;;  %v222_v1 = vld [vmem:[%s713_s29 + $0xa0] sm:$0xff]  ;;  %v223_v3 = vld [vmem:[%s713_s29 + $0xa8] sm:$0xff]  ;;  %v233_v33 = vld [vmem:[%s713_s29 + $0xf8] sm:$0xff] }
  0x16   : > { %v314_v32 = vpack.c.bf16 %v295_v30, %v294_v27  ;;  %v264_v47 = vadd.f32 %v702_v2, %v228_v39  ;;  %v265_v48 = vadd.f32 %v702_v2, %v229_v40  ;;  %v273_v50 = vmax.f32 %v241_v42, 0.0  ;;  %v230_v4 = vld [vmem:[%s713_s29 + $0xe0] sm:$0xff]  ;;  %v231_v5 = vld [vmem:[%s713_s29 + $0xe8] sm:$0xff]  ;;  %v209_v27 = vld [vmem:[%s713_s29 + $0x38] sm:$0xff] }
  0x17   : > { %v280_v51 = vmax.f32 %v248_v43, 0.0  ;;  %v281_v52 = vmax.f32 %v249_v44, 0.0  ;;  %v288_v53 = vmax.f32 %v256_v45, 0.0  ;;  %v289_v54 = vmax.f32 %v257_v46, 0.0  ;;  %v224_v30 = vld [vmem:[%s713_s29 + $0xb0] sm:$0xff] }
  0x18   : > { %410 = vmatpush.bf16.msra.mxu0 %v624_v18  ;;  %637 = vmatpush.bf16.msra.mxu1 %v624_v18  ;;  %v296_v55 = vmax.f32 %v264_v47, 0.0  ;;  %v297_v56 = vmax.f32 %v265_v48, 0.0  ;;  %v303_v57 = vpack.c.bf16 %v273_v50, %v272_v49  ;;  %v242_v6 = vadd.f32 %v702_v2, %v206_v61 }
  0x19   : > { %638 = vmatpush.bf16.msra.mxu2 %v624_v18  ;;  %639 = vmatpush.bf16.msra.mxu3 %v624_v18  ;;  %v307_v58 = vpack.c.bf16 %v281_v52, %v280_v51  ;;  %v311_v59 = vpack.c.bf16 %v289_v54, %v288_v53  ;;  %v243_v7 = vadd.f32 %v702_v2, %v207_v62 }
  0x1a   : > { %v315_v60 = vpack.c.bf16 %v297_v56, %v296_v55  ;;  %v250_v8 = vadd.f32 %v702_v2, %v214_v63  ;;  %v251_v9 = vadd.f32 %v702_v2, %v215_v0  ;;  %v258_v10 = vadd.f32 %v702_v2, %v222_v1 }
  0x1b   : > { %606 = vmatmul.msk.bf16.vlgmr.msra.gmra.mxu0 %vm354_vm0, %v302_v28  ;;  %610 = vmatmul.msk.bf16.vlgmr.msra.gmra.mxu1 %vm354_vm0, %v306_v29  ;;  %v259_v11 = vadd.f32 %v702_v2, %v223_v3  ;;  %v266_v12 = vadd.f32 %v702_v2, %v230_v4  ;;  %v267_v13 = vadd.f32 %v702_v2, %v231_v5  ;;  %v274_v14 = vmax.f32 %v242_v6, 0.0  ;;  %v216_v28 = vld [vmem:[%s713_s29 + $0x70] sm:$0xff]  ;;  %v217_v29 = vld [vmem:[%s713_s29 + $0x78] sm:$0xff] }
  0x1c   : > { %614 = vmatmul.msk.bf16.vlgmr.msra.gmra.mxu2 %vm354_vm0, %v310_v31  ;;  %618 = vmatmul.msk.bf16.vlgmr.msra.gmra.mxu3 %vm354_vm0, %v314_v32  ;;  %v275_v15 = vmax.f32 %v243_v7, 0.0  ;;  %v282_v16 = vmax.f32 %v250_v8, 0.0  ;;  %v283_v17 = vmax.f32 %v251_v9, 0.0  ;;  %v290_v18 = vmax.f32 %v258_v10, 0.0  ;;  %v225_v31 = vld [vmem:[%s713_s29 + $0xb8] sm:$0xff]  ;;  %v232_v32 = vld [vmem:[%s713_s29 + $0xf0] sm:$0xff] }
  0x1d   : > { %v291_v19 = vmax.f32 %v259_v11, 0.0  ;;  %v298_v20 = vmax.f32 %v266_v12, 0.0  ;;  %v299_v21 = vmax.f32 %v267_v13, 0.0  ;;  %v244_v34 = vadd.f32 %v702_v2, %v208_v26 }
  0x1e   : > { %v304_v22 = vpack.c.bf16 %v275_v15, %v274_v14  ;;  %v308_v23 = vpack.c.bf16 %v283_v17, %v282_v16  ;;  %v245_v35 = vadd.f32 %v702_v2, %v209_v27  ;;  %v252_v36 = vadd.f32 %v702_v2, %v216_v28 }
  0x1f   : > { %v312_v24 = vpack.c.bf16 %v291_v19, %v290_v18  ;;  %v316_v25 = vpack.c.bf16 %v299_v21, %v298_v20  ;;  %v253_v37 = vadd.f32 %v702_v2, %v217_v29  ;;  %v260_v38 = vadd.f32 %v702_v2, %v224_v30 }
  0x20   : > { %v261_v39 = vadd.f32 %v702_v2, %v225_v31  ;;  %v268_v40 = vadd.f32 %v702_v2, %v232_v32  ;;  %v269_v41 = vadd.f32 %v702_v2, %v233_v33  ;;  %v276_v42 = vmax.f32 %v244_v34, 0.0  ;;  %v801_v2 = vld [vmem:[%s912_s3] ss:$0 sm:$0xff] }
  0x21   : > { %v277_v43 = vmax.f32 %v245_v35, 0.0  ;;  %v284_v44 = vmax.f32 %v252_v36, 0.0  ;;  %v285_v45 = vmax.f32 %v253_v37, 0.0  ;;  %v292_v46 = vmax.f32 %v260_v38, 0.0 }
  0x22   : > { %v293_v47 = vmax.f32 %v261_v39, 0.0  ;;  %v300_v48 = vmax.f32 %v268_v40, 0.0  ;;  %v301_v49 = vmax.f32 %v269_v41, 0.0 }
  0x23   : > { %v305_v50 = vpack.c.bf16 %v277_v43, %v276_v42  ;;  %v309_v51 = vpack.c.bf16 %v285_v45, %v284_v44 }
  0x24   : > { %v313_v52 = vpack.c.bf16 %v293_v47, %v292_v46  ;;  %v317_v53 = vpack.c.bf16 %v301_v49, %v300_v48 }
  0x2b   : > { %607 = vmatmul.msk.bf16.gmra.mxu0 %vm354_vm0, %v303_v57  ;;  %611 = vmatmul.msk.bf16.gmra.mxu1 %vm354_vm0, %v307_v58 }
  0x2c   : > { %615 = vmatmul.msk.bf16.gmra.mxu2 %vm354_vm0, %v311_v59  ;;  %619 = vmatmul.msk.bf16.gmra.mxu3 %vm354_vm0, %v315_v60 }
  0x3b   : > { %608 = vmatmul.msk.bf16.gmra.mxu0 %vm354_vm0, %v304_v22  ;;  %612 = vmatmul.msk.bf16.gmra.mxu1 %vm354_vm0, %v308_v23 }
  0x3c   : > { %616 = vmatmul.msk.bf16.gmra.mxu2 %vm354_vm0, %v312_v24  ;;  %620 = vmatmul.msk.bf16.gmra.mxu3 %vm354_vm0, %v316_v25 }
  0x4b   : > { %609 = vmatmul.msk.bf16.gmra.mxu0 %vm354_vm0, %v305_v50  ;;  %613 = vmatmul.msk.bf16.gmra.mxu1 %vm354_vm0, %v309_v51 }
  0x4c   : > { %617 = vmatmul.msk.bf16.gmra.mxu2 %vm354_vm0, %v313_v52  ;;  %621 = vmatmul.msk.bf16.gmra.mxu3 %vm354_vm0, %v317_v53 }
  0x98   : > { %v412_v54 = vpop.f32.mrf.mxu0  ;;  %v432_v55 = vpop.f32.mrf.mxu1 }
  0x99   : > { %v413_v56 = vadd.f32 %v801_v2, %v412_v54  ;;  %v433_v57 = vadd.f32 %v801_v2, %v432_v55 }
  0x9b   : > { %493 = vst.msk [vmem:[%s808_s10] sm:$0xff] %vm492_vm1, %v413_v56 }
  0x9c   : > { %501 = vst.msk [vmem:[%s808_s10 + $0x40] sm:$0xff] %vm492_vm1, %v433_v57 }
  0x9f   : > { %v452_v58 = vpop.f32.mrf.mxu2  ;;  %v472_v59 = vpop.f32.mrf.mxu3 }
  0xa0   : > { %v453_v60 = vadd.f32 %v801_v2, %v452_v58  ;;  %v473_v61 = vadd.f32 %v801_v2, %v472_v59  ;;  %v414_v62 = vpop.f32.mrf.mxu0  ;;  %v434_v63 = vpop.f32.mrf.mxu1 }
  0xa1   : > { %v415_v0 = vadd.f32 %v801_v2, %v414_v62  ;;  %v435_v1 = vadd.f32 %v801_v2, %v434_v63 }
  0xa2   : > { %509 = vst.msk [vmem:[%s808_s10 + $0x80] sm:$0xff] %vm492_vm1, %v453_v60 }
  0xa3   : > { %517 = vst.msk [vmem:[%s808_s10 + $0xc0] sm:$0xff] %vm492_vm1, %v473_v61 }
  0xa4   : > { %494 = vst.msk [vmem:[%s808_s10 + $0x8] sm:$0xff] %vm492_vm1, %v415_v0 }
  0xa5   : > { %502 = vst.msk [vmem:[%s808_s10 + $0x48] sm:$0xff] %vm492_vm1, %v435_v1 }
  0xa7   : > { %v454_v3 = vpop.f32.mrf.mxu2  ;;  %v474_v4 = vpop.f32.mrf.mxu3 }
  0xa8   : > { %v455_v5 = vadd.f32 %v801_v2, %v454_v3  ;;  %v475_v6 = vadd.f32 %v801_v2, %v474_v4  ;;  %v417_v7 = vpop.f32.mrf.mxu0  ;;  %v437_v8 = vpop.f32.mrf.mxu1 }
  0xa9   : > { %v418_v9 = vadd.f32 %v801_v2, %v417_v7  ;;  %v438_v10 = vadd.f32 %v801_v2, %v437_v8 }
  0xaa   : > { %510 = vst.msk [vmem:[%s808_s10 + $0x88] sm:$0xff] %vm492_vm1, %v455_v5 }
  0xab   : > { %518 = vst.msk [vmem:[%s808_s10 + $0xc8] sm:$0xff] %vm492_vm1, %v475_v6 }
  0xac   : > { %495 = vst.msk [vmem:[%s808_s10 + $0x10] sm:$0xff] %vm492_vm1, %v418_v9 }
  0xad   : > { %503 = vst.msk [vmem:[%s808_s10 + $0x50] sm:$0xff] %vm492_vm1, %v438_v10 }
  0xaf   : > { %v457_v11 = vpop.f32.mrf.mxu2  ;;  %v477_v12 = vpop.f32.mrf.mxu3 }
  0xb0   : > { %v458_v13 = vadd.f32 %v801_v2, %v457_v11  ;;  %v478_v14 = vadd.f32 %v801_v2, %v477_v12  ;;  %v419_v15 = vpop.f32.mrf.mxu0  ;;  %v439_v16 = vpop.f32.mrf.mxu1 }
  0xb1   : > { %v420_v17 = vadd.f32 %v801_v2, %v419_v15  ;;  %v440_v18 = vadd.f32 %v801_v2, %v439_v16 }
  0xb2   : > { %511 = vst.msk [vmem:[%s808_s10 + $0x90] sm:$0xff] %vm492_vm1, %v458_v13 }
  0xb3   : > { %519 = vst.msk [vmem:[%s808_s10 + $0xd0] sm:$0xff] %vm492_vm1, %v478_v14 }
  0xb4   : > { %496 = vst.msk [vmem:[%s808_s10 + $0x18] sm:$0xff] %vm492_vm1, %v420_v17 }
  0xb5   : > { %504 = vst.msk [vmem:[%s808_s10 + $0x58] sm:$0xff] %vm492_vm1, %v440_v18 }
  0xb7   : > { %v459_v19 = vpop.f32.mrf.mxu2  ;;  %v479_v20 = vpop.f32.mrf.mxu3 }
  0xb8   : > { %v460_v21 = vadd.f32 %v801_v2, %v459_v19  ;;  %v480_v22 = vadd.f32 %v801_v2, %v479_v20  ;;  %v422_v23 = vpop.f32.mrf.mxu0  ;;  %v442_v24 = vpop.f32.mrf.mxu1 }
  0xb9   : > { %v423_v25 = vadd.f32 %v801_v2, %v422_v23  ;;  %v443_v26 = vadd.f32 %v801_v2, %v442_v24 }
  0xba   : > { %512 = vst.msk [vmem:[%s808_s10 + $0x98] sm:$0xff] %vm492_vm1, %v460_v21 }
  0xbb   : > { %520 = vst.msk [vmem:[%s808_s10 + $0xd8] sm:$0xff] %vm492_vm1, %v480_v22 }
  0xbc   : > { %497 = vst.msk [vmem:[%s808_s10 + $0x20] sm:$0xff] %vm492_vm1, %v423_v25 }
  0xbd   : > { %505 = vst.msk [vmem:[%s808_s10 + $0x60] sm:$0xff] %vm492_vm1, %v443_v26 }
  0xbf   : > { %v462_v27 = vpop.f32.mrf.mxu2  ;;  %v482_v28 = vpop.f32.mrf.mxu3 }
  0xc0   : > { %v463_v29 = vadd.f32 %v801_v2, %v462_v27  ;;  %v483_v30 = vadd.f32 %v801_v2, %v482_v28  ;;  %v424_v31 = vpop.f32.mrf.mxu0  ;;  %v444_v32 = vpop.f32.mrf.mxu1 }
  0xc1   : > { %v425_v33 = vadd.f32 %v801_v2, %v424_v31  ;;  %v445_v34 = vadd.f32 %v801_v2, %v444_v32 }
  0xc2   : > { %513 = vst.msk [vmem:[%s808_s10 + $0xa0] sm:$0xff] %vm492_vm1, %v463_v29 }
  0xc3   : > { %521 = vst.msk [vmem:[%s808_s10 + $0xe0] sm:$0xff] %vm492_vm1, %v483_v30 }
  0xc4   : > { %498 = vst.msk [vmem:[%s808_s10 + $0x28] sm:$0xff] %vm492_vm1, %v425_v33 }
  0xc5   : > { %506 = vst.msk [vmem:[%s808_s10 + $0x68] sm:$0xff] %vm492_vm1, %v445_v34 }
  0xc7   : > { %v464_v35 = vpop.f32.mrf.mxu2  ;;  %v484_v36 = vpop.f32.mrf.mxu3 }
  0xc8   : > { %v465_v37 = vadd.f32 %v801_v2, %v464_v35  ;;  %v485_v38 = vadd.f32 %v801_v2, %v484_v36  ;;  %v427_v39 = vpop.f32.mrf.mxu0  ;;  %v447_v40 = vpop.f32.mrf.mxu1 }
  0xc9   : > { %v428_v41 = vadd.f32 %v801_v2, %v427_v39  ;;  %v448_v42 = vadd.f32 %v801_v2, %v447_v40 }
  0xca   : > { %514 = vst.msk [vmem:[%s808_s10 + $0xa8] sm:$0xff] %vm492_vm1, %v465_v37 }
  0xcb   : > { %522 = vst.msk [vmem:[%s808_s10 + $0xe8] sm:$0xff] %vm492_vm1, %v485_v38 }
  0xcc   : > { %499 = vst.msk [vmem:[%s808_s10 + $0x30] sm:$0xff] %vm492_vm1, %v428_v41 }
  0xcd   : > { %507 = vst.msk [vmem:[%s808_s10 + $0x70] sm:$0xff] %vm492_vm1, %v448_v42 }
  0xcf   : > { %v467_v43 = vpop.f32.mrf.mxu2  ;;  %v487_v44 = vpop.f32.mrf.mxu3 }
  0xd0   : > { %v468_v45 = vadd.f32 %v801_v2, %v467_v43  ;;  %v488_v46 = vadd.f32 %v801_v2, %v487_v44  ;;  %v429_v47 = vpop.f32.mrf.mxu0  ;;  %v449_v48 = vpop.f32.mrf.mxu1 }
  0xd1   : > { %v430_v49 = vadd.f32 %v801_v2, %v429_v47  ;;  %v450_v50 = vadd.f32 %v801_v2, %v449_v48 }
  0xd2   : > { %515 = vst.msk [vmem:[%s808_s10 + $0xb0] sm:$0xff] %vm492_vm1, %v468_v45 }
  0xd3   : > { %523 = vst.msk [vmem:[%s808_s10 + $0xf0] sm:$0xff] %vm492_vm1, %v488_v46 }
  0xd4   : > { %500 = vst.msk [vmem:[%s808_s10 + $0x38] sm:$0xff] %vm492_vm1, %v430_v49 }
  0xd5   : > { %508 = vst.msk [vmem:[%s808_s10 + $0x78] sm:$0xff] %vm492_vm1, %v450_v50 }
  0xd7   : > { %v469_v51 = vpop.f32.mrf.mxu2  ;;  %v489_v52 = vpop.f32.mrf.mxu3 }
  0xd8   : > { %v470_v53 = vadd.f32 %v801_v2, %v469_v51  ;;  %v490_v54 = vadd.f32 %v801_v2, %v489_v52 }
  0xda   : > { %516 = vst.msk [vmem:[%s808_s10 + $0xb8] sm:$0xff] %vm492_vm1, %v470_v53 }
  0xdb   : > { %524 = vst.msk [vmem:[%s808_s10 + $0xf8] sm:$0xff] %vm492_vm1, %v490_v54 }
  0xdc PF: > { %s14_s15 = sadd.s32 1, %s656_s15  }
  0xdd   : > { %p11_p4 = scmp.ge.s32.totalorder %s14_s15, 4  }
  0xdf   :  { %13 = sbr.rel (!%p11_p4) target bundleno = 1 (0x1), region = 66 }

// kernel: encoder_decoder_forward.8
= control target key start
LH: loop header
LB: loop body
LE: loop exit
PB: predicated region body
PF: predicated region fallthrough
CT: control target
= control target key end

     0   :  { %11 = vsyncpa [#allocation4], 0  ;;  %s6215_s0 = inlined_call_operand.vmem [shape: bf16[2,8,1280], index: 0, kind: input, shape index: {}]   ;;  %s6216_s1 = inlined_call_operand.vmem [shape: bf16[2,1280,512], index: 1, kind: input, shape index: {}]   ;;  %s6217_s2 = inlined_call_operand.vmem [shape: f32[2,1,512], index: 2, kind: input, shape index: {}]   ;;  %s6218_s3 = inlined_call_operand.vmem [shape: bf16[512,64], index: 3, kind: input, shape index: {}]   ;;  %s6219_s4 = inlined_call_operand.hbm [shape: bf16[2,8,512], index: 4, kind: output, shape index: {0}]   ;;  %s6220_s5 = inlined_call_operand.vmem [shape: bf16[8,64], index: 5, kind: output, shape index: {1}]  }
   0x1   :  { %13 = vsyncpa [#allocation4 + $0x1], 0  ;;  %s5228_s18 = smov 0   ;;  %s5230_s19 = smov 0  }
   0x2   :  { %s5232_s20 = smov 0   ;;  %s5234_s21 = smov 0  }
   0x3   :  { %s5236_s22 = smov 0   ;;  %s5238_s23 = smov 0  }
   0x4 LB: > { %s3282_s24 = sadd.s32 4294967295, %s5196_s23   ;;  %s3283_s25 = sadd.s32 4294967294, %s5196_s23   ;;  %s5196_s23 = sphi %s5238_s23, %s19_s23   ;;  %s5192_s22 = sphi %s5236_s22, %s6227_s22   ;;  %s5188_s21 = sphi %s5234_s21, %s6226_s21   ;;  %s5184_s20 = sphi %s5232_s20, %s6225_s20   ;;  %s5180_s19 = sphi %s5230_s19, %s6224_s19   ;;  %s5176_s18 = sphi %s5228_s18, %s6223_s18  }
   0x5   : > { %s28_s26 = sadd.s32 1, %s5192_s22  ;;  %s141_s27 = sadd.s32 1, %s5184_s20 }
   0x6   : > { %p29_p0 = scmp.ge.s32.totalorder %s28_s26, 2  ;;  %p151_p1 = scmp.ne.s32.totalorder %s5184_s20, %s5180_s19 }
   0x7   : > { %p152_p2 = scmp.eq.s32.totalorder %s3282_s24, 1  ;;  %p157_p3 = scmp.ne.s32.totalorder %s5180_s19, %s5176_s18 }
   0x8   : > { %s6229_s26 = smov (%p29_p0, %s28_s26), 0  ;;  %p158_p5 = scmp.eq.s32.totalorder %s3283_s25, 1 }
   0x9   : > { %p5268_p4 = por %p152_p2, %p151_p1  ;;  %s136_s29 = ssub.s32 %s5192_s22, %s6229_s26 }
   0xa   : > { %p3286_p6 = scmp.ge.s32.totalorder %s5196_s23, 1  ;;  %p139_p7 = scmp.eq.s32.totalorder %s136_s29, 0 }
   0xb   : > { %p5275_p8 = por %p158_p5, %p157_p3  ;;  %p232_p9 = scmp.lt.s32.totalorder %s5196_s23, 3 }
   0xc   : > { %s5281_s6 = scalar_select %p139_p7, %s5184_s20, %s141_s27  }
   0xd   : > { %p233_p10 = pnand %p3286_p6, %p232_p9 }
   0xe   : > { %p277_p11 = scmp.lt.s32.totalorder (!%p233_p10), %s5188_s21, 1  ;;  %s268_s27 = sand.u32 (!%p233_p10), 1, %s5180_s19  }
   0xf   : > { %236 = sbr.rel (%p233_p10) target bundleno = 692 (0x2b4), region = 36  ;;  %s6026_s29 = sshll.u32 (!%p233_p10), %s268_s27, 4 }
  0x10   : > { %p4571_p12 = scmp.ne.s32.totalorder (!%p233_p10), %s5188_s21, 0 }
  0x14   : > { %s5285_s7 = scalar_select %p277_p11, %s5188_s21, 1 }
  0x16   : > { %s5061_s8 = smul.u32 2560, %s5285_s7  ;;  %s3290_s16 = sshll.u32 %s5285_s7, 2 }
  0x17   : > { %s5060_s12 = smul.u32 40, %s5285_s7  ;;  %s5700_s25 = scalar_lea.vmem %s6217_s2, %s3290_s16 }
  0x18   : > { %s5291_s11 = scalar_lea.vmem %s6216_s1, %s5061_s8  ;;  %s6050_s7 = scalar_lea.vmem [#allocation3], %s6026_s29 }
  0x19   : > { %v3405_v0 = vld [vmem:[%s5291_s11 + $0xe0] sm:$0xf]  ;;  %v4737_v1 = vld [vmem:[%s5291_s11 + $0xec] sm:$0xf0]  ;;  %s5377_s15 = scalar_lea.vmem %s6215_s0, %s5060_s12 }
  0x1a   : > { %v3533_v2 = vld [vmem:[%s5291_s11 + $0x1e0] sm:$0xf]  ;;  %v3406_v3 = vor.u32 %v4737_v1, %v3405_v0  ;;  %v4769_v4 = vld [vmem:[%s5291_s11 + $0x1ec] sm:$0xf0] }
  0x1b   : > { %v3661_v5 = vld [vmem:[%s5291_s11 + $0x2e0] sm:$0xf]  ;;  %v4801_v6 = vld [vmem:[%s5291_s11 + $0x2ec] sm:$0xf0]  ;;  %v3534_v7 = vor.u32 %v4769_v4, %v3533_v2 }
  0x1c   : > { %v3662_v8 = vor.u32 %v4801_v6, %v3661_v5  ;;  %v3789_v9 = vld [vmem:[%s5291_s11 + $0x3e0] sm:$0xf]  ;;  %v4833_v10 = vld [vmem:[%s5291_s11 + $0x3ec] sm:$0xf0]  ;;  %2269 = vmatpush.bf16.msra.mxu0 %v3406_v3 }
  0x1d   : > { %v3389_v11 = vld [vmem:[%s5291_s11 + $0xc0] sm:$0xf]  ;;  %v3790_v12 = vor.u32 %v4833_v10, %v3789_v9  ;;  %v4733_v13 = vld [vmem:[%s5291_s11 + $0xcc] sm:$0xf0]  ;;  %2282 = vmatpush.bf16.msra.mxu1 %v3534_v7 }
  0x1e   : > { %v3517_v14 = vld [vmem:[%s5291_s11 + $0x1c0] sm:$0xf]  ;;  %v4765_v15 = vld [vmem:[%s5291_s11 + $0x1cc] sm:$0xf0]  ;;  %2295 = vmatpush.bf16.msra.mxu2 %v3662_v8  ;;  %v3390_v16 = vor.u32 %v4733_v13, %v3389_v11 }
  0x1f   : > { %v3518_v17 = vor.u32 %v4765_v15, %v3517_v14  ;;  %v3645_v18 = vld [vmem:[%s5291_s11 + $0x2c0] sm:$0xf]  ;;  %v4797_v19 = vld [vmem:[%s5291_s11 + $0x2cc] sm:$0xf0]  ;;  %2308 = vmatpush.bf16.msra.mxu3 %v3790_v12 }
  0x20   : > { %v3773_v20 = vld [vmem:[%s5291_s11 + $0x3c0] sm:$0xf]  ;;  %v3646_v21 = vor.u32 %v4797_v19, %v3645_v18  ;;  %v4829_v22 = vld [vmem:[%s5291_s11 + $0x3cc] sm:$0xf0]  ;;  %2270 = vmatpush.bf16.msra.mxu0 %v3390_v16 }
  0x21   : > { %v3373_v23 = vld [vmem:[%s5291_s11 + $0xa0] sm:$0xf]  ;;  %v4729_v24 = vld [vmem:[%s5291_s11 + $0xac] sm:$0xf0]  ;;  %v3774_v25 = vor.u32 %v4829_v22, %v3773_v20  ;;  %2283 = vmatpush.bf16.msra.mxu1 %v3518_v17 }
  0x22   : > { %v3501_v26 = vld [vmem:[%s5291_s11 + $0x1a0] sm:$0xf]  ;;  %v4761_v27 = vld [vmem:[%s5291_s11 + $0x1ac] sm:$0xf0]  ;;  %v3374_v29 = vor.u32 %v4729_v24, %v3373_v23  ;;  %2296 = vmatpush.bf16.msra.mxu2 %v3646_v21 }
  0x23   : > { %v3629_v28 = vld [vmem:[%s5291_s11 + $0x2a0] sm:$0xf]  ;;  %v4793_v30 = vld [vmem:[%s5291_s11 + $0x2ac] sm:$0xf0]  ;;  %v3502_v33 = vor.u32 %v4761_v27, %v3501_v26  ;;  %2309 = vmatpush.bf16.msra.mxu3 %v3774_v25 }
  0x24   : > { %v3757_v31 = vld [vmem:[%s5291_s11 + $0x3a0] sm:$0xf]  ;;  %v4825_v32 = vld [vmem:[%s5291_s11 + $0x3ac] sm:$0xf0]  ;;  %v3630_v34 = vor.u32 %v4793_v30, %v3629_v28  ;;  %2271 = vmatpush.bf16.msra.mxu0 %v3374_v29 }
  0x25   : > { %v3357_v35 = vld [vmem:[%s5291_s11 + $0x80] sm:$0xf]  ;;  %v4725_v36 = vld [vmem:[%s5291_s11 + $0x8c] sm:$0xf0]  ;;  %v3758_v38 = vor.u32 %v4825_v32, %v3757_v31  ;;  %2284 = vmatpush.bf16.msra.mxu1 %v3502_v33 }
  0x26   : > { %v3485_v37 = vld [vmem:[%s5291_s11 + $0x180] sm:$0xf]  ;;  %v4757_v39 = vld [vmem:[%s5291_s11 + $0x18c] sm:$0xf0]  ;;  %v3358_v44 = vor.u32 %v4725_v36, %v3357_v35  ;;  %2297 = vmatpush.bf16.msra.mxu2 %v3630_v34 }
  0x27   : > { %v3613_v40 = vld [vmem:[%s5291_s11 + $0x280] sm:$0xf]  ;;  %v4789_v41 = vld [vmem:[%s5291_s11 + $0x28c] sm:$0xf0]  ;;  %v3486_v45 = vor.u32 %v4757_v39, %v3485_v37  ;;  %2310 = vmatpush.bf16.msra.mxu3 %v3758_v38 }
  0x28   : > { %v3741_v42 = vld [vmem:[%s5291_s11 + $0x380] sm:$0xf]  ;;  %v4821_v43 = vld [vmem:[%s5291_s11 + $0x38c] sm:$0xf0]  ;;  %v3614_v46 = vor.u32 %v4789_v41, %v3613_v40  ;;  %2272 = vmatpush.bf16.msra.mxu0 %v3358_v44 }
  0x29   : > { %v3341_v47 = vld [vmem:[%s5291_s11 + $0x60] sm:$0xf]  ;;  %v4721_v48 = vld [vmem:[%s5291_s11 + $0x6c] sm:$0xf0]  ;;  %v3742_v50 = vor.u32 %v4821_v43, %v3741_v42  ;;  %2285 = vmatpush.bf16.msra.mxu1 %v3486_v45 }
  0x2a   : > { %v3469_v49 = vld [vmem:[%s5291_s11 + $0x160] sm:$0xf]  ;;  %v4753_v51 = vld [vmem:[%s5291_s11 + $0x16c] sm:$0xf0]  ;;  %v3342_v56 = vor.u32 %v4721_v48, %v3341_v47  ;;  %2298 = vmatpush.bf16.msra.mxu2 %v3614_v46 }
  0x2b   : > { %v3597_v52 = vld [vmem:[%s5291_s11 + $0x260] sm:$0xf]  ;;  %v4785_v53 = vld [vmem:[%s5291_s11 + $0x26c] sm:$0xf0]  ;;  %v3470_v57 = vor.u32 %v4753_v51, %v3469_v49  ;;  %2311 = vmatpush.bf16.msra.mxu3 %v3742_v50 }
  0x2c   : > { %v3725_v54 = vld [vmem:[%s5291_s11 + $0x360] sm:$0xf]  ;;  %v4817_v55 = vld [vmem:[%s5291_s11 + $0x36c] sm:$0xf0]  ;;  %v3598_v58 = vor.u32 %v4785_v53, %v3597_v52  ;;  %2273 = vmatpush.bf16.msra.mxu0 %v3342_v56 }
  0x2d   : > { %v3325_v59 = vld [vmem:[%s5291_s11 + $0x40] sm:$0xf]  ;;  %v4717_v60 = vld [vmem:[%s5291_s11 + $0x4c] sm:$0xf0]  ;;  %v3726_v62 = vor.u32 %v4817_v55, %v3725_v54  ;;  %2286 = vmatpush.bf16.msra.mxu1 %v3470_v57 }
  0x2e   : > { %v3453_v61 = vld [vmem:[%s5291_s11 + $0x140] sm:$0xf]  ;;  %v4749_v63 = vld [vmem:[%s5291_s11 + $0x14c] sm:$0xf0]  ;;  %v3326_v4 = vor.u32 %v4717_v60, %v3325_v59  ;;  %2299 = vmatpush.bf16.msra.mxu2 %v3598_v58  ;;  %v300_v58 = vld [vmem:[%s5377_s15 + $0x8] sm:$0xff] }
  0x2f   : > { %v3581_v0 = vld [vmem:[%s5291_s11 + $0x240] sm:$0xf]  ;;  %v4781_v1 = vld [vmem:[%s5291_s11 + $0x24c] sm:$0xf0]  ;;  %v3454_v5 = vor.u32 %v4749_v63, %v3453_v61  ;;  %2312 = vmatpush.bf16.msra.mxu3 %v3726_v62  ;;  %v641_v63 = vunpack.c.l.b16 %v300_v58 }
  0x30   : > { %v3709_v2 = vld [vmem:[%s5291_s11 + $0x340] sm:$0xf]  ;;  %v4813_v3 = vld [vmem:[%s5291_s11 + $0x34c] sm:$0xf0]  ;;  %v3582_v6 = vor.u32 %v4781_v1, %v3581_v0  ;;  %2274 = vmatpush.bf16.msra.mxu0 %v3326_v4  ;;  %v642_v0 = vunpack.c.h.b16 %v300_v58 }
  0x31   : > { %v3309_v7 = vld [vmem:[%s5291_s11 + $0x20] sm:$0xf]  ;;  %v4713_v8 = vld [vmem:[%s5291_s11 + $0x2c] sm:$0xf0]  ;;  %v3710_v10 = vor.u32 %v4813_v3, %v3709_v2  ;;  %2287 = vmatpush.bf16.msra.mxu1 %v3454_v5  ;;  %v5390_v4 = vpack.c.b16 %v641_v63, %v641_v63 }
  0x32   : > { %v3437_v9 = vld [vmem:[%s5291_s11 + $0x120] sm:$0xf]  ;;  %v4745_v11 = vld [vmem:[%s5291_s11 + $0x12c] sm:$0xf0]  ;;  %v3310_v16 = vor.u32 %v4713_v8, %v3309_v7  ;;  %2300 = vmatpush.bf16.msra.mxu2 %v3582_v6  ;;  %v5393_v6 = vpack.c.b16 %v642_v0, %v642_v0 }
  0x33   : > { %v3565_v12 = vld [vmem:[%s5291_s11 + $0x220] sm:$0xf]  ;;  %v4777_v13 = vld [vmem:[%s5291_s11 + $0x22c] sm:$0xf0]  ;;  %v3438_v19 = vor.u32 %v4745_v11, %v3437_v9  ;;  %2313 = vmatpush.bf16.msra.mxu3 %v3710_v10 }
  0x34   : > { %v3693_v14 = vld [vmem:[%s5291_s11 + $0x320] sm:$0xf]  ;;  %v4809_v15 = vld [vmem:[%s5291_s11 + $0x32c] sm:$0xf0]  ;;  %v3566_v20 = vor.u32 %v4777_v13, %v3565_v12  ;;  %2275 = vmatpush.bf16.msra.mxu0 %v3310_v16 }
  0x35   : > { %v3293_v17 = vld [vmem:[%s5291_s11] sm:$0xf]  ;;  %v4709_v18 = vld [vmem:[%s5291_s11 + $0xc] sm:$0xf0]  ;;  %v3694_v24 = vor.u32 %v4809_v15, %v3693_v14  ;;  %2288 = vmatpush.bf16.msra.mxu1 %v3438_v19 }
  0x36   : > { %v3421_v21 = vld [vmem:[%s5291_s11 + $0x100] sm:$0xf]  ;;  %v4741_v22 = vld [vmem:[%s5291_s11 + $0x10c] sm:$0xf0]  ;;  %v3294_v31 = vor.u32 %v4709_v18, %v3293_v17  ;;  %2301 = vmatpush.bf16.msra.mxu2 %v3566_v20 }
  0x37   : > { %v3549_v23 = vld [vmem:[%s5291_s11 + $0x200] sm:$0xf]  ;;  %v4773_v25 = vld [vmem:[%s5291_s11 + $0x20c] sm:$0xf0]  ;;  %v3422_v35 = vor.u32 %v4741_v22, %v3421_v21  ;;  %2314 = vmatpush.bf16.msra.mxu3 %v3694_v24 }
  0x38   : > { %v3677_v26 = vld [vmem:[%s5291_s11 + $0x300] sm:$0xf]  ;;  %v4805_v27 = vld [vmem:[%s5291_s11 + $0x30c] sm:$0xf0]  ;;  %v3550_v36 = vor.u32 %v4773_v25, %v3549_v23  ;;  %2276 = vmatpush.bf16.msra.mxu0 %v3294_v31 }
  0x39   : > { %v3917_v28 = vld [vmem:[%s5291_s11 + $0x4e0] sm:$0xf]  ;;  %v4865_v29 = vld [vmem:[%s5291_s11 + $0x4ec] sm:$0xf0]  ;;  %v3678_v39 = vor.u32 %v4805_v27, %v3677_v26  ;;  %2289 = vmatpush.bf16.msra.mxu1 %v3422_v35 }
  0x3a   : > { %v4045_v30 = vld [vmem:[%s5291_s11 + $0x5e0] sm:$0xf]  ;;  %v4897_v32 = vld [vmem:[%s5291_s11 + $0x5ec] sm:$0xf0]  ;;  %v3918_v40 = vor.u32 %v4865_v29, %v3917_v28  ;;  %2302 = vmatpush.bf16.msra.mxu2 %v3550_v36 }
  0x3b   : > { %v4173_v33 = vld [vmem:[%s5291_s11 + $0x6e0] sm:$0xf]  ;;  %v4929_v34 = vld [vmem:[%s5291_s11 + $0x6ec] sm:$0xf0]  ;;  %v4046_v41 = vor.u32 %v4897_v32, %v4045_v30  ;;  %2315 = vmatpush.bf16.msra.mxu3 %v3678_v39 }
  0x3c   : > { %v4301_v37 = vld [vmem:[%s5291_s11 + $0x7e0] sm:$0xf]  ;;  %v4961_v38 = vld [vmem:[%s5291_s11 + $0x7ec] sm:$0xf0]  ;;  %v4174_v42 = vor.u32 %v4929_v34, %v4173_v33  ;;  %2321 = vmatpush.bf16.msrb.mxu0 %v3918_v40 }
  0x3d   : > { %v3901_v43 = vld [vmem:[%s5291_s11 + $0x4c0] sm:$0xf]  ;;  %v4861_v44 = vld [vmem:[%s5291_s11 + $0x4cc] sm:$0xf0]  ;;  %v4302_v46 = vor.u32 %v4961_v38, %v4301_v37  ;;  %2334 = vmatpush.bf16.msrb.mxu1 %v4046_v41  ;;  %2303 = vmatmul.bf16.vlgmr.msra.gmra.mxu2 %v5390_v4 }
  0x3e   : > { %v4029_v45 = vld [vmem:[%s5291_s11 + $0x5c0] sm:$0xf]  ;;  %v4893_v47 = vld [vmem:[%s5291_s11 + $0x5cc] sm:$0xf0]  ;;  %v3902_v52 = vor.u32 %v4861_v44, %v3901_v43  ;;  %2347 = vmatpush.bf16.msrb.mxu2 %v4174_v42  ;;  %2316 = vmatmul.bf16.vlgmr.msra.gmra.mxu3 %v5393_v6 }
  0x3f   : > { %v4157_v48 = vld [vmem:[%s5291_s11 + $0x6c0] sm:$0xf]  ;;  %v4925_v49 = vld [vmem:[%s5291_s11 + $0x6cc] sm:$0xf0]  ;;  %v4030_v54 = vor.u32 %v4893_v47, %v4029_v45  ;;  %2360 = vmatpush.bf16.msrb.mxu3 %v4302_v46 }
  0x40   : > { %v4285_v50 = vld [vmem:[%s5291_s11 + $0x7c0] sm:$0xf]  ;;  %v4957_v51 = vld [vmem:[%s5291_s11 + $0x7cc] sm:$0xf0]  ;;  %v4158_v55 = vor.u32 %v4925_v49, %v4157_v48  ;;  %2322 = vmatpush.bf16.msrb.mxu0 %v3902_v52 }
  0x41   : > { %v3885_v53 = vld [vmem:[%s5291_s11 + $0x4a0] sm:$0xf]  ;;  %v4857_v56 = vld [vmem:[%s5291_s11 + $0x4ac] sm:$0xf0]  ;;  %v4286_v59 = vor.u32 %v4957_v51, %v4285_v50  ;;  %2335 = vmatpush.bf16.msrb.mxu1 %v4030_v54 }
  0x42   : > { %v4013_v57 = vld [vmem:[%s5291_s11 + $0x5a0] sm:$0xf]  ;;  %v4889_v60 = vld [vmem:[%s5291_s11 + $0x5ac] sm:$0xf0]  ;;  %v3886_v3 = vor.u32 %v4857_v56, %v3885_v53  ;;  %2348 = vmatpush.bf16.msrb.mxu2 %v4158_v55 }
  0x43   : > { %v4141_v61 = vld [vmem:[%s5291_s11 + $0x6a0] sm:$0xf]  ;;  %v4921_v62 = vld [vmem:[%s5291_s11 + $0x6ac] sm:$0xf0]  ;;  %v4014_v7 = vor.u32 %v4889_v60, %v4013_v57  ;;  %2361 = vmatpush.bf16.msrb.mxu3 %v4286_v59 }
  0x44   : > { %v4269_v1 = vld [vmem:[%s5291_s11 + $0x7a0] sm:$0xf]  ;;  %v4953_v2 = vld [vmem:[%s5291_s11 + $0x7ac] sm:$0xf0]  ;;  %v4142_v8 = vor.u32 %v4921_v62, %v4141_v61  ;;  %2323 = vmatpush.bf16.msrb.mxu0 %v3886_v3  ;;  %v302_v3 = vld [vmem:[%s5377_s15 + $0x18] sm:$0xff] }
  0x45   : > { %v299_v5 = vld [vmem:[%s5377_s15] sm:$0xff]  ;;  %v4853_v10 = vld [vmem:[%s5291_s11 + $0x48c] sm:$0xf0]  ;;  %v4270_v14 = vor.u32 %v4953_v2, %v4269_v1  ;;  %2336 = vmatpush.bf16.msrb.mxu1 %v4014_v7 }
  0x46   : > { %v3869_v9 = vld [vmem:[%s5291_s11 + $0x480] sm:$0xf]  ;;  %v639_v12 = vunpack.c.l.b16 %v299_v5  ;;  %v640_v13 = vunpack.c.h.b16 %v299_v5  ;;  %v4885_v15 = vld [vmem:[%s5291_s11 + $0x58c] sm:$0xf0]  ;;  %2349 = vmatpush.bf16.msrb.mxu2 %v4142_v8 }
  0x47   : > { %v3997_v11 = vld [vmem:[%s5291_s11 + $0x580] sm:$0xf]  ;;  %v4917_v17 = vld [vmem:[%s5291_s11 + $0x68c] sm:$0xf0]  ;;  %v3870_v22 = vor.u32 %v4853_v10, %v3869_v9  ;;  %2362 = vmatpush.bf16.msrb.mxu3 %v4270_v14 }
  0x48   : > { %v4125_v16 = vld [vmem:[%s5291_s11 + $0x680] sm:$0xf]  ;;  %v4949_v19 = vld [vmem:[%s5291_s11 + $0x78c] sm:$0xf0]  ;;  %v5404_v20 = vpack.c.b16 %v639_v12, %v639_v12  ;;  %v5407_v21 = vpack.c.b16 %v640_v13, %v640_v13  ;;  %v3998_v23 = vor.u32 %v4885_v15, %v3997_v11  ;;  %v4735_v15 = vld [vmem:[%s5291_s11 + $0xe4] sm:$0xf] }
  0x49   : > { %v4253_v18 = vld [vmem:[%s5291_s11 + $0x780] sm:$0xf]  ;;  %v4126_v24 = vor.u32 %v4917_v17, %v4125_v16  ;;  %v4849_v26 = vld [vmem:[%s5291_s11 + $0x46c] sm:$0xf0]  ;;  %2324 = vmatpush.bf16.msrb.mxu0 %v3870_v22  ;;  %v3407_v16 = vld [vmem:[%s5291_s11 + $0xf0] sm:$0xf0]  ;;  %v645_v17 = vunpack.c.l.b16 %v302_v3 }
  0x4a   : > { %v3853_v25 = vld [vmem:[%s5291_s11 + $0x460] sm:$0xf]  ;;  %v4254_v28 = vor.u32 %v4949_v19, %v4253_v18  ;;  %v4881_v29 = vld [vmem:[%s5291_s11 + $0x56c] sm:$0xf0]  ;;  %2277 = vmatmul.bf16.vlgmr.msra.gmra.mxu0 %v5404_v20  ;;  %2290 = vmatmul.bf16.vlgmr.msra.gmra.mxu1 %v5407_v21  ;;  %v4767_v22 = vld [vmem:[%s5291_s11 + $0x1e4] sm:$0xf] }
  0x4b   : > { %v3981_v27 = vld [vmem:[%s5291_s11 + $0x560] sm:$0xf]  ;;  %v4913_v31 = vld [vmem:[%s5291_s11 + $0x66c] sm:$0xf0]  ;;  %v3854_v34 = vor.u32 %v4849_v26, %v3853_v25  ;;  %2337 = vmatpush.bf16.msrb.mxu1 %v3998_v23  ;;  %2350 = vmatpush.bf16.msrb.mxu2 %v4126_v24  ;;  %v3535_v23 = vld [vmem:[%s5291_s11 + $0x1f0] sm:$0xf0]  ;;  %v646_v25 = vunpack.c.h.b16 %v302_v3 }
  0x4c   : > { %v4109_v30 = vld [vmem:[%s5291_s11 + $0x660] sm:$0xf]  ;;  %v4945_v33 = vld [vmem:[%s5291_s11 + $0x76c] sm:$0xf0]  ;;  %v3982_v35 = vor.u32 %v4881_v29, %v3981_v27  ;;  %2363 = vmatpush.bf16.msrb.mxu3 %v4254_v28  ;;  %v3487_v3 = vld [vmem:[%s5291_s11 + $0x190] sm:$0xf0] }
  0x4d   : > { %v4237_v32 = vld [vmem:[%s5291_s11 + $0x760] sm:$0xf]  ;;  %v4110_v36 = vor.u32 %v4913_v31, %v4109_v30  ;;  %v4845_v38 = vld [vmem:[%s5291_s11 + $0x44c] sm:$0xf0]  ;;  %2325 = vmatpush.bf16.msrb.mxu0 %v3854_v34  ;;  %v3410_v30 = vor.u32 %v4735_v15, %v3407_v16  ;;  %v3538_v34 = vor.u32 %v4767_v22, %v3535_v23  ;;  %v3343_v15 = vld [vmem:[%s5291_s11 + $0x70] sm:$0xf0] }
  0x4e   : > { %v3837_v37 = vld [vmem:[%s5291_s11 + $0x440] sm:$0xf]  ;;  %v4238_v40 = vor.u32 %v4945_v33, %v4237_v32  ;;  %v4877_v41 = vld [vmem:[%s5291_s11 + $0x54c] sm:$0xf0]  ;;  %v4751_v16 = vld [vmem:[%s5291_s11 + $0x164] sm:$0xf] }
  0x4f   : > { %v3965_v39 = vld [vmem:[%s5291_s11 + $0x540] sm:$0xf]  ;;  %v4909_v43 = vld [vmem:[%s5291_s11 + $0x64c] sm:$0xf0]  ;;  %v3838_v46 = vor.u32 %v4845_v38, %v3837_v37  ;;  %2338 = vmatpush.bf16.msrb.mxu1 %v3982_v35  ;;  %2351 = vmatpush.bf16.msrb.mxu2 %v4110_v36  ;;  %v4731_v36 = vld [vmem:[%s5291_s11 + $0xc4] sm:$0xf]  ;;  %v5459_v38 = vpack.c.b16 %v645_v17, %v645_v17 }
  0x50   : > { %v4093_v42 = vld [vmem:[%s5291_s11 + $0x640] sm:$0xf]  ;;  %v4941_v45 = vld [vmem:[%s5291_s11 + $0x74c] sm:$0xf0]  ;;  %v3966_v47 = vor.u32 %v4877_v41, %v3965_v39  ;;  %2364 = vmatpush.bf16.msrb.mxu3 %v4238_v40  ;;  %v3391_v37 = vld [vmem:[%s5291_s11 + $0xd0] sm:$0xf0] }
  0x51   : > { %v4221_v44 = vld [vmem:[%s5291_s11 + $0x740] sm:$0xf]  ;;  %v4094_v48 = vor.u32 %v4909_v43, %v4093_v42  ;;  %v4841_v50 = vld [vmem:[%s5291_s11 + $0x42c] sm:$0xf0]  ;;  %2326 = vmatpush.bf16.msrb.mxu0 %v3838_v46  ;;  %v4763_v39 = vld [vmem:[%s5291_s11 + $0x1c4] sm:$0xf]  ;;  %v5465_v42 = vpack.c.b16 %v646_v25, %v646_v25  ;;  %v3394_v46 = vor.u32 %v4731_v36, %v3391_v37 }
  0x52   : > { %v3821_v49 = vld [vmem:[%s5291_s11 + $0x420] sm:$0xf]  ;;  %v4222_v52 = vor.u32 %v4941_v45, %v4221_v44  ;;  %v4873_v53 = vld [vmem:[%s5291_s11 + $0x52c] sm:$0xf0]  ;;  %v3519_v40 = vld [vmem:[%s5291_s11 + $0x1d0] sm:$0xf0] }
  0x53   : > { %v3949_v51 = vld [vmem:[%s5291_s11 + $0x520] sm:$0xf]  ;;  %v4905_v55 = vld [vmem:[%s5291_s11 + $0x62c] sm:$0xf0]  ;;  %v3822_v59 = vor.u32 %v4841_v50, %v3821_v49  ;;  %2339 = vmatpush.bf16.msrb.mxu1 %v3966_v47  ;;  %2352 = vmatpush.bf16.msrb.mxu2 %v4094_v48  ;;  %v3522_v50 = vor.u32 %v4763_v39, %v3519_v40  ;;  %v3471_v17 = vld [vmem:[%s5291_s11 + $0x170] sm:$0xf0] }
  0x54   : > { %v4077_v54 = vld [vmem:[%s5291_s11 + $0x620] sm:$0xf]  ;;  %v4937_v57 = vld [vmem:[%s5291_s11 + $0x72c] sm:$0xf0]  ;;  %v3950_v63 = vor.u32 %v4873_v53, %v3949_v51  ;;  %2365 = vmatpush.bf16.msrb.mxu3 %v4222_v52  ;;  %v4727_v52 = vld [vmem:[%s5291_s11 + $0xa4] sm:$0xf] }
  0x55   : > { %v4205_v56 = vld [vmem:[%s5291_s11 + $0x720] sm:$0xf]  ;;  %v4837_v60 = vld [vmem:[%s5291_s11 + $0x40c] sm:$0xf0]  ;;  %v4078_v0 = vor.u32 %v4905_v55, %v4077_v54  ;;  %2327 = vmatpush.bf16.msrb.mxu0 %v3822_v59  ;;  %v3375_v53 = vld [vmem:[%s5291_s11 + $0xb0] sm:$0xf0] }
  0x56   : > { %v3805_v58 = vld [vmem:[%s5291_s11 + $0x400] sm:$0xf]  ;;  %v4869_v62 = vld [vmem:[%s5291_s11 + $0x50c] sm:$0xf0]  ;;  %v4206_v5 = vor.u32 %v4937_v57, %v4205_v56  ;;  %v4759_v54 = vld [vmem:[%s5291_s11 + $0x1a4] sm:$0xf] }
  0x57   : > { %v3933_v61 = vld [vmem:[%s5291_s11 + $0x500] sm:$0xf]  ;;  %v4901_v2 = vld [vmem:[%s5291_s11 + $0x60c] sm:$0xf0]  ;;  %v3806_v13 = vor.u32 %v4837_v60, %v3805_v58  ;;  %2340 = vmatpush.bf16.msrb.mxu1 %v3950_v63  ;;  %2353 = vmatpush.bf16.msrb.mxu2 %v4078_v0  ;;  %v3503_v55 = vld [vmem:[%s5291_s11 + $0x1b0] sm:$0xf0]  ;;  %v3378_v58 = vor.u32 %v4727_v52, %v3375_v53 }
  0x58   : > { %v4061_v1 = vld [vmem:[%s5291_s11 + $0x600] sm:$0xf]  ;;  %v4933_v8 = vld [vmem:[%s5291_s11 + $0x70c] sm:$0xf0]  ;;  %v3934_v18 = vor.u32 %v4869_v62, %v3933_v61  ;;  %2366 = vmatpush.bf16.msrb.mxu3 %v4206_v5  ;;  %v3506_v62 = vor.u32 %v4759_v54, %v3503_v55  ;;  %v4723_v0 = vld [vmem:[%s5291_s11 + $0x84] sm:$0xf] }
  0x59   : > { %v4189_v7 = vld [vmem:[%s5291_s11 + $0x700] sm:$0xf]  ;;  %v301_v9 = vld [vmem:[%s5377_s15 + $0x10] sm:$0xff]  ;;  %v4062_v19 = vor.u32 %v4901_v2, %v4061_v1  ;;  %2328 = vmatpush.bf16.msrb.mxu0 %v3806_v13  ;;  %v4755_v2 = vld [vmem:[%s5291_s11 + $0x184] sm:$0xf] }
  0x5a   : > { %v4429_v10 = vld [vmem:[%s5291_s11 + $0x8e0] sm:$0xf]  ;;  %v4993_v11 = vld [vmem:[%s5291_s11 + $0x8ec] sm:$0xf0]  ;;  %v643_v24 = vunpack.c.l.b16 %v301_v9  ;;  %v4190_v26 = vor.u32 %v4933_v8, %v4189_v7  ;;  %v644_v28 = vunpack.c.h.b16 %v301_v9  ;;  %v3359_v1 = vld [vmem:[%s5291_s11 + $0x90] sm:$0xf0] }
  0x5b   : > { %v4557_v12 = vld [vmem:[%s5291_s11 + $0x9e0] sm:$0xf]  ;;  %v5025_v14 = vld [vmem:[%s5291_s11 + $0x9ec] sm:$0xf0]  ;;  %v4430_v27 = vor.u32 %v4993_v11, %v4429_v10  ;;  %2341 = vmatpush.bf16.msrb.mxu1 %v3934_v18  ;;  %2354 = vmatpush.bf16.msrb.mxu2 %v4062_v19  ;;  %v3362_v8 = vor.u32 %v4723_v0, %v3359_v1  ;;  %v4707_v55 = vld [vmem:[%s5291_s11 + $0x4] sm:$0xf] }
  0x5c   : > { %v4558_v29 = vor.u32 %v5025_v14, %v4557_v12  ;;  %v4413_v31 = vld [vmem:[%s5291_s11 + $0x8c0] sm:$0xf]  ;;  %v4989_v32 = vld [vmem:[%s5291_s11 + $0x8cc] sm:$0xf0]  ;;  %v5463_v41 = vpack.c.b16 %v643_v24, %v643_v24  ;;  %2367 = vmatpush.bf16.msrb.mxu3 %v4190_v26  ;;  %v5467_v44 = vpack.c.b16 %v644_v28, %v644_v28  ;;  %v3490_v12 = vor.u32 %v4755_v2, %v3487_v3  ;;  %v4719_v14 = vld [vmem:[%s5291_s11 + $0x64] sm:$0xf] }
  0x5d   : > { %v4541_v33 = vld [vmem:[%s5291_s11 + $0x9c0] sm:$0xf]  ;;  %v5021_v35 = vld [vmem:[%s5291_s11 + $0x9cc] sm:$0xf0]  ;;  %2373 = vmatpush.bf16.msra.mxu0 %v4430_v27  ;;  %v4414_v43 = vor.u32 %v4989_v32, %v4413_v31  ;;  %v3346_v22 = vor.u32 %v4719_v14, %v3343_v15  ;;  %v3474_v26 = vor.u32 %v4751_v16, %v3471_v17  ;;  %v4715_v28 = vld [vmem:[%s5291_s11 + $0x44] sm:$0xf] }
  0x5e   : > { %v4542_v45 = vor.u32 %v5021_v35, %v4541_v33  ;;  %v4397_v47 = vld [vmem:[%s5291_s11 + $0x8a0] sm:$0xf]  ;;  %v4985_v48 = vld [vmem:[%s5291_s11 + $0x8ac] sm:$0xf0]  ;;  %2355 = vmatmul.bf16.vlgmr.msrb.gmra.mxu2 %v5459_v38  ;;  %2329 = vmatmul.bf16.vlgmr.msrb.gmra.mxu0 %v5463_v41  ;;  %v3455_v31 = vld [vmem:[%s5291_s11 + $0x150] sm:$0xf0] }
  0x5f   : > { %2386 = vmatpush.bf16.msra.mxu1 %v4558_v29  ;;  %2399 = vmatpush.bf16.msra.mxu2 %v3410_v30  ;;  %v4525_v49 = vld [vmem:[%s5291_s11 + $0x9a0] sm:$0xf]  ;;  %v5017_v51 = vld [vmem:[%s5291_s11 + $0x9ac] sm:$0xf0]  ;;  %v4398_v56 = vor.u32 %v4985_v48, %v4397_v47  ;;  %v3327_v29 = vld [vmem:[%s5291_s11 + $0x50] sm:$0xf0] }
  0x60   : > { %2412 = vmatpush.bf16.msra.mxu3 %v3538_v34  ;;  %2342 = vmatmul.bf16.vlgmr.msrb.gmra.mxu1 %v5467_v44  ;;  %v4526_v57 = vor.u32 %v5017_v51, %v4525_v49  ;;  %v4381_v59 = vld [vmem:[%s5291_s11 + $0x880] sm:$0xf]  ;;  %v4981_v60 = vld [vmem:[%s5291_s11 + $0x88c] sm:$0xf0]  ;;  %v4747_v30 = vld [vmem:[%s5291_s11 + $0x144] sm:$0xf]  ;;  %v3330_v34 = vor.u32 %v4715_v28, %v3327_v29 }
  0x61   : > { %2368 = vmatmul.bf16.vlgmr.msrb.gmra.mxu3 %v5465_v42  ;;  %2374 = vmatpush.bf16.msra.mxu0 %v4414_v43  ;;  %v4509_v61 = vld [vmem:[%s5291_s11 + $0x980] sm:$0xf]  ;;  %v5013_v63 = vld [vmem:[%s5291_s11 + $0x98c] sm:$0xf0]  ;;  %v4382_v5 = vor.u32 %v4981_v60, %v4381_v59  ;;  %v3458_v39 = vor.u32 %v4747_v30, %v3455_v31  ;;  %v4711_v43 = vld [vmem:[%s5291_s11 + $0x24] sm:$0xf] }
  0x62   : > { %v4510_v7 = vor.u32 %v5013_v63, %v4509_v61  ;;  %v4365_v9 = vld [vmem:[%s5291_s11 + $0x860] sm:$0xf]  ;;  %v4977_v10 = vld [vmem:[%s5291_s11 + $0x86c] sm:$0xf0]  ;;  %v3439_v47 = vld [vmem:[%s5291_s11 + $0x130] sm:$0xf0] }
  0x63   : > { %2387 = vmatpush.bf16.msra.mxu1 %v4542_v45  ;;  %2400 = vmatpush.bf16.msra.mxu2 %v3394_v46  ;;  %v4493_v11 = vld [vmem:[%s5291_s11 + $0x960] sm:$0xf]  ;;  %v5009_v13 = vld [vmem:[%s5291_s11 + $0x96c] sm:$0xf0]  ;;  %v4366_v18 = vor.u32 %v4977_v10, %v4365_v9  ;;  %v3311_v45 = vld [vmem:[%s5291_s11 + $0x30] sm:$0xf0] }
  0x64   : > { %2413 = vmatpush.bf16.msra.mxu3 %v3522_v50  ;;  %v4494_v19 = vor.u32 %v5009_v13, %v4493_v11  ;;  %v4349_v23 = vld [vmem:[%s5291_s11 + $0x840] sm:$0xf]  ;;  %v4973_v24 = vld [vmem:[%s5291_s11 + $0x84c] sm:$0xf0]  ;;  %v4743_v46 = vld [vmem:[%s5291_s11 + $0x124] sm:$0xf]  ;;  %v3314_v53 = vor.u32 %v4711_v43, %v3311_v45 }
  0x65   : > { %2375 = vmatpush.bf16.msra.mxu0 %v4398_v56  ;;  %v4477_v25 = vld [vmem:[%s5291_s11 + $0x940] sm:$0xf]  ;;  %v5005_v27 = vld [vmem:[%s5291_s11 + $0x94c] sm:$0xf0]  ;;  %v4350_v32 = vor.u32 %v4973_v24, %v4349_v23  ;;  %v4739_v59 = vld [vmem:[%s5291_s11 + $0x104] sm:$0xf] }
  0x66   : > { %v4478_v33 = vor.u32 %v5005_v27, %v4477_v25  ;;  %v4333_v35 = vld [vmem:[%s5291_s11 + $0x820] sm:$0xf]  ;;  %v4969_v36 = vld [vmem:[%s5291_s11 + $0x82c] sm:$0xf0]  ;;  %v3423_v60 = vld [vmem:[%s5291_s11 + $0x110] sm:$0xf0] }
  0x67   : > { %2388 = vmatpush.bf16.msra.mxu1 %v4526_v57  ;;  %2401 = vmatpush.bf16.msra.mxu2 %v3378_v58  ;;  %v4461_v37 = vld [vmem:[%s5291_s11 + $0x920] sm:$0xf]  ;;  %v5001_v40 = vld [vmem:[%s5291_s11 + $0x92c] sm:$0xf0]  ;;  %v4334_v48 = vor.u32 %v4969_v36, %v4333_v35  ;;  %v3442_v57 = vor.u32 %v4743_v46, %v3439_v47  ;;  %v3295_v58 = vld [vmem:[%s5291_s11 + $0x10] sm:$0xf0] }
  0x68   : > { %2414 = vmatpush.bf16.msra.mxu3 %v3506_v62  ;;  %v4317_v49 = vld [vmem:[%s5291_s11 + $0x800] sm:$0xf]  ;;  %v4965_v50 = vld [vmem:[%s5291_s11 + $0x80c] sm:$0xf0]  ;;  %v4462_v52 = vor.u32 %v5001_v40, %v4461_v37  ;;  %v4799_v61 = vld [vmem:[%s5291_s11 + $0x2e4] sm:$0xf] }
  0x69   : > { %2376 = vmatpush.bf16.msra.mxu0 %v4382_v5  ;;  %v4445_v51 = vld [vmem:[%s5291_s11 + $0x900] sm:$0xf]  ;;  %v4997_v54 = vld [vmem:[%s5291_s11 + $0x90c] sm:$0xf0]  ;;  %v3663_v62 = vld [vmem:[%s5291_s11 + $0x2f0] sm:$0xf0]  ;;  %v4318_v0 = vor.u32 %v4965_v50, %v4317_v49 }
  0x6a   : > { %v303_v56 = vld [vmem:[%s5377_s15 + $0x20] sm:$0xff]  ;;  %v3791_v1 = vld [vmem:[%s5291_s11 + $0x3f0] sm:$0xf0]  ;;  %v3666_v13 = vor.u32 %v4799_v61, %v3663_v62 }
  0x6b   : > { %2389 = vmatpush.bf16.msra.mxu1 %v4510_v7  ;;  %2402 = vmatpush.bf16.msra.mxu2 %v3362_v8  ;;  %v4831_v63 = vld [vmem:[%s5291_s11 + $0x3e4] sm:$0xf]  ;;  %v3919_v3 = vld [vmem:[%s5291_s11 + $0x4f0] sm:$0xf0]  ;;  %v647_v5 = vunpack.c.l.b16 %v303_v56  ;;  %v4446_v7 = vor.u32 %v4997_v54, %v4445_v51  ;;  %v3298_v8 = vor.u32 %v4707_v55, %v3295_v58  ;;  %v648_v11 = vunpack.c.h.b16 %v303_v56 }
  0x6c   : > { %2415 = vmatpush.bf16.msra.mxu3 %v3490_v12  ;;  %v4863_v2 = vld [vmem:[%s5291_s11 + $0x4e4] sm:$0xf]  ;;  %v4047_v10 = vld [vmem:[%s5291_s11 + $0x5f0] sm:$0xf0]  ;;  %v3426_v12 = vor.u32 %v4739_v59, %v3423_v60  ;;  %v3794_v14 = vor.u32 %v4831_v63, %v3791_v1 }
  0x6d   : > { %2377 = vmatpush.bf16.msra.mxu0 %v4366_v18  ;;  %v4895_v9 = vld [vmem:[%s5291_s11 + $0x5e4] sm:$0xf]  ;;  %v3922_v15 = vor.u32 %v4863_v2, %v3919_v3  ;;  %v3647_v17 = vld [vmem:[%s5291_s11 + $0x2d0] sm:$0xf0] }
  0x6e   : > { %v4795_v16 = vld [vmem:[%s5291_s11 + $0x2c4] sm:$0xf]  ;;  %v3775_v23 = vld [vmem:[%s5291_s11 + $0x3d0] sm:$0xf0] }
  0x6f   : > { %2390 = vmatpush.bf16.msra.mxu1 %v4494_v19  ;;  %2403 = vmatpush.bf16.msra.mxu2 %v3346_v22  ;;  %v4827_v18 = vld [vmem:[%s5291_s11 + $0x3c4] sm:$0xf]  ;;  %v4050_v19 = vor.u32 %v4895_v9, %v4047_v10  ;;  %v5533_v22 = vpack.c.b16 %v647_v5, %v647_v5  ;;  %v3903_v25 = vld [vmem:[%s5291_s11 + $0x4d0] sm:$0xf0]  ;;  %v3650_v29 = vor.u32 %v4795_v16, %v3647_v17 }
  0x70   : > { %2416 = vmatpush.bf16.msra.mxu3 %v3474_v26  ;;  %v4859_v24 = vld [vmem:[%s5291_s11 + $0x4c4] sm:$0xf]  ;;  %v5538_v26 = vpack.c.b16 %v648_v11, %v648_v11  ;;  %v4031_v28 = vld [vmem:[%s5291_s11 + $0x5d0] sm:$0xf0]  ;;  %v3778_v30 = vor.u32 %v4827_v18, %v3775_v23 }
  0x71   : > { %2378 = vmatpush.bf16.msra.mxu0 %v4350_v32  ;;  %v4891_v27 = vld [vmem:[%s5291_s11 + $0x5c4] sm:$0xf]  ;;  %v3906_v31 = vor.u32 %v4859_v24, %v3903_v25  ;;  %v3759_v36 = vld [vmem:[%s5291_s11 + $0x3b0] sm:$0xf0] }
  0x72   : > { %v4791_v32 = vld [vmem:[%s5291_s11 + $0x2a4] sm:$0xf]  ;;  %v4034_v35 = vor.u32 %v4891_v27, %v4031_v28  ;;  %v4015_v43 = vld [vmem:[%s5291_s11 + $0x5b0] sm:$0xf0] }
  0x73   : > { %2391 = vmatpush.bf16.msra.mxu1 %v4478_v33  ;;  %2404 = vmatpush.bf16.msra.mxu2 %v3330_v34  ;;  %v3631_v33 = vld [vmem:[%s5291_s11 + $0x2b0] sm:$0xf0]  ;;  %v4823_v34 = vld [vmem:[%s5291_s11 + $0x3a4] sm:$0xf] }
  0x74   : > { %2417 = vmatpush.bf16.msra.mxu3 %v3458_v39  ;;  %v4855_v37 = vld [vmem:[%s5291_s11 + $0x4a4] sm:$0xf]  ;;  %v3887_v39 = vld [vmem:[%s5291_s11 + $0x4b0] sm:$0xf0]  ;;  %v3634_v45 = vor.u32 %v4791_v32, %v3631_v33  ;;  %v3762_v46 = vor.u32 %v4823_v34, %v3759_v36 }
  0x75   : > { %2379 = vmatpush.bf16.msra.mxu0 %v4334_v48  ;;  %v4887_v40 = vld [vmem:[%s5291_s11 + $0x5a4] sm:$0xf]  ;;  %v3890_v47 = vor.u32 %v4855_v37, %v3887_v39  ;;  %v3615_v49 = vld [vmem:[%s5291_s11 + $0x290] sm:$0xf0] }
  0x76   : > { %v4787_v48 = vld [vmem:[%s5291_s11 + $0x284] sm:$0xf]  ;;  %v4018_v51 = vor.u32 %v4887_v40, %v4015_v43  ;;  %v3871_v54 = vld [vmem:[%s5291_s11 + $0x490] sm:$0xf0] }
  0x77   : > { %2392 = vmatpush.bf16.msra.mxu1 %v4462_v52  ;;  %2405 = vmatpush.bf16.msra.mxu2 %v3314_v53  ;;  %v4819_v50 = vld [vmem:[%s5291_s11 + $0x384] sm:$0xf]  ;;  %v3743_v52 = vld [vmem:[%s5291_s11 + $0x390] sm:$0xf0] }
  0x78   : > { %2418 = vmatpush.bf16.msra.mxu3 %v3442_v57  ;;  %v4851_v53 = vld [vmem:[%s5291_s11 + $0x484] sm:$0xf]  ;;  %v3999_v56 = vld [vmem:[%s5291_s11 + $0x590] sm:$0xf0]  ;;  %v3618_v57 = vor.u32 %v4787_v48, %v3615_v49  ;;  %v3746_v58 = vor.u32 %v4819_v50, %v3743_v52 }
  0x79   : > { %2380 = vmatpush.bf16.msra.mxu0 %v4318_v0  ;;  %v4883_v55 = vld [vmem:[%s5291_s11 + $0x584] sm:$0xf]  ;;  %v3874_v59 = vor.u32 %v4851_v53, %v3871_v54  ;;  %v3599_v61 = vld [vmem:[%s5291_s11 + $0x270] sm:$0xf0] }
  0x7a   : > { %v4783_v60 = vld [vmem:[%s5291_s11 + $0x264] sm:$0xf]  ;;  %v4002_v63 = vor.u32 %v4883_v55, %v3999_v56  ;;  %v3727_v0 = vld [vmem:[%s5291_s11 + $0x370] sm:$0xf0] }
  0x7b   : > { %2393 = vmatpush.bf16.msra.mxu1 %v4446_v7  ;;  %2406 = vmatpush.bf16.msra.mxu2 %v3298_v8  ;;  %v4815_v62 = vld [vmem:[%s5291_s11 + $0x364] sm:$0xf]  ;;  %v3855_v2 = vld [vmem:[%s5291_s11 + $0x470] sm:$0xf0]  ;;  %v3602_v7 = vor.u32 %v4783_v60, %v3599_v61 }
  0x7c   : > { %2419 = vmatpush.bf16.msra.mxu3 %v3426_v12  ;;  %2381 = vmatmul.bf16.vlgmr.msra.gmra.mxu0 %v5533_v22  ;;  %v4847_v1 = vld [vmem:[%s5291_s11 + $0x464] sm:$0xf]  ;;  %v3983_v5 = vld [vmem:[%s5291_s11 + $0x570] sm:$0xf0]  ;;  %v3730_v8 = vor.u32 %v4815_v62, %v3727_v0 }
  0x7d   : > { %2425 = vmatpush.bf16.msrb.mxu0 %v3666_v13  ;;  %v4879_v3 = vld [vmem:[%s5291_s11 + $0x564] sm:$0xf]  ;;  %v3858_v9 = vor.u32 %v4847_v1, %v3855_v2  ;;  %v3583_v11 = vld [vmem:[%s5291_s11 + $0x250] sm:$0xf0] }
  0x7e   : > { %2394 = vmatmul.bf16.vlgmr.msra.gmra.mxu1 %v5538_v26  ;;  %2407 = vmatmul.bf16.vlgmr.msra.gmra.mxu2 %v5404_v20  ;;  %v4779_v10 = vld [vmem:[%s5291_s11 + $0x244] sm:$0xf]  ;;  %v3986_v13 = vor.u32 %v4879_v3, %v3983_v5  ;;  %v3839_v16 = vld [vmem:[%s5291_s11 + $0x450] sm:$0xf0] }
  0x7f   : > { %2438 = vmatpush.bf16.msrb.mxu1 %v3794_v14  ;;  %2451 = vmatpush.bf16.msrb.mxu2 %v3922_v15  ;;  %v4811_v12 = vld [vmem:[%s5291_s11 + $0x344] sm:$0xf]  ;;  %v3711_v14 = vld [vmem:[%s5291_s11 + $0x350] sm:$0xf0] }
  0x80   : > { %2464 = vmatpush.bf16.msrb.mxu3 %v4050_v19  ;;  %v4843_v15 = vld [vmem:[%s5291_s11 + $0x444] sm:$0xf]  ;;  %v3967_v18 = vld [vmem:[%s5291_s11 + $0x550] sm:$0xf0]  ;;  %v3586_v19 = vor.u32 %v4779_v10, %v3583_v11  ;;  %v3714_v23 = vor.u32 %v4811_v12, %v3711_v14 }
  0x81   : > { %2426 = vmatpush.bf16.msrb.mxu0 %v3650_v29  ;;  %2420 = vmatmul.bf16.vlgmr.msra.gmra.mxu3 %v5407_v21  ;;  %v4875_v17 = vld [vmem:[%s5291_s11 + $0x544] sm:$0xf]  ;;  %v3842_v24 = vor.u32 %v4843_v15, %v3839_v16  ;;  %v3567_v27 = vld [vmem:[%s5291_s11 + $0x230] sm:$0xf0] }
  0x82   : > { %v4775_v25 = vld [vmem:[%s5291_s11 + $0x224] sm:$0xf]  ;;  %v3970_v29 = vor.u32 %v4875_v17, %v3967_v18  ;;  %v3823_v32 = vld [vmem:[%s5291_s11 + $0x430] sm:$0xf0] }
  0x83   : > { %2439 = vmatpush.bf16.msrb.mxu1 %v3778_v30  ;;  %2452 = vmatpush.bf16.msrb.mxu2 %v3906_v31  ;;  %v4807_v28 = vld [vmem:[%s5291_s11 + $0x324] sm:$0xf]  ;;  %v3695_v30 = vld [vmem:[%s5291_s11 + $0x330] sm:$0xf0] }
  0x84   : > { %2465 = vmatpush.bf16.msrb.mxu3 %v4034_v35  ;;  %v4839_v31 = vld [vmem:[%s5291_s11 + $0x424] sm:$0xf]  ;;  %v3951_v34 = vld [vmem:[%s5291_s11 + $0x530] sm:$0xf0]  ;;  %v3570_v35 = vor.u32 %v4775_v25, %v3567_v27  ;;  %v3698_v39 = vor.u32 %v4807_v28, %v3695_v30 }
  0x85   : > { %2427 = vmatpush.bf16.msrb.mxu0 %v3634_v45  ;;  %v4871_v33 = vld [vmem:[%s5291_s11 + $0x524] sm:$0xf]  ;;  %v3551_v37 = vld [vmem:[%s5291_s11 + $0x210] sm:$0xf0]  ;;  %v3826_v40 = vor.u32 %v4839_v31, %v3823_v32 }
  0x86   : > { %v4771_v36 = vld [vmem:[%s5291_s11 + $0x204] sm:$0xf]  ;;  %v3679_v45 = vld [vmem:[%s5291_s11 + $0x310] sm:$0xf0] }
  0x87   : > { %2440 = vmatpush.bf16.msrb.mxu1 %v3762_v46  ;;  %2453 = vmatpush.bf16.msrb.mxu2 %v3890_v47  ;;  %v4803_v43 = vld [vmem:[%s5291_s11 + $0x304] sm:$0xf]  ;;  %v3954_v47 = vor.u32 %v4871_v33, %v3951_v34  ;;  %v3807_v48 = vld [vmem:[%s5291_s11 + $0x410] sm:$0xf0]  ;;  %v3554_v54 = vor.u32 %v4771_v36, %v3551_v37 }
  0x88   : > { %2466 = vmatpush.bf16.msrb.mxu3 %v4018_v51  ;;  %v4835_v46 = vld [vmem:[%s5291_s11 + $0x404] sm:$0xf]  ;;  %v3935_v50 = vld [vmem:[%s5291_s11 + $0x510] sm:$0xf0] }
  0x89   : > { %2428 = vmatpush.bf16.msrb.mxu0 %v3618_v57  ;;  %v4867_v49 = vld [vmem:[%s5291_s11 + $0x504] sm:$0xf]  ;;  %v4175_v52 = vld [vmem:[%s5291_s11 + $0x6f0] sm:$0xf0] }
  0x8a   : > { %v4927_v51 = vld [vmem:[%s5291_s11 + $0x6e4] sm:$0xf]  ;;  %v4303_v55 = vld [vmem:[%s5291_s11 + $0x7f0] sm:$0xf0]  ;;  %v3938_v62 = vor.u32 %v4867_v49, %v3935_v50 }
  0x8b   : > { %2441 = vmatpush.bf16.msrb.mxu1 %v3746_v58  ;;  %2454 = vmatpush.bf16.msrb.mxu2 %v3874_v59  ;;  %v4959_v53 = vld [vmem:[%s5291_s11 + $0x7e4] sm:$0xf]  ;;  %v4431_v57 = vld [vmem:[%s5291_s11 + $0x8f0] sm:$0xf0]  ;;  %v3682_v58 = vor.u32 %v4803_v43, %v3679_v45  ;;  %v3810_v59 = vor.u32 %v4835_v46, %v3807_v48 }
  0x8c   : > { %2467 = vmatpush.bf16.msrb.mxu3 %v4002_v63  ;;  %v4991_v56 = vld [vmem:[%s5291_s11 + $0x8e4] sm:$0xf]  ;;  %v4559_v61 = vld [vmem:[%s5291_s11 + $0x9f0] sm:$0xf0]  ;;  %v4178_v63 = vor.u32 %v4927_v51, %v4175_v52  ;;  %v4306_v0 = vor.u32 %v4959_v53, %v4303_v55 }
  0x8d   : > { %2429 = vmatpush.bf16.msrb.mxu0 %v3602_v7  ;;  %v5023_v60 = vld [vmem:[%s5291_s11 + $0x9e4] sm:$0xf]  ;;  %v4434_v1 = vor.u32 %v4991_v56, %v4431_v57  ;;  %v4159_v3 = vld [vmem:[%s5291_s11 + $0x6d0] sm:$0xf0] }
  0x8e   : > { %v4923_v2 = vld [vmem:[%s5291_s11 + $0x6c4] sm:$0xf]  ;;  %v4562_v7 = vor.u32 %v5023_v60, %v4559_v61  ;;  %v4415_v10 = vld [vmem:[%s5291_s11 + $0x8d0] sm:$0xf0] }
  0x8f   : > { %2442 = vmatpush.bf16.msrb.mxu1 %v3730_v8  ;;  %2455 = vmatpush.bf16.msrb.mxu2 %v3858_v9  ;;  %v4955_v5 = vld [vmem:[%s5291_s11 + $0x7c4] sm:$0xf]  ;;  %v4287_v8 = vld [vmem:[%s5291_s11 + $0x7d0] sm:$0xf0] }
  0x90   : > { %2468 = vmatpush.bf16.msrb.mxu3 %v3986_v13  ;;  %v4987_v9 = vld [vmem:[%s5291_s11 + $0x8c4] sm:$0xf]  ;;  %v4543_v12 = vld [vmem:[%s5291_s11 + $0x9d0] sm:$0xf0]  ;;  %v4162_v13 = vor.u32 %v4923_v2, %v4159_v3  ;;  %v4290_v14 = vor.u32 %v4955_v5, %v4287_v8 }
  0x91   : > { %2430 = vmatpush.bf16.msrb.mxu0 %v3586_v19  ;;  %v5019_v11 = vld [vmem:[%s5291_s11 + $0x9c4] sm:$0xf]  ;;  %v4418_v15 = vor.u32 %v4987_v9, %v4415_v10  ;;  %v4143_v17 = vld [vmem:[%s5291_s11 + $0x6b0] sm:$0xf0] }
  0x92   : > { %v4919_v16 = vld [vmem:[%s5291_s11 + $0x6a4] sm:$0xf]  ;;  %v4546_v19 = vor.u32 %v5019_v11, %v4543_v12  ;;  %v4399_v25 = vld [vmem:[%s5291_s11 + $0x8b0] sm:$0xf0] }
  0x93   : > { %2443 = vmatpush.bf16.msrb.mxu1 %v3714_v23  ;;  %2456 = vmatpush.bf16.msrb.mxu2 %v3842_v24  ;;  %v4951_v18 = vld [vmem:[%s5291_s11 + $0x7a4] sm:$0xf]  ;;  %v4271_v23 = vld [vmem:[%s5291_s11 + $0x7b0] sm:$0xf0] }
  0x94   : > { %2469 = vmatpush.bf16.msrb.mxu3 %v3970_v29  ;;  %v4983_v24 = vld [vmem:[%s5291_s11 + $0x8a4] sm:$0xf]  ;;  %v4527_v28 = vld [vmem:[%s5291_s11 + $0x9b0] sm:$0xf0]  ;;  %v4146_v29 = vor.u32 %v4919_v16, %v4143_v17  ;;  %v4274_v30 = vor.u32 %v4951_v18, %v4271_v23 }
  0x95   : > { %2431 = vmatpush.bf16.msrb.mxu0 %v3570_v35  ;;  %v5015_v27 = vld [vmem:[%s5291_s11 + $0x9a4] sm:$0xf]  ;;  %v4402_v31 = vor.u32 %v4983_v24, %v4399_v25  ;;  %v4127_v33 = vld [vmem:[%s5291_s11 + $0x690] sm:$0xf0] }
  0x96   : > { %v4915_v32 = vld [vmem:[%s5291_s11 + $0x684] sm:$0xf]  ;;  %v4530_v35 = vor.u32 %v5015_v27, %v4527_v28  ;;  %v4255_v36 = vld [vmem:[%s5291_s11 + $0x790] sm:$0xf0] }
  0x97   : > { %2444 = vmatpush.bf16.msrb.mxu1 %v3698_v39  ;;  %2457 = vmatpush.bf16.msrb.mxu2 %v3826_v40  ;;  %v4947_v34 = vld [vmem:[%s5291_s11 + $0x784] sm:$0xf]  ;;  %v4383_v39 = vld [vmem:[%s5291_s11 + $0x890] sm:$0xf0]  ;;  %v4130_v45 = vor.u32 %v4915_v32, %v4127_v33 }
  0x98   : > { %2470 = vmatpush.bf16.msrb.mxu3 %v3954_v47  ;;  %v4979_v37 = vld [vmem:[%s5291_s11 + $0x884] sm:$0xf]  ;;  %v4511_v43 = vld [vmem:[%s5291_s11 + $0x990] sm:$0xf0]  ;;  %v4258_v46 = vor.u32 %v4947_v34, %v4255_v36  ;;  %v4738_v36 = vld [vmem:[%s5291_s11 + $0xf4] sm:$0xf0] }
  0x99   : > { %2432 = vmatpush.bf16.msrb.mxu0 %v3554_v54  ;;  %v5011_v40 = vld [vmem:[%s5291_s11 + $0x984] sm:$0xf]  ;;  %v4386_v47 = vor.u32 %v4979_v37, %v4383_v39  ;;  %v4111_v49 = vld [vmem:[%s5291_s11 + $0x670] sm:$0xf0]  ;;  %v3541_v37 = vld [vmem:[%s5291_s11 + $0x1e8] sm:$0xf] }
  0x9a   : > { %v4911_v48 = vld [vmem:[%s5291_s11 + $0x664] sm:$0xf]  ;;  %v4514_v51 = vor.u32 %v5011_v40, %v4511_v43  ;;  %v4239_v52 = vld [vmem:[%s5291_s11 + $0x770] sm:$0xf0]  ;;  %v4770_v40 = vld [vmem:[%s5291_s11 + $0x1f4] sm:$0xf0] }
  0x9b   : > { %2445 = vmatpush.bf16.msrb.mxu1 %v3682_v58  ;;  %2458 = vmatpush.bf16.msrb.mxu2 %v3810_v59  ;;  %v4943_v50 = vld [vmem:[%s5291_s11 + $0x764] sm:$0xf]  ;;  %v4367_v54 = vld [vmem:[%s5291_s11 + $0x870] sm:$0xf0]  ;;  %v4114_v57 = vor.u32 %v4911_v48, %v4111_v49  ;;  %v3669_v43 = vld [vmem:[%s5291_s11 + $0x2e8] sm:$0xf] }
  0x9c   : > { %2471 = vmatpush.bf16.msrb.mxu3 %v3938_v62  ;;  %2433 = vmatmul.bf16.vlgmr.msrb.gmra.mxu0 %v5390_v4  ;;  %v4975_v53 = vld [vmem:[%s5291_s11 + $0x864] sm:$0xf]  ;;  %v4495_v56 = vld [vmem:[%s5291_s11 + $0x970] sm:$0xf0]  ;;  %v4242_v58 = vor.u32 %v4943_v50, %v4239_v52  ;;  %v3797_v48 = vld [vmem:[%s5291_s11 + $0x3e8] sm:$0xf]  ;;  %v3542_v52 = vor.u32 %v4770_v40, %v3541_v37 }
  0x9d   : > { %2477 = vmatpush.bf16.msra.mxu0 %v4178_v63  ;;  %v5007_v55 = vld [vmem:[%s5291_s11 + $0x964] sm:$0xf]  ;;  %v4370_v59 = vor.u32 %v4975_v53, %v4367_v54  ;;  %v4095_v61 = vld [vmem:[%s5291_s11 + $0x650] sm:$0xf0]  ;;  %v4834_v49 = vld [vmem:[%s5291_s11 + $0x3f4] sm:$0xf0] }
  0x9e   : > { %2459 = vmatmul.bf16.vlgmr.msrb.gmra.mxu2 %v5463_v41  ;;  %2446 = vmatmul.bf16.vlgmr.msrb.gmra.mxu1 %v5393_v6  ;;  %v4907_v60 = vld [vmem:[%s5291_s11 + $0x644] sm:$0xf]  ;;  %v4498_v63 = vor.u32 %v5007_v55, %v4495_v56  ;;  %v4351_v2 = vld [vmem:[%s5291_s11 + $0x850] sm:$0xf0]  ;;  %v3397_v54 = vld [vmem:[%s5291_s11 + $0xc8] sm:$0xf] }
  0x9f   : > { %2490 = vmatpush.bf16.msra.mxu1 %v4306_v0  ;;  %2503 = vmatpush.bf16.msra.mxu2 %v4434_v1  ;;  %v4939_v62 = vld [vmem:[%s5291_s11 + $0x744] sm:$0xf]  ;;  %v4223_v0 = vld [vmem:[%s5291_s11 + $0x750] sm:$0xf0]  ;;  %v4734_v55 = vld [vmem:[%s5291_s11 + $0xd4] sm:$0xf0] }
  0xa0   : > { %2516 = vmatpush.bf16.msra.mxu3 %v4562_v7  ;;  %v4971_v1 = vld [vmem:[%s5291_s11 + $0x844] sm:$0xf]  ;;  %v4479_v5 = vld [vmem:[%s5291_s11 + $0x950] sm:$0xf0]  ;;  %v4098_v7 = vor.u32 %v4907_v60, %v4095_v61  ;;  %v4226_v8 = vor.u32 %v4939_v62, %v4223_v0  ;;  %v3525_v56 = vld [vmem:[%s5291_s11 + $0x1c8] sm:$0xf] }
  0xa1   : > { %2472 = vmatmul.bf16.vlgmr.msrb.gmra.mxu3 %v5467_v44  ;;  %2478 = vmatpush.bf16.msra.mxu0 %v4162_v13  ;;  %v5003_v3 = vld [vmem:[%s5291_s11 + $0x944] sm:$0xf]  ;;  %v4354_v9 = vor.u32 %v4971_v1, %v4351_v2  ;;  %v4079_v11 = vld [vmem:[%s5291_s11 + $0x630] sm:$0xf0]  ;;  %v4798_v60 = vld [vmem:[%s5291_s11 + $0x2d4] sm:$0xf0] }
  0xa2   : > { %v4903_v10 = vld [vmem:[%s5291_s11 + $0x624] sm:$0xf]  ;;  %v4482_v13 = vor.u32 %v5003_v3, %v4479_v5  ;;  %v4335_v16 = vld [vmem:[%s5291_s11 + $0x830] sm:$0xf0]  ;;  %v3781_v61 = vld [vmem:[%s5291_s11 + $0x3c8] sm:$0xf] }
  0xa3   : > { %2491 = vmatpush.bf16.msra.mxu1 %v4290_v14  ;;  %2504 = vmatpush.bf16.msra.mxu2 %v4418_v15  ;;  %v4935_v12 = vld [vmem:[%s5291_s11 + $0x724] sm:$0xf]  ;;  %v4207_v14 = vld [vmem:[%s5291_s11 + $0x730] sm:$0xf0]  ;;  %v4830_v62 = vld [vmem:[%s5291_s11 + $0x3d4] sm:$0xf0] }
  0xa4   : > { %2517 = vmatpush.bf16.msra.mxu3 %v4546_v19  ;;  %v4967_v15 = vld [vmem:[%s5291_s11 + $0x824] sm:$0xf]  ;;  %v4463_v18 = vld [vmem:[%s5291_s11 + $0x930] sm:$0xf0]  ;;  %v4082_v19 = vor.u32 %v4903_v10, %v4079_v11  ;;  %v4210_v25 = vor.u32 %v4935_v12, %v4207_v14  ;;  %v3381_v2 = vld [vmem:[%s5291_s11 + $0xa8] sm:$0xf] }
  0xa5   : > { %2479 = vmatpush.bf16.msra.mxu0 %v4146_v29  ;;  %v4999_v17 = vld [vmem:[%s5291_s11 + $0x924] sm:$0xf]  ;;  %v4063_v24 = vld [vmem:[%s5291_s11 + $0x610] sm:$0xf0]  ;;  %v4338_v27 = vor.u32 %v4967_v15, %v4335_v16  ;;  %v4730_v3 = vld [vmem:[%s5291_s11 + $0xb4] sm:$0xf0] }
  0xa6   : > { %v4899_v23 = vld [vmem:[%s5291_s11 + $0x604] sm:$0xf]  ;;  %v4191_v29 = vld [vmem:[%s5291_s11 + $0x710] sm:$0xf0]  ;;  %v3509_v5 = vld [vmem:[%s5291_s11 + $0x1a8] sm:$0xf] }
  0xa7   : > { %2492 = vmatpush.bf16.msra.mxu1 %v4274_v30  ;;  %2505 = vmatpush.bf16.msra.mxu2 %v4402_v31  ;;  %v4931_v28 = vld [vmem:[%s5291_s11 + $0x704] sm:$0xf]  ;;  %v4466_v31 = vor.u32 %v4999_v17, %v4463_v18  ;;  %v4319_v32 = vld [vmem:[%s5291_s11 + $0x810] sm:$0xf0]  ;;  %v4066_v39 = vor.u32 %v4899_v23, %v4063_v24  ;;  %v4794_v10 = vld [vmem:[%s5291_s11 + $0x2b4] sm:$0xf0] }
  0xa8   : > { %2518 = vmatpush.bf16.msra.mxu3 %v4530_v35  ;;  %v4963_v30 = vld [vmem:[%s5291_s11 + $0x804] sm:$0xf]  ;;  %v4447_v34 = vld [vmem:[%s5291_s11 + $0x910] sm:$0xf0]  ;;  %v3413_v35 = vld [vmem:[%s5291_s11 + $0xe8] sm:$0xf] }
  0xa9   : > { %2480 = vmatpush.bf16.msra.mxu0 %v4130_v45  ;;  %v4995_v33 = vld [vmem:[%s5291_s11 + $0x904] sm:$0xf]  ;;  %v4802_v45 = vld [vmem:[%s5291_s11 + $0x2f4] sm:$0xf0]  ;;  %v3765_v11 = vld [vmem:[%s5291_s11 + $0x3a8] sm:$0xf] }
  0xaa   : > { %v4450_v50 = vor.u32 %v4995_v33, %v4447_v34  ;;  %v3670_v53 = vor.u32 %v4802_v45, %v3669_v43  ;;  %v4826_v12 = vld [vmem:[%s5291_s11 + $0x3b4] sm:$0xf0]  ;;  %v3365_v16 = vld [vmem:[%s5291_s11 + $0x88] sm:$0xf] }
  0xab   : > { %2493 = vmatpush.bf16.msra.mxu1 %v4258_v46  ;;  %2506 = vmatpush.bf16.msra.mxu2 %v4386_v47  ;;  %v4194_v46 = vor.u32 %v4931_v28, %v4191_v29  ;;  %v4322_v47 = vor.u32 %v4963_v30, %v4319_v32  ;;  %v4726_v17 = vld [vmem:[%s5291_s11 + $0x94] sm:$0xf0]  ;;  %v3493_v18 = vld [vmem:[%s5291_s11 + $0x188] sm:$0xf] }
  0xac   : > { %2519 = vmatpush.bf16.msra.mxu3 %v4514_v51  ;;  %v3414_v51 = vor.u32 %v4738_v36, %v3413_v35  ;;  %v4758_v23 = vld [vmem:[%s5291_s11 + $0x194] sm:$0xf0]  ;;  %v3621_v24 = vld [vmem:[%s5291_s11 + $0x288] sm:$0xf]  ;;  %v3366_v29 = vor.u32 %v4726_v17, %v3365_v16  ;;  %v5708_v35 = vld [vmem:[%s5700_s25] sm:$0xf] }
  0xad   : > { %2481 = vmatpush.bf16.msra.mxu0 %v4114_v57  ;;  %v3798_v57 = vor.u32 %v4834_v49, %v3797_v48  ;;  %v4822_v28 = vld [vmem:[%s5291_s11 + $0x394] sm:$0xf0]  ;;  %v3349_v30 = vld [vmem:[%s5291_s11 + $0x68] sm:$0xf] }
  0xae   : > { %v4722_v33 = vld [vmem:[%s5291_s11 + $0x74] sm:$0xf0]  ;;  %v3477_v34 = vld [vmem:[%s5291_s11 + $0x168] sm:$0xf] }
  0xaf   : > { %2494 = vmatpush.bf16.msra.mxu1 %v4242_v58  ;;  %2507 = vmatpush.bf16.msra.mxu2 %v4370_v59  ;;  %v4766_v58 = vld [vmem:[%s5291_s11 + $0x1d4] sm:$0xf0]  ;;  %v3653_v59 = vld [vmem:[%s5291_s11 + $0x2c8] sm:$0xf] }
  0xb0   : > { %2520 = vmatpush.bf16.msra.mxu3 %v4498_v63  ;;  %v3398_v63 = vor.u32 %v4734_v55, %v3397_v54  ;;  %v3526_v0 = vor.u32 %v4766_v58, %v3525_v56  ;;  %v3654_v1 = vor.u32 %v4798_v60, %v3653_v59  ;;  %v4754_v37 = vld [vmem:[%s5291_s11 + $0x174] sm:$0xf0]  ;;  %v3733_v43 = vld [vmem:[%s5291_s11 + $0x368] sm:$0xf] }
  0xb1   : > { %2482 = vmatpush.bf16.msra.mxu0 %v4098_v7  ;;  %v3782_v7 = vor.u32 %v4830_v62, %v3781_v61  ;;  %v4786_v40 = vld [vmem:[%s5291_s11 + $0x274] sm:$0xf0]  ;;  %v3478_v48 = vor.u32 %v4754_v37, %v3477_v34  ;;  %v3589_v55 = vld [vmem:[%s5291_s11 + $0x248] sm:$0xf] }
  0xb2   : > { %v4818_v45 = vld [vmem:[%s5291_s11 + $0x374] sm:$0xf0]  ;;  %v3301_v16 = vld [vmem:[%s5291_s11 + $0x8] sm:$0xf] }
  0xb3   : > { %2495 = vmatpush.bf16.msra.mxu1 %v4226_v8  ;;  %2508 = vmatpush.bf16.msra.mxu2 %v4354_v9  ;;  %v4762_v8 = vld [vmem:[%s5291_s11 + $0x1b4] sm:$0xf0]  ;;  %v3637_v9 = vld [vmem:[%s5291_s11 + $0x2a8] sm:$0xf] }
  0xb4   : > { %2521 = vmatpush.bf16.msra.mxu3 %v4482_v13  ;;  %v3382_v13 = vor.u32 %v4730_v3, %v3381_v2  ;;  %v3510_v14 = vor.u32 %v4762_v8, %v3509_v5  ;;  %v3638_v15 = vor.u32 %v4794_v10, %v3637_v9  ;;  %v4750_v54 = vld [vmem:[%s5291_s11 + $0x154] sm:$0xf0]  ;;  %v3445_v3 = vld [vmem:[%s5291_s11 + $0x128] sm:$0xf] }
  0xb5   : > { %2483 = vmatpush.bf16.msra.mxu0 %v4082_v19  ;;  %v3766_v19 = vor.u32 %v4826_v12, %v3765_v11  ;;  %v4782_v56 = vld [vmem:[%s5291_s11 + $0x254] sm:$0xf0]  ;;  %v3573_v9 = vld [vmem:[%s5291_s11 + $0x228] sm:$0xf] }
  0xb6   : > { %v4814_v58 = vld [vmem:[%s5291_s11 + $0x354] sm:$0xf0] }
  0xb7   : > { %2496 = vmatpush.bf16.msra.mxu1 %v4210_v25  ;;  %2509 = vmatpush.bf16.msra.mxu2 %v4338_v27  ;;  %v4790_v25 = vld [vmem:[%s5291_s11 + $0x294] sm:$0xf0]  ;;  %v3749_v27 = vld [vmem:[%s5291_s11 + $0x388] sm:$0xf] }
  0xb8   : > { %2522 = vmatpush.bf16.msra.mxu3 %v4466_v31  ;;  %v3494_v31 = vor.u32 %v4758_v23, %v3493_v18  ;;  %v3622_v32 = vor.u32 %v4790_v25, %v3621_v24  ;;  %v3750_v36 = vor.u32 %v4822_v28, %v3749_v27  ;;  %v4714_v2 = vld [vmem:[%s5291_s11 + $0x34] sm:$0xf0]  ;;  %v3429_v24 = vld [vmem:[%s5291_s11 + $0x108] sm:$0xf] }
  0xb9   : > { %2484 = vmatpush.bf16.msra.mxu0 %v4066_v39  ;;  %v3605_v39 = vld [vmem:[%s5291_s11 + $0x268] sm:$0xf]  ;;  %v4746_v8 = vld [vmem:[%s5291_s11 + $0x134] sm:$0xf0] }
  0xba   : > { %v3606_v49 = vor.u32 %v4786_v40, %v3605_v39  ;;  %v4778_v10 = vld [vmem:[%s5291_s11 + $0x234] sm:$0xf0]  ;;  %v3557_v27 = vld [vmem:[%s5291_s11 + $0x208] sm:$0xf] }
  0xbb   : > { %2497 = vmatpush.bf16.msra.mxu1 %v4194_v46  ;;  %2510 = vmatpush.bf16.msra.mxu2 %v4322_v47  ;;  %v3350_v46 = vor.u32 %v4722_v33, %v3349_v30  ;;  %v626_v47 = vperm.slane %v5708_v35, 0  ;;  %v4710_v17 = vld [vmem:[%s5291_s11 + $0x14] sm:$0xf0]  ;;  %v3574_v23 = vor.u32 %v4778_v10, %v3573_v9  ;;  %v3685_v30 = vld [vmem:[%s5291_s11 + $0x308] sm:$0xf] }
  0xbc   : > { %2523 = vmatpush.bf16.msra.mxu3 %v4450_v50  ;;  %2485 = vmatmul.bf16.vlgmr.msra.gmra.mxu0 %v5459_v38  ;;  %v3333_v50 = vld [vmem:[%s5291_s11 + $0x48] sm:$0xf]  ;;  %v4742_v25 = vld [vmem:[%s5291_s11 + $0x114] sm:$0xf0]  ;;  %v3302_v39 = vor.u32 %v4710_v17, %v3301_v16 }
  0xbd   : > { %2529 = vmatpush.bf16.msrb.mxu0 %v3414_v51  ;;  %v4718_v51 = vld [vmem:[%s5291_s11 + $0x54] sm:$0xf0]  ;;  %v3925_v33 = vld [vmem:[%s5291_s11 + $0x4e8] sm:$0xf] }
  0xbe   : > { %2511 = vmatmul.bf16.vlgmr.msra.gmra.mxu2 %v5533_v22  ;;  %2498 = vmatmul.bf16.vlgmr.msra.gmra.mxu1 %v5465_v42  ;;  %v3334_v60 = vor.u32 %v4718_v51, %v3333_v50  ;;  %v4866_v34 = vld [vmem:[%s5291_s11 + $0x4f4] sm:$0xf0]  ;;  %v4021_v9 = vld [vmem:[%s5291_s11 + $0x5a8] sm:$0xf] }
  0xbf   : > { %2542 = vmatpush.bf16.msrb.mxu1 %v3542_v52  ;;  %2555 = vmatpush.bf16.msrb.mxu2 %v3670_v53  ;;  %v3461_v52 = vld [vmem:[%s5291_s11 + $0x148] sm:$0xf]  ;;  %v3734_v53 = vor.u32 %v4818_v45, %v3733_v43  ;;  %v4898_v40 = vld [vmem:[%s5291_s11 + $0x5f4] sm:$0xf0] }
  0xc0   : > { %2568 = vmatpush.bf16.msrb.mxu3 %v3798_v57  ;;  %v3717_v57 = vld [vmem:[%s5291_s11 + $0x348] sm:$0xf]  ;;  %v2304_v5 = vpop.f32.mrf.mxu2  ;;  %v4930_v45 = vld [vmem:[%s5291_s11 + $0x6f4] sm:$0xf0] }
  0xc1   : > { %2524 = vmatmul.bf16.vlgmr.msra.gmra.mxu3 %v5538_v26  ;;  %2530 = vmatpush.bf16.msrb.mxu0 %v3398_v63  ;;  %v3462_v63 = vor.u32 %v4750_v54, %v3461_v52  ;;  %v2317_v12 = vpop.f32.mrf.mxu3  ;;  %v4181_v43 = vld [vmem:[%s5291_s11 + $0x6e8] sm:$0xf]  ;;  %v4962_v50 = vld [vmem:[%s5291_s11 + $0x7f4] sm:$0xf0] }
  0xc3   : > { %2543 = vmatpush.bf16.msrb.mxu1 %v3526_v0  ;;  %2556 = vmatpush.bf16.msrb.mxu2 %v3654_v1  ;;  %v3590_v0 = vor.u32 %v4782_v56, %v3589_v55  ;;  %v3317_v1 = vld [vmem:[%s5291_s11 + $0x28] sm:$0xf]  ;;  %v4182_v56 = vor.u32 %v4930_v45, %v4181_v43 }
  0xc4   : > { %2569 = vmatpush.bf16.msrb.mxu3 %v3782_v7  ;;  %v3718_v7 = vor.u32 %v4814_v58, %v3717_v57  ;;  %v3909_v57 = vld [vmem:[%s5291_s11 + $0x4c8] sm:$0xf]  ;;  %v4862_v58 = vld [vmem:[%s5291_s11 + $0x4d4] sm:$0xf0] }
  0xc5   : > { %2531 = vmatpush.bf16.msrb.mxu0 %v3382_v13  ;;  %v3701_v13 = vld [vmem:[%s5291_s11 + $0x328] sm:$0xf] }
  0xc6   : > { %v3989_v43 = vld [vmem:[%s5291_s11 + $0x568] sm:$0xf] }
  0xc7   : > { %2544 = vmatpush.bf16.msrb.mxu1 %v3510_v14  ;;  %2557 = vmatpush.bf16.msrb.mxu2 %v3638_v15  ;;  %v2278_v59 = vpop.f32.mrf.mxu0  ;;  %v2291_v62 = vpop.f32.mrf.mxu1  ;;  %v4810_v14 = vld [vmem:[%s5291_s11 + $0x334] sm:$0xf0]  ;;  %v3318_v15 = vor.u32 %v4714_v2, %v3317_v1  ;;  %v3910_v2 = vor.u32 %v4862_v58, %v3909_v57  ;;  %v3973_v58 = vld [vmem:[%s5291_s11 + $0x548] sm:$0xf] }
  0xc8   : > { %2570 = vmatpush.bf16.msrb.mxu3 %v3766_v19  ;;  %v2279_v61 = vadd.f32 %v2278_v59, %v626_v47  ;;  %v3446_v19 = vor.u32 %v4746_v8, %v3445_v3  ;;  %v3702_v28 = vor.u32 %v4810_v14, %v3701_v13  ;;  %v3430_v47 = vor.u32 %v4742_v25, %v3429_v24  ;;  %v2306_v51 = vpop.f32.mrf.mxu2  ;;  %v4037_v59 = vld [vmem:[%s5291_s11 + $0x5c8] sm:$0xf]  ;;  %v4958_v1 = vld [vmem:[%s5291_s11 + $0x7d4] sm:$0xf0] }
  0xc9   : > { %2532 = vmatpush.bf16.msrb.mxu0 %v3366_v29  ;;  %v4774_v29 = vld [vmem:[%s5291_s11 + $0x214] sm:$0xf0]  ;;  %v2319_v54 = vpop.f32.mrf.mxu3  ;;  %v4277_v14 = vld [vmem:[%s5291_s11 + $0x7a8] sm:$0xf] }
  0xca   : > { %v2292_v11 = vadd.f32 %v2291_v62, %v2279_v61  ;;  %v4894_v61 = vld [vmem:[%s5291_s11 + $0x5d4] sm:$0xf0]  ;;  %v4165_v62 = vld [vmem:[%s5291_s11 + $0x6c8] sm:$0xf] }
  0xcb   : > { %2545 = vmatpush.bf16.msrb.mxu1 %v3494_v31  ;;  %2558 = vmatpush.bf16.msrb.mxu2 %v3622_v32  ;;  %v4806_v31 = vld [vmem:[%s5291_s11 + $0x314] sm:$0xf0]  ;;  %v4038_v3 = vor.u32 %v4894_v61, %v4037_v59  ;;  %v4005_v24 = vld [vmem:[%s5291_s11 + $0x588] sm:$0xf] }
  0xcc   : > { %2571 = vmatpush.bf16.msrb.mxu3 %v3750_v36  ;;  %v2305_v18 = vadd.f32 %v2304_v5, %v2292_v11  ;;  %v4053_v36 = vld [vmem:[%s5291_s11 + $0x5e8] sm:$0xf]  ;;  %v3686_v52 = vor.u32 %v4806_v31, %v3685_v30  ;;  %v4858_v8 = vld [vmem:[%s5291_s11 + $0x4b4] sm:$0xf0] }
  0xcd   : > { %2533 = vmatpush.bf16.msrb.mxu0 %v3350_v46  ;;  %v4054_v55 = vor.u32 %v4898_v40, %v4053_v36  ;;  %v4890_v11 = vld [vmem:[%s5291_s11 + $0x5b4] sm:$0xf0]  ;;  %v4261_v30 = vld [vmem:[%s5291_s11 + $0x788] sm:$0xf] }
  0xce   : > { %v5740_v32 = vadd.f32 %v2317_v12, %v2305_v18  ;;  %v4149_v12 = vld [vmem:[%s5291_s11 + $0x6a8] sm:$0xf]  ;;  %v4922_v13 = vld [vmem:[%s5291_s11 + $0x6b4] sm:$0xf0]  ;;  %v4022_v17 = vor.u32 %v4890_v11, %v4021_v9 }
  0xcf   : > { %2546 = vmatpush.bf16.msrb.mxu1 %v3478_v48  ;;  %2559 = vmatpush.bf16.msrb.mxu2 %v3606_v49  ;;  %v2280_v37 = vpop.f32.mrf.mxu0  ;;  %v2293_v46 = vpop.f32.mrf.mxu1  ;;  %v3558_v48 = vor.u32 %v4774_v29, %v3557_v27  ;;  %v4309_v49 = vld [vmem:[%s5291_s11 + $0x7e8] sm:$0xf]  ;;  %v4150_v18 = vor.u32 %v4922_v13, %v4149_v12  ;;  %v4886_v27 = vld [vmem:[%s5291_s11 + $0x594] sm:$0xf0] }
  0xd0   : > { %2572 = vmatpush.bf16.msrb.mxu3 %v3734_v53  ;;  %v3926_v53 = vor.u32 %v4866_v34, %v3925_v33  ;;  %v4918_v29 = vld [vmem:[%s5291_s11 + $0x694] sm:$0xf0]  ;;  %v4006_v36 = vor.u32 %v4886_v27, %v4005_v24  ;;  %v4245_v51 = vld [vmem:[%s5291_s11 + $0x768] sm:$0xf] }
  0xd1   : > { %2534 = vmatpush.bf16.msrb.mxu0 %v3334_v60  ;;  %v4310_v60 = vor.u32 %v4962_v50, %v4309_v49  ;;  %v4950_v31 = vld [vmem:[%s5291_s11 + $0x794] sm:$0xf0]  ;;  %v4117_v49 = vld [vmem:[%s5291_s11 + $0x668] sm:$0xf] }
  0xd2   : > { %v4850_v40 = vld [vmem:[%s5291_s11 + $0x474] sm:$0xf0]  ;;  %v3829_v11 = vld [vmem:[%s5291_s11 + $0x428] sm:$0xf] }
  0xd3   : > { %2547 = vmatpush.bf16.msrb.mxu1 %v3462_v63  ;;  %2560 = vmatpush.bf16.msrb.mxu2 %v3590_v0  ;;  %v4926_v63 = vld [vmem:[%s5291_s11 + $0x6d4] sm:$0xf0]  ;;  %v4293_v0 = vld [vmem:[%s5291_s11 + $0x7c8] sm:$0xf] }
  0xd4   : > { %2573 = vmatpush.bf16.msrb.mxu3 %v3718_v7  ;;  %v4166_v5 = vor.u32 %v4926_v63, %v4165_v62  ;;  %v3893_v7 = vld [vmem:[%s5291_s11 + $0x4a8] sm:$0xf]  ;;  %v4294_v10 = vor.u32 %v4958_v1, %v4293_v0  ;;  %v4914_v50 = vld [vmem:[%s5291_s11 + $0x674] sm:$0xf0] }
  0xd5   : > { %2535 = vmatpush.bf16.msrb.mxu0 %v3318_v15  ;;  %v4954_v15 = vld [vmem:[%s5291_s11 + $0x7b4] sm:$0xf0]  ;;  %v3894_v16 = vor.u32 %v4858_v8, %v3893_v7  ;;  %v4101_v62 = vld [vmem:[%s5291_s11 + $0x648] sm:$0xf] }
  0xd6   : > { %v4278_v25 = vor.u32 %v4954_v15, %v4277_v14  ;;  %v4846_v57 = vld [vmem:[%s5291_s11 + $0x454] sm:$0xf0]  ;;  %v3957_v13 = vld [vmem:[%s5291_s11 + $0x528] sm:$0xf] }
  0xd7   : > { %2548 = vmatpush.bf16.msrb.mxu1 %v3446_v19  ;;  %2561 = vmatpush.bf16.msrb.mxu2 %v3574_v23  ;;  %v3877_v19 = vld [vmem:[%s5291_s11 + $0x488] sm:$0xf]  ;;  %v4854_v23 = vld [vmem:[%s5291_s11 + $0x494] sm:$0xf0] }
  0xd8   : > { %2574 = vmatpush.bf16.msrb.mxu3 %v3702_v28  ;;  %v4133_v28 = vld [vmem:[%s5291_s11 + $0x688] sm:$0xf]  ;;  %v3878_v33 = vor.u32 %v4854_v23, %v3877_v19  ;;  %v4878_v61 = vld [vmem:[%s5291_s11 + $0x554] sm:$0xf0] }
  0xd9   : > { %2536 = vmatpush.bf16.msrb.mxu0 %v3302_v39  ;;  %v4134_v37 = vor.u32 %v4918_v29, %v4133_v28  ;;  %v3861_v39 = vld [vmem:[%s5291_s11 + $0x468] sm:$0xf]  ;;  %v4910_v63 = vld [vmem:[%s5291_s11 + $0x654] sm:$0xf0]  ;;  %v3974_v9 = vor.u32 %v4878_v61, %v3973_v58 }
  0xda   : > { %v3862_v54 = vor.u32 %v4850_v40, %v3861_v39  ;;  %v4842_v12 = vld [vmem:[%s5291_s11 + $0x434] sm:$0xf0]  ;;  %v4213_v19 = vld [vmem:[%s5291_s11 + $0x728] sm:$0xf] }
  0xdb   : > { %2549 = vmatpush.bf16.msrb.mxu1 %v3430_v47  ;;  %2562 = vmatpush.bf16.msrb.mxu2 %v3558_v48  ;;  %v2330_v34 = vpop.f32.mrf.mxu0  ;;  %v4262_v47 = vor.u32 %v4950_v31, %v4261_v30  ;;  %v4882_v48 = vld [vmem:[%s5291_s11 + $0x574] sm:$0xf0]  ;;  %v3830_v24 = vor.u32 %v4842_v12, %v3829_v11  ;;  %v3941_v30 = vld [vmem:[%s5291_s11 + $0x508] sm:$0xf] }
  0xdc   : > { %2575 = vmatpush.bf16.msrb.mxu3 %v3686_v52  ;;  %2537 = vmatmul.bf16.vlgmr.msrb.gmra.mxu0 %v5404_v20  ;;  %v2331_v45 = vadd.f32 %v2330_v34, %v5740_v32  ;;  %v4946_v52 = vld [vmem:[%s5291_s11 + $0x774] sm:$0xf0]  ;;  %v3990_v32 = vor.u32 %v4882_v48, %v3989_v43  ;;  %v4197_v39 = vld [vmem:[%s5291_s11 + $0x708] sm:$0xf] }
  0xdd   : > { %2581 = vmatpush.bf16.msra.mxu0 %v3926_v53  ;;  %v2343_v46 = vpop.f32.mrf.mxu1  ;;  %v4938_v23 = vld [vmem:[%s5291_s11 + $0x734] sm:$0xf0]  ;;  %v4549_v61 = vld [vmem:[%s5291_s11 + $0x9c8] sm:$0xf] }
  0xde   : > { %2563 = vmatmul.bf16.vlgmr.msrb.gmra.mxu2 %v5390_v4  ;;  %2550 = vmatmul.bf16.vlgmr.msrb.gmra.mxu1 %v5407_v21  ;;  %v2344_v53 = vadd.f32 %v2343_v46, %v2331_v45  ;;  %v4838_v27 = vld [vmem:[%s5291_s11 + $0x414] sm:$0xf0]  ;;  %v4437_v45 = vld [vmem:[%s5291_s11 + $0x8e8] sm:$0xf] }
  0xdf   : > { %2594 = vmatpush.bf16.msra.mxu1 %v4054_v55  ;;  %2607 = vmatpush.bf16.msra.mxu2 %v4182_v56  ;;  %v4118_v55 = vor.u32 %v4914_v50, %v4117_v49  ;;  %v3845_v56 = vld [vmem:[%s5291_s11 + $0x448] sm:$0xf]  ;;  %v4870_v31 = vld [vmem:[%s5291_s11 + $0x514] sm:$0xf0]  ;;  %v4736_v50 = vld [vmem:[%s5291_s11 + $0xec] sm:$0xf] }
  0xe0   : > { %2620 = vmatpush.bf16.msra.mxu3 %v4310_v60  ;;  %v4246_v60 = vor.u32 %v4946_v52, %v4245_v51  ;;  %v4934_v40 = vld [vmem:[%s5291_s11 + $0x714] sm:$0xf0]  ;;  %v3415_v51 = vld [vmem:[%s5291_s11 + $0xf8] sm:$0xf0]  ;;  %v3942_v52 = vor.u32 %v4870_v31, %v3941_v30  ;;  %v4533_v12 = vld [vmem:[%s5291_s11 + $0x9a8] sm:$0xf] }
  0xe1   : > { %2576 = vmatmul.bf16.vlgmr.msrb.gmra.mxu3 %v5393_v6  ;;  %2582 = vmatpush.bf16.msra.mxu0 %v3910_v2  ;;  %v2356_v59 = vpop.f32.mrf.mxu2  ;;  %v4229_v2 = vld [vmem:[%s5291_s11 + $0x748] sm:$0xf]  ;;  %v4994_v46 = vld [vmem:[%s5291_s11 + $0x8f4] sm:$0xf0]  ;;  %v3418_v58 = vor.u32 %v4736_v50, %v3415_v51  ;;  %v4724_v31 = vld [vmem:[%s5291_s11 + $0x8c] sm:$0xf] }
  0xe2   : > { %v2357_v0 = vadd.f32 %v2356_v59, %v2344_v53  ;;  %v5026_v49 = vld [vmem:[%s5291_s11 + $0x9f4] sm:$0xf0]  ;;  %v4421_v59 = vld [vmem:[%s5291_s11 + $0x8c8] sm:$0xf] }
  0xe3   : > { %2595 = vmatpush.bf16.msra.mxu1 %v4038_v3  ;;  %2608 = vmatpush.bf16.msra.mxu2 %v4166_v5  ;;  %v4942_v3 = vld [vmem:[%s5291_s11 + $0x754] sm:$0xf0]  ;;  %v3846_v5 = vor.u32 %v4846_v57, %v3845_v56  ;;  %v2332_v8 = vpop.f32.mrf.mxu0  ;;  %v4438_v56 = vor.u32 %v4994_v46, %v4437_v45 }
  0xe4   : > { %2621 = vmatpush.bf16.msra.mxu3 %v4294_v10  ;;  %v2369_v1 = vpop.f32.mrf.mxu3  ;;  %v4102_v10 = vor.u32 %v4910_v63, %v4101_v62  ;;  %v4230_v15 = vor.u32 %v4942_v3, %v4229_v2  ;;  %v5022_v63 = vld [vmem:[%s5291_s11 + $0x9d4] sm:$0xf0]  ;;  %v4764_v2 = vld [vmem:[%s5291_s11 + $0x1cc] sm:$0xf]  ;;  %v3527_v3 = vld [vmem:[%s5291_s11 + $0x1d8] sm:$0xf0] }
  0xe5   : > { %2583 = vmatpush.bf16.msra.mxu0 %v3894_v16  ;;  %v5795_v7 = vadd.f32 %v2369_v1, %v2357_v0  ;;  %v2345_v14 = vpop.f32.mrf.mxu1  ;;  %v4874_v16 = vld [vmem:[%s5291_s11 + $0x534] sm:$0xf0]  ;;  %v4732_v0 = vld [vmem:[%s5291_s11 + $0xcc] sm:$0xf]  ;;  %v3399_v1 = vld [vmem:[%s5291_s11 + $0xd8] sm:$0xf0]  ;;  %v4550_v8 = vor.u32 %v5022_v63, %v4549_v61 }
  0xe6   : > { %v3958_v28 = vor.u32 %v4874_v16, %v3957_v13  ;;  %v4986_v11 = vld [vmem:[%s5291_s11 + $0x8b4] sm:$0xf0]  ;;  %v3530_v13 = vor.u32 %v4764_v2, %v3527_v3  ;;  %v3383_v16 = vld [vmem:[%s5291_s11 + $0xb8] sm:$0xf0]  ;;  %v4716_v63 = vld [vmem:[%s5291_s11 + $0x4c] sm:$0xf] }
  0xe7   : > { %2596 = vmatpush.bf16.msra.mxu1 %v4022_v17  ;;  %2609 = vmatpush.bf16.msra.mxu2 %v4150_v18  ;;  %v4085_v17 = vld [vmem:[%s5291_s11 + $0x628] sm:$0xf]  ;;  %v4906_v18 = vld [vmem:[%s5291_s11 + $0x634] sm:$0xf0]  ;;  %v4748_v2 = vld [vmem:[%s5291_s11 + $0x14c] sm:$0xf] }
  0xe8   : > { %2622 = vmatpush.bf16.msra.mxu3 %v4278_v25  ;;  %v3813_v25 = vld [vmem:[%s5291_s11 + $0x408] sm:$0xf]  ;;  %v4086_v29 = vor.u32 %v4906_v18, %v4085_v17  ;;  %v5018_v14 = vld [vmem:[%s5291_s11 + $0x9b4] sm:$0xf0]  ;;  %v4760_v17 = vld [vmem:[%s5291_s11 + $0x1ac] sm:$0xf] }
  0xe9   : > { %2584 = vmatpush.bf16.msra.mxu0 %v3878_v33  ;;  %v4069_v33 = vld [vmem:[%s5291_s11 + $0x608] sm:$0xf]  ;;  %v2358_v34 = vpop.f32.mrf.mxu2  ;;  %v3814_v48 = vor.u32 %v4838_v27, %v3813_v25  ;;  %v3511_v18 = vld [vmem:[%s5291_s11 + $0x1b8] sm:$0xf0]  ;;  %v4982_v27 = vld [vmem:[%s5291_s11 + $0x894] sm:$0xf0] }
  0xea   : > { %v4389_v25 = vld [vmem:[%s5291_s11 + $0x888] sm:$0xf]  ;;  %v5014_v30 = vld [vmem:[%s5291_s11 + $0x994] sm:$0xf0]  ;;  %v3463_v3 = vld [vmem:[%s5291_s11 + $0x158] sm:$0xf0] }
  0xeb   : > { %2597 = vmatpush.bf16.msra.mxu1 %v4006_v36  ;;  %2610 = vmatpush.bf16.msra.mxu2 %v4134_v37  ;;  %v4214_v36 = vor.u32 %v4938_v23, %v4213_v19  ;;  %v4902_v37 = vld [vmem:[%s5291_s11 + $0x614] sm:$0xf0]  ;;  %v4534_v23 = vor.u32 %v5018_v14, %v4533_v12 }
  0xec   : > { %2623 = vmatpush.bf16.msra.mxu3 %v4262_v47  ;;  %v2371_v43 = vpop.f32.mrf.mxu3  ;;  %v4565_v47 = vld [vmem:[%s5291_s11 + $0x9e8] sm:$0xf]  ;;  %v4070_v53 = vor.u32 %v4902_v37, %v4069_v33  ;;  %v3367_v33 = vld [vmem:[%s5291_s11 + $0x98] sm:$0xf0]  ;;  %v4970_v14 = vld [vmem:[%s5291_s11 + $0x834] sm:$0xf0] }
  0xed   : > { %2585 = vmatpush.bf16.msra.mxu0 %v3862_v54  ;;  %v4768_v54 = vld [vmem:[%s5291_s11 + $0x1ec] sm:$0xf]  ;;  %v4566_v57 = vor.u32 %v5026_v49, %v4565_v47  ;;  %v3495_v37 = vld [vmem:[%s5291_s11 + $0x198] sm:$0xf0]  ;;  %v3370_v46 = vor.u32 %v4724_v31, %v3367_v33  ;;  %v4373_v47 = vld [vmem:[%s5291_s11 + $0x868] sm:$0xf] }
  0xee   : > { %v4501_v49 = vld [vmem:[%s5291_s11 + $0x968] sm:$0xf]  ;;  %v4998_v33 = vld [vmem:[%s5291_s11 + $0x914] sm:$0xf0] }
  0xef   : > { %2598 = vmatpush.bf16.msra.mxu1 %v3990_v32  ;;  %2611 = vmatpush.bf16.msra.mxu2 %v4118_v55  ;;  %v3543_v32 = vld [vmem:[%s5291_s11 + $0x1f8] sm:$0xf0]  ;;  %v4198_v55 = vor.u32 %v4934_v40, %v4197_v39  ;;  %v4390_v40 = vor.u32 %v4982_v27, %v4389_v25  ;;  %v4325_v27 = vld [vmem:[%s5291_s11 + $0x808] sm:$0xf] }
  0xf0   : > { %2624 = vmatpush.bf16.msra.mxu3 %v4246_v60  ;;  %v4990_v60 = vld [vmem:[%s5291_s11 + $0x8d4] sm:$0xf0]  ;;  %v3546_v62 = vor.u32 %v4768_v54, %v3543_v32  ;;  %v4752_v54 = vld [vmem:[%s5291_s11 + $0x16c] sm:$0xf]  ;;  %v3479_v32 = vld [vmem:[%s5291_s11 + $0x178] sm:$0xf0] }
  0xf1   : > { %2586 = vmatpush.bf16.msra.mxu0 %v3846_v5  ;;  %v4422_v5 = vor.u32 %v4990_v60, %v4421_v59  ;;  %v4974_v59 = vld [vmem:[%s5291_s11 + $0x854] sm:$0xf0]  ;;  %v4485_v60 = vld [vmem:[%s5291_s11 + $0x948] sm:$0xf]  ;;  %v3482_v61 = vor.u32 %v4752_v54, %v3479_v32  ;;  %v4896_v32 = vld [vmem:[%s5291_s11 + $0x5ec] sm:$0xf] }
  0xf2   : > { %v4453_v31 = vld [vmem:[%s5291_s11 + $0x908] sm:$0xf] }
  0xf3   : > { %2599 = vmatpush.bf16.msra.mxu1 %v3974_v9  ;;  %2612 = vmatpush.bf16.msra.mxu2 %v4102_v10  ;;  %v3402_v9 = vor.u32 %v4732_v0, %v3399_v1  ;;  %v4405_v10 = vld [vmem:[%s5291_s11 + $0x8a8] sm:$0xf]  ;;  %v3335_v0 = vld [vmem:[%s5291_s11 + $0x58] sm:$0xf0] }
  0xf4   : > { %2625 = vmatpush.bf16.msra.mxu3 %v4230_v15  ;;  %v4728_v15 = vld [vmem:[%s5291_s11 + $0xac] sm:$0xf]  ;;  %v4406_v19 = vor.u32 %v4986_v11, %v4405_v10  ;;  %v3338_v12 = vor.u32 %v4716_v63, %v3335_v0  ;;  %v3783_v0 = vld [vmem:[%s5291_s11 + $0x3d8] sm:$0xf0] }
  0xf5   : > { %2587 = vmatpush.bf16.msra.mxu0 %v3830_v24  ;;  %v3386_v24 = vor.u32 %v4728_v15, %v3383_v16  ;;  %v4469_v15 = vld [vmem:[%s5291_s11 + $0x928] sm:$0xf]  ;;  %v3466_v16 = vor.u32 %v4748_v2, %v3463_v3  ;;  %v4860_v2 = vld [vmem:[%s5291_s11 + $0x4cc] sm:$0xf]  ;;  %v3911_v3 = vld [vmem:[%s5291_s11 + $0x4d8] sm:$0xf0] }
  0xf7   : > { %2600 = vmatpush.bf16.msra.mxu1 %v3958_v28  ;;  %2613 = vmatpush.bf16.msra.mxu2 %v4086_v29  ;;  %v4517_v28 = vld [vmem:[%s5291_s11 + $0x988] sm:$0xf]  ;;  %v3514_v29 = vor.u32 %v4760_v17, %v3511_v18  ;;  %v5002_v17 = vld [vmem:[%s5291_s11 + $0x934] sm:$0xf0]  ;;  %v4712_v18 = vld [vmem:[%s5291_s11 + $0x2c] sm:$0xf] }
  0xf8   : > { %2626 = vmatpush.bf16.msra.mxu3 %v4214_v36  ;;  %v4756_v36 = vld [vmem:[%s5291_s11 + $0x18c] sm:$0xf]  ;;  %v4518_v45 = vor.u32 %v5014_v30, %v4517_v28  ;;  %v4966_v28 = vld [vmem:[%s5291_s11 + $0x814] sm:$0xf0] }
  0xf9   : > { %2588 = vmatpush.bf16.msra.mxu0 %v3814_v48  ;;  %v2382_v34 = vpop.f32.mrf.mxu0  ;;  %v4978_v48 = vld [vmem:[%s5291_s11 + $0x874] sm:$0xf0]  ;;  %v3498_v50 = vor.u32 %v4756_v36, %v3495_v37  ;;  %v3303_v37 = vld [vmem:[%s5291_s11 + $0x18] sm:$0xf0] }
  0xfa   : > { %v2383_v39 = vadd.f32 %v2382_v34, %v5795_v7  ;;  %v4720_v7 = vld [vmem:[%s5291_s11 + $0x6c] sm:$0xf] }
  0xfb   : > { %2601 = vmatpush.bf16.msra.mxu1 %v3942_v52  ;;  %2614 = vmatpush.bf16.msra.mxu2 %v4070_v53  ;;  %v2395_v43 = vpop.f32.mrf.mxu1  ;;  %v5010_v52 = vld [vmem:[%s5291_s11 + $0x974] sm:$0xf0]  ;;  %v3351_v53 = vld [vmem:[%s5291_s11 + $0x78] sm:$0xf0]  ;;  %v4708_v34 = vld [vmem:[%s5291_s11 + $0xc] sm:$0xf] }
  0xfc   : > { %2627 = vmatpush.bf16.msra.mxu3 %v4198_v55  ;;  %2589 = vmatmul.bf16.vlgmr.msra.gmra.mxu0 %v5463_v41  ;;  %v5853_v51 = vadd.f32 %v2395_v43, %v2383_v39  ;;  %v4374_v55 = vor.u32 %v4978_v48, %v4373_v47  ;;  %v4740_v39 = vld [vmem:[%s5291_s11 + $0x10c] sm:$0xf]  ;;  %v3306_v54 = vor.u32 %v4708_v34, %v3303_v37  ;;  %v3751_v34 = vld [vmem:[%s5291_s11 + $0x398] sm:$0xf0] }
  0xfd   : > { %2633 = vmatpush.bf16.msrb.mxu0 %v4438_v56  ;;  %v4502_v56 = vor.u32 %v5010_v52, %v4501_v49  ;;  %v4832_v47 = vld [vmem:[%s5291_s11 + $0x3ec] sm:$0xf]  ;;  %v4326_v49 = vor.u32 %v4966_v28, %v4325_v27 }
  0xfe   : > { %2615 = vmatmul.bf16.vlgmr.msra.gmra.mxu2 %v5459_v38  ;;  %2602 = vmatmul.bf16.vlgmr.msra.gmra.mxu1 %v5467_v44  ;;  %v4864_v52 = vld [vmem:[%s5291_s11 + $0x4ec] sm:$0xf] }
  0xff   : > { %2646 = vmatpush.bf16.msrb.mxu1 %v4566_v57  ;;  %2659 = vmatpush.bf16.msrb.mxu2 %v3418_v58  ;;  %v3354_v57 = vor.u32 %v4720_v7, %v3351_v53  ;;  %v4357_v58 = vld [vmem:[%s5291_s11 + $0x848] sm:$0xf]  ;;  %v3927_v7 = vld [vmem:[%s5291_s11 + $0x4f8] sm:$0xf0]  ;;  %v4454_v53 = vor.u32 %v4998_v33, %v4453_v31  ;;  %v4820_v31 = vld [vmem:[%s5291_s11 + $0x38c] sm:$0xf] }
 0x100   : > { %2672 = vmatpush.bf16.msrb.mxu3 %v3546_v62  ;;  %v5006_v62 = vld [vmem:[%s5291_s11 + $0x954] sm:$0xf0]  ;;  %v4884_v37 = vld [vmem:[%s5291_s11 + $0x58c] sm:$0xf] }
 0x101   : > { %2628 = vmatmul.bf16.vlgmr.msra.gmra.mxu3 %v5465_v42  ;;  %2634 = vmatpush.bf16.msrb.mxu0 %v4422_v5  ;;  %v5866_v1 = vpop.f32.mrf.mxu2  ;;  %v4486_v11 = vor.u32 %v5006_v62, %v4485_v60  ;;  %v4796_v60 = vld [vmem:[%s5291_s11 + $0x2cc] sm:$0xf] }
 0x102   : > { %v4828_v62 = vld [vmem:[%s5291_s11 + $0x3cc] sm:$0xf] }
 0x103   : > { %2647 = vmatpush.bf16.msrb.mxu1 %v4550_v8  ;;  %2660 = vmatpush.bf16.msrb.mxu2 %v3402_v9  ;;  %v2384_v8 = vpop.f32.mrf.mxu0  ;;  %v4358_v9 = vor.u32 %v4974_v59, %v4357_v58  ;;  %v2397_v10 = vpop.f32.mrf.mxu1  ;;  %v3930_v59 = vor.u32 %v4864_v52, %v3927_v7  ;;  %v3735_v52 = vld [vmem:[%s5291_s11 + $0x378] sm:$0xf0]  ;;  %v4848_v7 = vld [vmem:[%s5291_s11 + $0x46c] sm:$0xf] }
 0x104   : > { %2673 = vmatpush.bf16.msrb.mxu3 %v3530_v13  ;;  %v5870_v5 = vpop.f32.mrf.mxu3  ;;  %v4341_v13 = vld [vmem:[%s5291_s11 + $0x828] sm:$0xf]  ;;  %v4892_v8 = vld [vmem:[%s5291_s11 + $0x5cc] sm:$0xf] }
 0x105   : > { %2635 = vmatpush.bf16.msrb.mxu0 %v4406_v19  ;;  %v3319_v19 = vld [vmem:[%s5291_s11 + $0x38] sm:$0xf0]  ;;  %v4342_v25 = vor.u32 %v4970_v14, %v4341_v13  ;;  %v4792_v13 = vld [vmem:[%s5291_s11 + $0x2ac] sm:$0xf] }
 0x106   : > { %v3322_v30 = vor.u32 %v4712_v18, %v3319_v19  ;;  %v3639_v14 = vld [vmem:[%s5291_s11 + $0x2b8] sm:$0xf0]  ;;  %v4856_v18 = vld [vmem:[%s5291_s11 + $0x4ac] sm:$0xf] }
 0x107   : > { %2648 = vmatpush.bf16.msrb.mxu1 %v4534_v23  ;;  %2661 = vmatpush.bf16.msrb.mxu2 %v3386_v24  ;;  %v4744_v23 = vld [vmem:[%s5291_s11 + $0x12c] sm:$0xf]  ;;  %v3447_v24 = vld [vmem:[%s5291_s11 + $0x138] sm:$0xf0] }
 0x108   : > { %2674 = vmatpush.bf16.msrb.mxu3 %v3514_v29  ;;  %v4470_v29 = vor.u32 %v5002_v17, %v4469_v15  ;;  %v3450_v36 = vor.u32 %v4744_v23, %v3447_v24  ;;  %v4824_v15 = vld [vmem:[%s5291_s11 + $0x3ac] sm:$0xf]  ;;  %v3767_v17 = vld [vmem:[%s5291_s11 + $0x3b8] sm:$0xf0] }
 0x109   : > { %2636 = vmatpush.bf16.msrb.mxu0 %v4390_v40  ;;  %v3431_v40 = vld [vmem:[%s5291_s11 + $0x118] sm:$0xf0]  ;;  %v2410_v43 = vpop.f32.mrf.mxu2  ;;  %v4888_v23 = vld [vmem:[%s5291_s11 + $0x5ac] sm:$0xf]  ;;  %v3770_v27 = vor.u32 %v4824_v15, %v3767_v17 }
 0x10a   : > { %v3895_v19 = vld [vmem:[%s5291_s11 + $0x4b8] sm:$0xf0]  ;;  %v3754_v43 = vor.u32 %v4820_v31, %v3751_v34  ;;  %v4776_v15 = vld [vmem:[%s5291_s11 + $0x22c] sm:$0xf] }
 0x10b   : > { %2649 = vmatpush.bf16.msrb.mxu1 %v4518_v45  ;;  %2662 = vmatpush.bf16.msrb.mxu2 %v3370_v46  ;;  %v4800_v45 = vld [vmem:[%s5291_s11 + $0x2ec] sm:$0xf]  ;;  %v3671_v46 = vld [vmem:[%s5291_s11 + $0x2f8] sm:$0xf0]  ;;  %v3898_v28 = vor.u32 %v4856_v18, %v3895_v19 }
 0x10c   : > { %2675 = vmatpush.bf16.msrb.mxu3 %v3498_v50  ;;  %v2423_v48 = vpop.f32.mrf.mxu3  ;;  %v3799_v50 = vld [vmem:[%s5291_s11 + $0x3f8] sm:$0xf0]  ;;  %v4808_v17 = vld [vmem:[%s5291_s11 + $0x32c] sm:$0xf] }
 0x10d   : > { %2637 = vmatpush.bf16.msrb.mxu0 %v4374_v55  ;;  %v4055_v55 = vld [vmem:[%s5291_s11 + $0x5f8] sm:$0xf0]  ;;  %v3802_v58 = vor.u32 %v4832_v47, %v3799_v50  ;;  %v4816_v48 = vld [vmem:[%s5291_s11 + $0x36c] sm:$0xf] }
 0x10e   : > { %v4058_v63 = vor.u32 %v4896_v32, %v4055_v55  ;;  %v4023_v24 = vld [vmem:[%s5291_s11 + $0x5b8] sm:$0xf0]  ;;  %v627_v55 = vperm.slane %v5708_v35, 1  ;;  %v4844_v35 = vld [vmem:[%s5291_s11 + $0x44c] sm:$0xf] }
 0x10f   : > { %2650 = vmatpush.bf16.msrb.mxu1 %v4502_v56  ;;  %2663 = vmatpush.bf16.msrb.mxu2 %v3354_v57  ;;  %v3434_v56 = vor.u32 %v4740_v39, %v3431_v40  ;;  %v3674_v57 = vor.u32 %v4800_v45, %v3671_v46  ;;  %v4026_v33 = vor.u32 %v4888_v23, %v4023_v24  ;;  %v4007_v39 = vld [vmem:[%s5291_s11 + $0x598] sm:$0xf0]  ;;  %v4784_v46 = vld [vmem:[%s5291_s11 + $0x26c] sm:$0xf] }
 0x110   : > { %2676 = vmatpush.bf16.msrb.mxu3 %v3482_v61  ;;  %v3655_v61 = vld [vmem:[%s5291_s11 + $0x2d8] sm:$0xf0]  ;;  %v4010_v50 = vor.u32 %v4884_v37, %v4007_v39  ;;  %v4840_v24 = vld [vmem:[%s5291_s11 + $0x42c] sm:$0xf] }
 0x111   : > { %2638 = vmatpush.bf16.msrb.mxu0 %v4358_v9  ;;  %v4039_v9 = vld [vmem:[%s5291_s11 + $0x5d8] sm:$0xf0]  ;;  %v3658_v10 = vor.u32 %v4796_v60, %v3655_v61  ;;  %v4812_v61 = vld [vmem:[%s5291_s11 + $0x34c] sm:$0xf] }
 0x112   : > { %v3607_v47 = vld [vmem:[%s5291_s11 + $0x278] sm:$0xf0]  ;;  %v4836_v37 = vld [vmem:[%s5291_s11 + $0x40c] sm:$0xf] }
 0x113   : > { %2651 = vmatpush.bf16.msrb.mxu1 %v4486_v11  ;;  %2664 = vmatpush.bf16.msrb.mxu2 %v3338_v12  ;;  %v3786_v11 = vor.u32 %v4828_v62, %v3783_v0  ;;  %v3914_v12 = vor.u32 %v4860_v2, %v3911_v3  ;;  %v3991_v32 = vld [vmem:[%s5291_s11 + $0x578] sm:$0xf0] }
 0x114   : > { %2677 = vmatpush.bf16.msrb.mxu3 %v3466_v16  ;;  %v4042_v16 = vor.u32 %v4892_v8, %v4039_v9  ;;  %v3591_v60 = vld [vmem:[%s5291_s11 + $0x258] sm:$0xf0]  ;;  %v4876_v8 = vld [vmem:[%s5291_s11 + $0x54c] sm:$0xf] }
 0x115   : > { %2639 = vmatpush.bf16.msrb.mxu0 %v4342_v25  ;;  %v3642_v25 = vor.u32 %v4792_v13, %v3639_v14  ;;  %v3719_v0 = vld [vmem:[%s5291_s11 + $0x358] sm:$0xf0] }
 0x116   : > { %v3847_v2 = vld [vmem:[%s5291_s11 + $0x458] sm:$0xf0]  ;;  %v3722_v13 = vor.u32 %v4812_v61, %v3719_v0  ;;  %v4924_v0 = vld [vmem:[%s5291_s11 + $0x6cc] sm:$0xf] }
 0x117   : > { %2652 = vmatpush.bf16.msrb.mxu1 %v4470_v29  ;;  %2665 = vmatpush.bf16.msrb.mxu2 %v3322_v30  ;;  %v4788_v29 = vld [vmem:[%s5291_s11 + $0x28c] sm:$0xf]  ;;  %v3623_v30 = vld [vmem:[%s5291_s11 + $0x298] sm:$0xf0]  ;;  %v3850_v14 = vor.u32 %v4844_v35, %v3847_v2 }
 0x118   : > { %2678 = vmatpush.bf16.msrb.mxu3 %v3450_v36  ;;  %v3879_v36 = vld [vmem:[%s5291_s11 + $0x498] sm:$0xf0]  ;;  %v4956_v2 = vld [vmem:[%s5291_s11 + $0x7cc] sm:$0xf] }
 0x119   : > { %2640 = vmatpush.bf16.msrb.mxu0 %v4326_v49  ;;  %v5924_v40 = vpop.f32.mrf.mxu0  ;;  %v3975_v9 = vld [vmem:[%s5291_s11 + $0x558] sm:$0xf0] }
 0x11a   : > { %v3978_v19 = vor.u32 %v4876_v8, %v3975_v9  ;;  %v3703_v23 = vld [vmem:[%s5291_s11 + $0x338] sm:$0xf0]  ;;  %v4988_v9 = vld [vmem:[%s5291_s11 + $0x8cc] sm:$0xf] }
 0x11b   : > { %2653 = vmatpush.bf16.msrb.mxu1 %v4454_v53  ;;  %2666 = vmatpush.bf16.msrb.mxu2 %v3306_v54  ;;  %v5929_v49 = vpop.f32.mrf.mxu1  ;;  %v3863_v53 = vld [vmem:[%s5291_s11 + $0x478] sm:$0xf0]  ;;  %v4880_v54 = vld [vmem:[%s5291_s11 + $0x56c] sm:$0xf] }
 0x11c   : > { %2679 = vmatpush.bf16.msrb.mxu3 %v3434_v56  ;;  %2641 = vmatmul.bf16.vlgmr.msrb.gmra.mxu0 %v5533_v22  ;;  %v3610_v56 = vor.u32 %v4784_v46, %v3607_v47  ;;  %v3943_v46 = vld [vmem:[%s5291_s11 + $0x518] sm:$0xf0]  ;;  %v4928_v47 = vld [vmem:[%s5291_s11 + $0x6ec] sm:$0xf] }
 0x11d   : > { %2685 = vmatpush.bf16.msra.mxu0 %v3674_v57  ;;  %v3738_v57 = vor.u32 %v4816_v48, %v3735_v52  ;;  %v4183_v48 = vld [vmem:[%s5291_s11 + $0x6f8] sm:$0xf0] }
 0x11e   : > { %2654 = vmatmul.bf16.vlgmr.msrb.gmra.mxu1 %v5538_v26  ;;  %2667 = vmatmul.bf16.vlgmr.msrb.gmra.mxu2 %v5404_v20  ;;  %v4852_v20 = vld [vmem:[%s5291_s11 + $0x48c] sm:$0xf]  ;;  %v4167_v35 = vld [vmem:[%s5291_s11 + $0x6d8] sm:$0xf0] }
 0x11f   : > { %2698 = vmatpush.bf16.msra.mxu1 %v3802_v58  ;;  %2711 = vmatpush.bf16.msra.mxu2 %v3930_v59  ;;  %v3882_v45 = vor.u32 %v4852_v20, %v3879_v36  ;;  %v3866_v58 = vor.u32 %v4848_v7, %v3863_v53  ;;  %v4780_v59 = vld [vmem:[%s5291_s11 + $0x24c] sm:$0xf]  ;;  %v3687_v36 = vld [vmem:[%s5291_s11 + $0x318] sm:$0xf0] }
 0x120   : > { %2724 = vmatpush.bf16.msra.mxu3 %v4058_v63  ;;  %v3994_v63 = vor.u32 %v4880_v54, %v3991_v32  ;;  %v4804_v20 = vld [vmem:[%s5291_s11 + $0x30c] sm:$0xf]  ;;  %v4311_v7 = vld [vmem:[%s5291_s11 + $0x7f8] sm:$0xf0] }
 0x121   : > { %2686 = vmatpush.bf16.msra.mxu0 %v3658_v10  ;;  %2680 = vmatmul.bf16.vlgmr.msrb.gmra.mxu3 %v5407_v21  ;;  %v3626_v21 = vor.u32 %v4788_v29, %v3623_v30  ;;  %v5940_v62 = vpop.f32.mrf.mxu2  ;;  %v3594_v10 = vor.u32 %v4780_v59, %v3591_v60  ;;  %v4772_v29 = vld [vmem:[%s5291_s11 + $0x20c] sm:$0xf]  ;;  %v3559_v30 = vld [vmem:[%s5291_s11 + $0x218] sm:$0xf0]  ;;  %v4186_v60 = vor.u32 %v4928_v47, %v4183_v48 }
 0x122   : > { %v3562_v52 = vor.u32 %v4772_v29, %v3559_v30  ;;  %v4992_v53 = vld [vmem:[%s5291_s11 + $0x8ec] sm:$0xf]  ;;  %v4439_v54 = vld [vmem:[%s5291_s11 + $0x8f8] sm:$0xf0] }
 0x123   : > { %2699 = vmatpush.bf16.msra.mxu1 %v3786_v11  ;;  %2712 = vmatpush.bf16.msra.mxu2 %v3914_v12  ;;  %v2436_v11 = vpop.f32.mrf.mxu0  ;;  %v2409_v12 = vadd.f32 %v5866_v1, %v627_v55  ;;  %v2449_v18 = vpop.f32.mrf.mxu1  ;;  %v3959_v1 = vld [vmem:[%s5291_s11 + $0x538] sm:$0xf0]  ;;  %v3690_v55 = vor.u32 %v4804_v20, %v3687_v36  ;;  %v4912_v47 = vld [vmem:[%s5291_s11 + $0x66c] sm:$0xf] }
 0x124   : > { %2725 = vmatpush.bf16.msra.mxu3 %v4042_v16  ;;  %v5945_v3 = vpop.f32.mrf.mxu3  ;;  %v3575_v16 = vld [vmem:[%s5291_s11 + $0x238] sm:$0xf0] }
 0x125   : > { %2687 = vmatpush.bf16.msra.mxu0 %v3642_v25  ;;  %v3831_v25 = vld [vmem:[%s5291_s11 + $0x438] sm:$0xf0]  ;;  %v2422_v31 = vadd.f32 %v5870_v5, %v2409_v12  ;;  %v5020_v12 = vld [vmem:[%s5291_s11 + $0x9cc] sm:$0xf] }
 0x126   : > { %v3834_v34 = vor.u32 %v4840_v24, %v3831_v25  ;;  %v4295_v8 = vld [vmem:[%s5291_s11 + $0x7d8] sm:$0xf0]  ;;  %v4984_v24 = vld [vmem:[%s5291_s11 + $0x8ac] sm:$0xf] }
 0x127   : > { %2700 = vmatpush.bf16.msra.mxu1 %v3770_v27  ;;  %2713 = vmatpush.bf16.msra.mxu2 %v3898_v28  ;;  %v4872_v27 = vld [vmem:[%s5291_s11 + $0x52c] sm:$0xf]  ;;  %v3578_v28 = vor.u32 %v4776_v15, %v3575_v16  ;;  %v2435_v32 = vadd.f32 %v5924_v40, %v2422_v31  ;;  %v4298_v15 = vor.u32 %v4956_v2, %v4295_v8  ;;  %v4151_v18 = vld [vmem:[%s5291_s11 + $0x6b8] sm:$0xf0] }
 0x128   : > { %2726 = vmatpush.bf16.msra.mxu3 %v4026_v33  ;;  %v3706_v33 = vor.u32 %v4808_v17, %v3703_v23  ;;  %v4920_v17 = vld [vmem:[%s5291_s11 + $0x6ac] sm:$0xf]  ;;  %v4279_v23 = vld [vmem:[%s5291_s11 + $0x7b8] sm:$0xf0] }
 0x129   : > { %2688 = vmatpush.bf16.msra.mxu0 %v3626_v21  ;;  %v2462_v39 = vpop.f32.mrf.mxu2  ;;  %v3962_v21 = vor.u32 %v4872_v27, %v3959_v1  ;;  %v2448_v11 = vadd.f32 %v5929_v49, %v2435_v32  ;;  %v4407_v25 = vld [vmem:[%s5291_s11 + $0x8b8] sm:$0xf0]  ;;  %v5016_v1 = vld [vmem:[%s5291_s11 + $0x9ac] sm:$0xf]  ;;  %v4154_v29 = vor.u32 %v4920_v17, %v4151_v18 }
 0x12a   : > { %v4410_v30 = vor.u32 %v4984_v24, %v4407_v25  ;;  %v4135_v31 = vld [vmem:[%s5291_s11 + $0x698] sm:$0xf0]  ;;  %v4972_v2 = vld [vmem:[%s5291_s11 + $0x84c] sm:$0xf] }
 0x12b   : > { %2701 = vmatpush.bf16.msra.mxu1 %v3754_v43  ;;  %2714 = vmatpush.bf16.msra.mxu2 %v3882_v45  ;;  %v3815_v43 = vld [vmem:[%s5291_s11 + $0x418] sm:$0xf0]  ;;  %v4868_v45 = vld [vmem:[%s5291_s11 + $0x50c] sm:$0xf]  ;;  %v2461_v27 = vadd.f32 %v5940_v62, %v2448_v11 }
 0x12c   : > { %2727 = vmatpush.bf16.msra.mxu3 %v4010_v50  ;;  %v2475_v5 = vpop.f32.mrf.mxu3  ;;  %v4960_v50 = vld [vmem:[%s5291_s11 + $0x7ec] sm:$0xf]  ;;  %v3946_v59 = vor.u32 %v4868_v45, %v3943_v46  ;;  %v4391_v20 = vld [vmem:[%s5291_s11 + $0x898] sm:$0xf0] }
 0x12d   : > { %2689 = vmatpush.bf16.msra.mxu0 %v3610_v56  ;;  %v3818_v56 = vor.u32 %v4836_v37, %v3815_v43  ;;  %v4314_v61 = vor.u32 %v4960_v50, %v4311_v7  ;;  %v4916_v62 = vld [vmem:[%s5291_s11 + $0x68c] sm:$0xf]  ;;  %v2474_v36 = vadd.f32 %v5945_v3, %v2461_v27  ;;  %v4519_v39 = vld [vmem:[%s5291_s11 + $0x998] sm:$0xf0] }
 0x12e   : > { %v4119_v48 = vld [vmem:[%s5291_s11 + $0x678] sm:$0xf0]  ;;  %v4944_v3 = vld [vmem:[%s5291_s11 + $0x76c] sm:$0xf] }
 0x12f   : > { %2702 = vmatpush.bf16.msra.mxu1 %v3738_v57  ;;  %2715 = vmatpush.bf16.msra.mxu2 %v3866_v58  ;;  %v5024_v57 = vld [vmem:[%s5291_s11 + $0x9ec] sm:$0xf]  ;;  %v4567_v58 = vld [vmem:[%s5291_s11 + $0x9f8] sm:$0xf0] }
 0x130   : > { %2728 = vmatpush.bf16.msra.mxu3 %v3994_v63  ;;  %v4442_v63 = vor.u32 %v4992_v53, %v4439_v54  ;;  %v4570_v40 = vor.u32 %v5024_v57, %v4567_v58  ;;  %v4976_v7 = vld [vmem:[%s5291_s11 + $0x86c] sm:$0xf]  ;;  %v4375_v53 = vld [vmem:[%s5291_s11 + $0x878] sm:$0xf0] }
 0x131   : > { %2690 = vmatpush.bf16.msra.mxu0 %v3594_v10  ;;  %v4423_v10 = vld [vmem:[%s5291_s11 + $0x8d8] sm:$0xf0]  ;;  %v5008_v54 = vld [vmem:[%s5291_s11 + $0x96c] sm:$0xf]  ;;  %v4378_v58 = vor.u32 %v4976_v7, %v4375_v53 }
 0x132   : > { %v4426_v16 = vor.u32 %v4988_v9, %v4423_v10  ;;  %v4503_v32 = vld [vmem:[%s5291_s11 + $0x978] sm:$0xf0]  ;;  %v5004_v10 = vld [vmem:[%s5291_s11 + $0x94c] sm:$0xf] }
 0x133   : > { %2703 = vmatpush.bf16.msra.mxu1 %v3722_v13  ;;  %2716 = vmatpush.bf16.msra.mxu2 %v3850_v14  ;;  %v4551_v13 = vld [vmem:[%s5291_s11 + $0x9d8] sm:$0xf0]  ;;  %v4170_v14 = vor.u32 %v4924_v0, %v4167_v35  ;;  %v4904_v18 = vld [vmem:[%s5291_s11 + $0x62c] sm:$0xf] }
 0x134   : > { %2729 = vmatpush.bf16.msra.mxu3 %v3978_v19  ;;  %v4952_v19 = vld [vmem:[%s5291_s11 + $0x7ac] sm:$0xf]  ;;  %v4554_v49 = vor.u32 %v5020_v12, %v4551_v13  ;;  %v4231_v35 = vld [vmem:[%s5291_s11 + $0x758] sm:$0xf0] }
 0x135   : > { %2691 = vmatpush.bf16.msra.mxu0 %v3578_v28  ;;  %v4535_v28 = vld [vmem:[%s5291_s11 + $0x9b8] sm:$0xf0]  ;;  %v4968_v25 = vld [vmem:[%s5291_s11 + $0x82c] sm:$0xf] }
 0x136   : > { %v4487_v11 = vld [vmem:[%s5291_s11 + $0x958] sm:$0xf0] }
 0x137   : > { %2704 = vmatpush.bf16.msra.mxu1 %v3706_v33  ;;  %2717 = vmatpush.bf16.msra.mxu2 %v3834_v34  ;;  %v4538_v33 = vor.u32 %v5016_v1, %v4535_v28  ;;  %v4980_v34 = vld [vmem:[%s5291_s11 + $0x88c] sm:$0xf]  ;;  %v4215_v24 = vld [vmem:[%s5291_s11 + $0x738] sm:$0xf0]  ;;  %v6035_v1 = vmax.f32 %v5853_v51, 0.0 }
 0x138   : > { %2730 = vmatpush.bf16.msra.mxu3 %v3962_v21  ;;  %v4138_v21 = vor.u32 %v4916_v62, %v4135_v31  ;;  %v4394_v5 = vor.u32 %v4980_v34, %v4391_v20  ;;  %v4343_v27 = vld [vmem:[%s5291_s11 + $0x838] sm:$0xf0] }
 0x139   : > { %2692 = vmatpush.bf16.msra.mxu0 %v3562_v52  ;;  %v2486_v37 = vpop.f32.mrf.mxu0  ;;  %v4247_v52 = vld [vmem:[%s5291_s11 + $0x778] sm:$0xf0]  ;;  %v4346_v51 = vor.u32 %v4968_v25, %v4343_v27 }
 0x13a   : > { %v2487_v45 = vadd.f32 %v2486_v37, %v2474_v36  ;;  %v4250_v57 = vor.u32 %v4944_v3, %v4247_v52  ;;  %v4199_v20 = vld [vmem:[%s5291_s11 + $0x718] sm:$0xf0]  ;;  %v4964_v36 = vld [vmem:[%s5291_s11 + $0x80c] sm:$0xf] }
 0x13b   : > { %2705 = vmatpush.bf16.msra.mxu1 %v3690_v55  ;;  %2718 = vmatpush.bf16.msra.mxu2 %v3818_v56  ;;  %v2499_v43 = vpop.f32.mrf.mxu1  ;;  %v4122_v55 = vor.u32 %v4912_v47, %v4119_v48  ;;  %v4327_v37 = vld [vmem:[%s5291_s11 + $0x818] sm:$0xf0]  ;;  %v5117_v48 = vld [vmem:[%s5700_s25] sm:$0xf] }
 0x13c   : > { %2731 = vmatpush.bf16.msra.mxu3 %v3946_v59  ;;  %2693 = vmatmul.bf16.vlgmr.msra.gmra.mxu0 %v5390_v4  ;;  %v4948_v4 = vld [vmem:[%s5291_s11 + $0x78c] sm:$0xf]  ;;  %v2500_v56 = vadd.f32 %v2499_v43, %v2487_v45  ;;  %v628_v3 = vperm.slane %v5117_v48, 2 }
 0x13d   : > { %2737 = vmatpush.bf16.msrb.mxu0 %v4186_v60  ;;  %v4908_v59 = vld [vmem:[%s5291_s11 + $0x64c] sm:$0xf]  ;;  %v4103_v60 = vld [vmem:[%s5291_s11 + $0x658] sm:$0xf0] }
 0x13e   : > { %2719 = vmatmul.bf16.vlgmr.msra.gmra.mxu2 %v5463_v41  ;;  %2706 = vmatmul.bf16.vlgmr.msra.gmra.mxu1 %v5393_v6  ;;  %v4282_v41 = vor.u32 %v4952_v19, %v4279_v23  ;;  %v5012_v6 = vld [vmem:[%s5291_s11 + $0x98c] sm:$0xf]  ;;  %v4106_v13 = vor.u32 %v4908_v59, %v4103_v60  ;;  %v4087_v19 = vld [vmem:[%s5291_s11 + $0x638] sm:$0xf0]  ;;  %v4490_v23 = vor.u32 %v5004_v10, %v4487_v11 }
 0x13f   : > { %2750 = vmatpush.bf16.msrb.mxu1 %v4314_v61  ;;  %2763 = vmatpush.bf16.msrb.mxu2 %v4442_v63  ;;  %v4522_v50 = vor.u32 %v5012_v6, %v4519_v39  ;;  %v4940_v61 = vld [vmem:[%s5291_s11 + $0x74c] sm:$0xf]  ;;  %v4506_v63 = vor.u32 %v5008_v54, %v4503_v32 }
 0x140   : > { %2776 = vmatpush.bf16.msrb.mxu3 %v4570_v40  ;;  %v4359_v40 = vld [vmem:[%s5291_s11 + $0x858] sm:$0xf0]  ;;  %v4996_v39 = vld [vmem:[%s5291_s11 + $0x90c] sm:$0xf] }
 0x141   : > { %2732 = vmatmul.bf16.vlgmr.msra.gmra.mxu3 %v5467_v44  ;;  %2738 = vmatpush.bf16.msrb.mxu0 %v4170_v14  ;;  %v4263_v44 = vld [vmem:[%s5291_s11 + $0x798] sm:$0xf0]  ;;  %v2512_v0 = vpop.f32.mrf.mxu2  ;;  %v2488_v12 = vpop.f32.mrf.mxu0  ;;  %v4362_v17 = vor.u32 %v4972_v2, %v4359_v40 }
 0x142   : > { %v4266_v46 = vor.u32 %v4948_v4, %v4263_v44  ;;  %v2513_v8 = vadd.f32 %v2512_v0, %v2500_v56  ;;  %v4900_v4 = vld [vmem:[%s5291_s11 + $0x60c] sm:$0xf] }
 0x143   : > { %2751 = vmatpush.bf16.msrb.mxu1 %v4298_v15  ;;  %2764 = vmatpush.bf16.msrb.mxu2 %v4426_v16  ;;  %v2501_v14 = vpop.f32.mrf.mxu1  ;;  %v4234_v16 = vor.u32 %v4940_v61, %v4231_v35  ;;  %v4932_v44 = vld [vmem:[%s5291_s11 + $0x70c] sm:$0xf] }
 0x144   : > { %2777 = vmatpush.bf16.msrb.mxu3 %v4554_v49  ;;  %v2525_v9 = vpop.f32.mrf.mxu3  ;;  %v4936_v49 = vld [vmem:[%s5291_s11 + $0x72c] sm:$0xf] }
 0x145   : > { %2739 = vmatpush.bf16.msrb.mxu0 %v4154_v29  ;;  %v2526_v15 = vadd.f32 %v2525_v9, %v2513_v8  ;;  %v5000_v29 = vld [vmem:[%s5291_s11 + $0x92c] sm:$0xf]  ;;  %v4218_v31 = vor.u32 %v4936_v49, %v4215_v24  ;;  %v629_v24 = vperm.slane %v5117_v48, 3 }
 0x147   : > { %2752 = vmatpush.bf16.msrb.mxu1 %v4282_v41  ;;  %2765 = vmatpush.bf16.msrb.mxu2 %v4410_v30  ;;  %v6037_v28 = vmax.f32 %v2526_v15, 0.0  ;;  %v4471_v41 = vld [vmem:[%s5291_s11 + $0x938] sm:$0xf0]  ;;  %v4090_v30 = vor.u32 %v4904_v18, %v4087_v19 }
 0x148   : > { %2778 = vmatpush.bf16.msrb.mxu3 %v4538_v33  ;;  %v4071_v33 = vld [vmem:[%s5291_s11 + $0x618] sm:$0xf0]  ;;  %v4474_v34 = vor.u32 %v5000_v29, %v4471_v41 }
 0x149   : > { %2740 = vmatpush.bf16.msrb.mxu0 %v4138_v21  ;;  %v2793_v62 = vpack.c.bf16 %v6037_v28, %v6035_v1  ;;  %v2514_v6 = vpop.f32.mrf.mxu2  ;;  %v4455_v21 = vld [vmem:[%s5291_s11 + $0x918] sm:$0xf0]  ;;  %v4074_v45 = vor.u32 %v4900_v4, %v4071_v33 }
 0x14a   : > { %v4458_v47 = vor.u32 %v4996_v39, %v4455_v21 }
 0x14b   : > { %2753 = vmatpush.bf16.msrb.mxu1 %v4266_v46  ;;  %2766 = vmatpush.bf16.msrb.mxu2 %v4394_v5  ;;  %2795 = vst [vmem:[%s6050_s7] sm:$0xff] %v2793_v62  ;;  %v4202_v46 = vor.u32 %v4932_v44, %v4199_v20  ;;  %v4330_v5 = vor.u32 %v4964_v36, %v4327_v37 }
 0x14c   : > { %2779 = vmatpush.bf16.msrb.mxu3 %v4522_v50  ;;  %v2527_v43 = vpop.f32.mrf.mxu3 }
 0x14d   : > { %2741 = vmatpush.bf16.msrb.mxu0 %v4122_v55 }
 0x14f   : > { %2754 = vmatpush.bf16.msrb.mxu1 %v4250_v57  ;;  %2767 = vmatpush.bf16.msrb.mxu2 %v4378_v58 }
 0x150   : > { %2780 = vmatpush.bf16.msrb.mxu3 %v4506_v63 }
 0x151   : > { %2742 = vmatpush.bf16.msrb.mxu0 %v4106_v13 }
 0x153   : > { %2755 = vmatpush.bf16.msrb.mxu1 %v4234_v16  ;;  %2768 = vmatpush.bf16.msrb.mxu2 %v4362_v17 }
 0x154   : > { %2781 = vmatpush.bf16.msrb.mxu3 %v4490_v23 }
 0x155   : > { %2743 = vmatpush.bf16.msrb.mxu0 %v4090_v30 }
 0x157   : > { %2756 = vmatpush.bf16.msrb.mxu1 %v4218_v31  ;;  %2769 = vmatpush.bf16.msrb.mxu2 %v4346_v51 }
 0x158   : > { %2782 = vmatpush.bf16.msrb.mxu3 %v4474_v34 }
 0x159   : > { %2744 = vmatpush.bf16.msrb.mxu0 %v4074_v45  ;;  %v2538_v50 = vpop.f32.mrf.mxu0 }
 0x15a   : > { %v2539_v52 = vadd.f32 %v2538_v50, %v628_v3 }
 0x15b   : > { %2757 = vmatpush.bf16.msrb.mxu1 %v4202_v46  ;;  %2770 = vmatpush.bf16.msrb.mxu2 %v4330_v5  ;;  %v2551_v7 = vpop.f32.mrf.mxu1 }
 0x15c   : > { %2783 = vmatpush.bf16.msrb.mxu3 %v4458_v47  ;;  %2745 = vmatmul.bf16.vlgmr.msrb.gmra.mxu0 %v5459_v38  ;;  %v2552_v53 = vadd.f32 %v2551_v7, %v2539_v52 }
 0x15e   : > { %2758 = vmatmul.bf16.vlgmr.msrb.gmra.mxu1 %v5465_v42  ;;  %2771 = vmatmul.bf16.vlgmr.msrb.gmra.mxu2 %v5533_v22 }
 0x15f   : > { %2784 = vmatmul.bf16.vlgmr.msrb.gmra.mxu3 %v5538_v26 }
 0x161   : > { %v2564_v54 = vpop.f32.mrf.mxu2  ;;  %v2540_v57 = vpop.f32.mrf.mxu0 }
 0x162   : > { %v2565_v32 = vadd.f32 %v2564_v54, %v2552_v53 }
 0x163   : > { %v2553_v58 = vpop.f32.mrf.mxu1 }
 0x164   : > { %v2577_v55 = vpop.f32.mrf.mxu3 }
 0x165   : > { %v2578_v56 = vadd.f32 %v2577_v55, %v2565_v32 }
 0x169   : > { %v2566_v59 = vpop.f32.mrf.mxu2 }
 0x16c   : > { %v2579_v38 = vpop.f32.mrf.mxu3 }
 0x179   : > { %v2590_v60 = vpop.f32.mrf.mxu0 }
 0x17a   : > { %v2591_v42 = vadd.f32 %v2590_v60, %v2578_v56 }
 0x17b   : > { %v2603_v61 = vpop.f32.mrf.mxu1 }
 0x17c   : > { %v2604_v22 = vadd.f32 %v2603_v61, %v2591_v42 }
 0x181   : > { %v2616_v63 = vpop.f32.mrf.mxu2  ;;  %v2592_v2 = vpop.f32.mrf.mxu0 }
 0x182   : > { %v2617_v26 = vadd.f32 %v2616_v63, %v2604_v22 }
 0x183   : > { %v2605_v40 = vpop.f32.mrf.mxu1 }
 0x184   : > { %v2629_v0 = vpop.f32.mrf.mxu3 }
 0x185   : > { %v2630_v35 = vadd.f32 %v2629_v0, %v2617_v26 }
 0x189   : > { %v2618_v8 = vpop.f32.mrf.mxu2 }
 0x18c   : > { %v2631_v9 = vpop.f32.mrf.mxu3 }
 0x199   : > { %v2642_v10 = vpop.f32.mrf.mxu0 }
 0x19a   : > { %v2643_v11 = vadd.f32 %v2642_v10, %v2630_v35 }
 0x19b   : > { %v2655_v12 = vpop.f32.mrf.mxu1 }
 0x19c   : > { %v2656_v13 = vadd.f32 %v2655_v12, %v2643_v11 }
 0x19e   : > { %v6060_v47 = vmax.f32 %v2656_v13, 0.0 }
 0x1a1   : > { %v2668_v14 = vpop.f32.mrf.mxu2  ;;  %v2644_v16 = vpop.f32.mrf.mxu0 }
 0x1a2   : > { %v2669_v29 = vadd.f32 %v2668_v14, %v629_v24 }
 0x1a3   : > { %v2657_v17 = vpop.f32.mrf.mxu1 }
 0x1a4   : > { %v2681_v15 = vpop.f32.mrf.mxu3 }
 0x1a5   : > { %v2682_v62 = vadd.f32 %v2681_v15, %v2669_v29 }
 0x1a9   : > { %v2670_v18 = vpop.f32.mrf.mxu2 }
 0x1ac   : > { %v2683_v19 = vpop.f32.mrf.mxu3 }
 0x1b9   : > { %v2694_v49 = vpop.f32.mrf.mxu0 }
 0x1ba   : > { %v2695_v4 = vadd.f32 %v2694_v49, %v2682_v62 }
 0x1bb   : > { %v2707_v23 = vpop.f32.mrf.mxu1 }
 0x1bc   : > { %v2708_v33 = vadd.f32 %v2707_v23, %v2695_v4 }
 0x1c1   : > { %v2720_v25 = vpop.f32.mrf.mxu2  ;;  %v2696_v41 = vpop.f32.mrf.mxu0 }
 0x1c2   : > { %v2721_v44 = vadd.f32 %v2720_v25, %v2708_v33 }
 0x1c3   : > { %v2709_v30 = vpop.f32.mrf.mxu1 }
 0x1c4   : > { %v2733_v27 = vpop.f32.mrf.mxu3 }
 0x1c5   : > { %v2734_v34 = vadd.f32 %v2733_v27, %v2721_v44 }
 0x1c9   : > { %v2722_v31 = vpop.f32.mrf.mxu2 }
 0x1cc   : > { %v2735_v51 = vpop.f32.mrf.mxu3 }
 0x1d9   : > { %v2746_v20 = vpop.f32.mrf.mxu0 }
 0x1da   : > { %v2747_v37 = vadd.f32 %v2746_v20, %v2734_v34 }
 0x1db   : > { %v2759_v36 = vpop.f32.mrf.mxu1 }
 0x1dc   : > { %v2760_v6 = vadd.f32 %v2759_v36, %v2747_v37 }
 0x1e1   : > { %v2772_v39 = vpop.f32.mrf.mxu2  ;;  %v2748_v45 = vpop.f32.mrf.mxu0 }
 0x1e2   : > { %v2773_v21 = vadd.f32 %v2772_v39, %v2760_v6  ;;  %v2785_v43 = vpop.f32.mrf.mxu3 }
 0x1e3   : > { %v2761_v46 = vpop.f32.mrf.mxu1 }
 0x1e4   : > { %v2786_v5 = vadd.f32 %v2785_v43, %v2773_v21 }
 0x1e6   : > { %v6062_v48 = vmax.f32 %v2786_v5, 0.0  ;;  %2800 = sbr.rel (%p4571_p12) target bundleno = 495 (0x1ef), region = 40 }
 0x1e8   : > { %v2794_v3 = vpack.c.bf16 %v6062_v48, %v6060_v47 }
 0x1e9   : > { %v2774_v50 = vpop.f32.mrf.mxu2 }
 0x1ea   : > { %2796 = vst [vmem:[%s6050_s7 + $0x8] sm:$0xff] %v2794_v3  ;;  %v2787_v52 = vpop.f32.mrf.mxu3 }
 0x1eb   : > { %2801 = vst [vmem:[#allocation2 + $0x10] sm:$0xff] %v6035_v1 }
 0x1ec   : > { %2802 = vst [vmem:[#allocation2] sm:$0xff] %v6037_v28 }
 0x1ed   : > { %2803 = vst [vmem:[#allocation2 + $0x18] sm:$0xff] %v6060_v47 }
 0x1ee   : > { %2804 = vst [vmem:[#allocation2 + $0x8] sm:$0xff] %v6062_v48 }
 0x1ef PF: > { %p4572_p13 = scmp.ne.s32.totalorder %s5188_s21, 1 }
 0x1f1   : > { %2808 = sbr.rel (%p4572_p13) target bundleno = 677 (0x2a5), region = 44 }
 0x1f6   : > { %v5034_v7 = vld [vmem:[%s6218_s3 + $0x38] sm:$0xff]  ;;  %v5033_v55 = vld [vmem:[%s6218_s3 + $0x30] sm:$0xff]  ;;  %v5032_v59 = vld [vmem:[%s6218_s3 + $0x28] sm:$0xff]  ;;  %vm3130_vm0 = vcmask 519168  }
 0x1f7   : > { %v5042_v53 = vld [vmem:[%s6218_s3 + $0x78] sm:$0xff]  ;;  %3077 = vmatpush.bf16.msra.mxu0 %v5034_v7  ;;  %v5041_v56 = vld [vmem:[%s6218_s3 + $0x70] sm:$0xff]  ;;  %v5040_v38 = vld [vmem:[%s6218_s3 + $0x68] sm:$0xff] }
 0x1f8   : > { %v5050_v54 = vld [vmem:[%s6218_s3 + $0xb8] sm:$0xff]  ;;  %3090 = vmatpush.bf16.msra.mxu1 %v5042_v53  ;;  %v5049_v57 = vld [vmem:[%s6218_s3 + $0xb0] sm:$0xff]  ;;  %v5048_v60 = vld [vmem:[%s6218_s3 + $0xa8] sm:$0xff] }
 0x1f9   : > { %v5058_v32 = vld [vmem:[%s6218_s3 + $0xf8] sm:$0xff]  ;;  %3103 = vmatpush.bf16.msra.mxu2 %v5050_v54  ;;  %v5057_v58 = vld [vmem:[%s6218_s3 + $0xf0] sm:$0xff]  ;;  %v5056_v42 = vld [vmem:[%s6218_s3 + $0xe8] sm:$0xff] }
 0x1fa   : > { %3116 = vmatpush.bf16.msra.mxu3 %v5058_v32  ;;  %v5031_v61 = vld [vmem:[%s6218_s3 + $0x20] sm:$0xff]  ;;  %v5030_v0 = vld [vmem:[%s6218_s3 + $0x18] sm:$0xff]  ;;  %v5029_v8 = vld [vmem:[%s6218_s3 + $0x10] sm:$0xff] }
 0x1fb   : > { %3078 = vmatpush.bf16.msra.mxu0 %v5033_v55  ;;  %v5039_v22 = vld [vmem:[%s6218_s3 + $0x60] sm:$0xff]  ;;  %v5038_v35 = vld [vmem:[%s6218_s3 + $0x58] sm:$0xff]  ;;  %v5037_v9 = vld [vmem:[%s6218_s3 + $0x50] sm:$0xff] }
 0x1fc   : > { %3091 = vmatpush.bf16.msra.mxu1 %v5041_v56  ;;  %v5047_v63 = vld [vmem:[%s6218_s3 + $0xa0] sm:$0xff]  ;;  %v5046_v2 = vld [vmem:[%s6218_s3 + $0x98] sm:$0xff]  ;;  %v5045_v10 = vld [vmem:[%s6218_s3 + $0x90] sm:$0xff] }
 0x1fd   : > { %3104 = vmatpush.bf16.msra.mxu2 %v5049_v57  ;;  %v5055_v26 = vld [vmem:[%s6218_s3 + $0xe0] sm:$0xff]  ;;  %v5054_v40 = vld [vmem:[%s6218_s3 + $0xd8] sm:$0xff]  ;;  %v5053_v11 = vld [vmem:[%s6218_s3 + $0xd0] sm:$0xff] }
 0x1fe   : > { %3117 = vmatpush.bf16.msra.mxu3 %v5057_v58  ;;  %v5028_v12 = vld [vmem:[%s6218_s3 + $0x8] sm:$0xff]  ;;  %v2809_v15 = vld [vmem:[#allocation2 + $0x10] sm:$0xff]  ;;  %v2810_v16 = vld [vmem:[#allocation2] sm:$0xff] }
 0x1ff   : > { %3079 = vmatpush.bf16.msra.mxu0 %v5032_v59  ;;  %v5036_v13 = vld [vmem:[%s6218_s3 + $0x48] sm:$0xff]  ;;  %v2811_v18 = vld [vmem:[#allocation2 + $0x18] sm:$0xff]  ;;  %v2813_v49 = vadd.f32 %v2809_v15, %v6035_v1  ;;  %v2814_v23 = vadd.f32 %v2810_v16, %v6037_v28  ;;  %v5027_v24 = vld [vmem:[%s6218_s3] sm:$0xff] }
 0x200   : > { %3092 = vmatpush.bf16.msra.mxu1 %v5040_v38  ;;  %v5044_v14 = vld [vmem:[%s6218_s3 + $0x88] sm:$0xff]  ;;  %v5035_v25 = vld [vmem:[%s6218_s3 + $0x40] sm:$0xff]  ;;  %v2815_v27 = vadd.f32 %v2811_v18, %v6060_v47 }
 0x201   : > { %3105 = vmatpush.bf16.msra.mxu2 %v5048_v60  ;;  %v5052_v17 = vld [vmem:[%s6218_s3 + $0xc8] sm:$0xff]  ;;  %v5043_v1 = vld [vmem:[%s6218_s3 + $0x80] sm:$0xff]  ;;  %v2817_v41 = vpack.c.bf16 %v2813_v49, %v2813_v49  ;;  %v2818_v30 = vpack.c.bf16 %v2814_v23, %v2814_v23 }
 0x202   : > { %3118 = vmatpush.bf16.msra.mxu3 %v5056_v42  ;;  %v2812_v19 = vld [vmem:[#allocation2 + $0x8] sm:$0xff]  ;;  %v5051_v28 = vld [vmem:[%s6218_s3 + $0xc0] sm:$0xff]  ;;  %v2819_v62 = vpack.c.bf16 %v2815_v27, %v2815_v27 }
 0x203   : > { %3080 = vmatpush.bf16.msra.mxu0 %v5031_v61  ;;  %v2816_v29 = vadd.f32 %v2812_v19, %v6062_v48 }
 0x204   : > { %3093 = vmatpush.bf16.msra.mxu1 %v5039_v22 }
 0x205   : > { %3106 = vmatpush.bf16.msra.mxu2 %v5047_v63  ;;  %v2820_v31 = vpack.c.bf16 %v2816_v29, %v2816_v29 }
 0x206   : > { %3119 = vmatpush.bf16.msra.mxu3 %v5055_v26 }
 0x207   : > { %3081 = vmatpush.bf16.msra.mxu0 %v5030_v0 }
 0x208   : > { %3094 = vmatpush.bf16.msra.mxu1 %v5038_v35 }
 0x209   : > { %3107 = vmatpush.bf16.msra.mxu2 %v5046_v2 }
 0x20a   : > { %3120 = vmatpush.bf16.msra.mxu3 %v5054_v40 }
 0x20b   : > { %3082 = vmatpush.bf16.msra.mxu0 %v5029_v8 }
 0x20c   : > { %3095 = vmatpush.bf16.msra.mxu1 %v5037_v9 }
 0x20d   : > { %3108 = vmatpush.bf16.msra.mxu2 %v5045_v10 }
 0x20e   : > { %3121 = vmatpush.bf16.msra.mxu3 %v5053_v11 }
 0x20f   : > { %3083 = vmatpush.bf16.msra.mxu0 %v5028_v12 }
 0x210   : > { %3096 = vmatpush.bf16.msra.mxu1 %v5036_v13 }
 0x211   : > { %3109 = vmatpush.bf16.msra.mxu2 %v5044_v14 }
 0x212   : > { %3122 = vmatpush.bf16.msra.mxu3 %v5052_v17 }
 0x213   : > { %3084 = vmatpush.bf16.msra.mxu0 %v5027_v24 }
 0x214   : > { %3097 = vmatpush.bf16.msra.mxu1 %v5035_v25 }
 0x215   : > { %3110 = vmatpush.bf16.msra.mxu2 %v5043_v1 }
 0x216   : > { %3123 = vmatpush.bf16.msra.mxu3 %v5051_v28  ;;  %3085 = vmatmul.bf16.vlgmr.msra.gmra.mxu0 %v2817_v41 }
 0x217   : > { %3098 = vmatmul.bf16.vlgmr.msra.gmra.mxu1 %v2818_v30 }
 0x218   : > { %3111 = vmatmul.bf16.vlgmr.msra.gmra.mxu2 %v2819_v62 }
 0x219   : > { %3124 = vmatmul.bf16.vlgmr.msra.gmra.mxu3 %v2820_v31 }
 0x293   : > { %v3086_v51 = vpop.f32.mrf.mxu0 }
 0x294   : > { %v3099_v4 = vpop.f32.mrf.mxu1 }
 0x295   : > { %v3100_v33 = vadd.f32 %v3099_v4, %v3086_v51 }
 0x29b   : > { %v3112_v44 = vpop.f32.mrf.mxu2  ;;  %v3088_v36 = vpop.f32.mrf.mxu0 }
 0x29c   : > { %v3125_v34 = vpop.f32.mrf.mxu3  ;;  %v3113_v20 = vadd.f32 %v3112_v44, %v3100_v33  ;;  %v3101_v37 = vpop.f32.mrf.mxu1 }
 0x29e   : > { %v3126_v6 = vadd.f32 %v3125_v34, %v3113_v20 }
 0x2a0   : > { %v3129_v39 = vpack.c.bf16 %v3126_v6, %v3126_v6 }
 0x2a2   : > { %3131 = vst.msk [vmem:[%s6220_s5] sm:$0xf] %vm3130_vm0, %v3129_v39 }
 0x2a3   : > { %v3114_v21 = vpop.f32.mrf.mxu2 }
 0x2a4   : > { %v3127_v43 = vpop.f32.mrf.mxu3 }
 0x2a5 PF: > { %s5059_s9 = sshll.u32 %s5188_s21, 4  ;;  %s3152_s13 = sshll.u32 %s6050_s7, 4  ;;  %s3153_s13 = int_to_ptr.vmem [resolvable:$true] %s3152_s13 }
 0x2a6   : > { %s3150_s12 = scalar_lea.hbm %s6219_s4, %s5059_s9  ;;  %s3133_s15 = scalar_lea.sflag [#allocation4], %s268_s27 }
 0x2a7   : > { %s3154_s14 = sshll.u32 %s3150_s12, 4  ;;  %s5138_s21 = scalar_lea.hbm %s6219_s4, 32  ;;  %s3155_s14 = int_to_ptr.hbm [resolvable:$true] %s3154_s14 }
 0x2a8   : > { %s5132_s16 = sshra.s32 %s3155_s14, 4  ;;  %s5133_s16 = int_to_ptr.hbm [resolvable:$true] %s5132_s16 }
 0x2a9   : > { %s5134_s17 = scalar_lea.hbm %s5133_s16, 16  ;;  %p5139_p3 = scmp.lt.s32.totalorder %s5133_s16, %s6219_s4 }
 0x2aa   : > { %p5135_p0 = scmp.ne.s32.totalorder %s5133_s16, %s5134_s17  ;;  %p5140_p5 = scmp.lt.s32.totalorder %s5138_s21, %s5134_s17 }
 0x2ac   : > { %p5136_p1 = pnand %p5135_p0, %p5268_p4  ;;  %p5141_p6 = por %p5140_p5, %p5139_p3 }
 0x2ae   : > { %p5137_p2 = pneg %p5136_p1 }
 0x2b0   : > { %p5142_p7 = pnand %p5141_p6, %p5137_p2 }
 0x2b2   : > { %5145 = shalt.err (!%p5142_p7)
}
 0x2b3   : > { %5062 = dma.vmem_to_hbm [thread:$0]  (%p5268_p4), %s3153_s13, 256, %s3155_s14, %s3133_s15  }
 0x2b4 PF: > { %p5068_p9 = scmp.ge.s32.totalorder %s5196_s23, 2  ;;  %s3176_s27 = sand.u32 1, %s5176_s18  }
 0x2b5   : > { %s3177_s7 = scalar_lea.sflag [#allocation4], %s3176_s27 }
 0x2b6   : > { %p5065_p10 = pnand %p5068_p9, %p5275_p8 }
 0x2b8   : > { %p5066_p11 = pneg %p5065_p10 }
 0x2ba   : > { %5171 = dma.done.wait (%p5066_p11), %s3177_s7, 256  }
 0x2bb   : > { %5173 = vsyncadd (%p5066_p11), %s3177_s7, 4294967040  ;;  %s19_s23 = sadd.s32 1, %s5196_s23   ;;  %s6223_s18 = smov %s5180_s19 }
 0x2bc   : > { %p16_p12 = scmp.ge.s32.totalorder %s19_s23, 4   ;;  %s6224_s19 = smov %s5184_s20 }
 0x2bd   : > { %s6225_s20 = smov %s5281_s6  ;;  %s6226_s21 = smov %s5192_s22 }
 0x2be   : > { %s6227_s22 = smov %s6229_s26  ;;  %18 = sbr.rel (!%p16_p12) target bundleno = 4 (0x4), region = 97 }
 0x2c3   :  { %3183 = vsyncpa [#allocation4], 1 }
 0x2c4   :  { %3185 = vsyncpa [#allocation4 + $0x1], 1 }

</bundles_post_ra>
